<compile_context>
chip_gen: v7x
topology: tpu7x:2x2x1
jax: 0.10.0
libtpu: 0.0.40
codegen_flags: <defaults>
</compile_context>

<pallas_src>
import functools

import jax
import jax.numpy as jnp
import numpy as np
from jax.experimental import pallas as pl
from jax.experimental.pallas import tpu as pltpu

INPUT_DIM = 3
SEQ_LEN = 8
EMBEDDING_DIM = 30
FIRST_H_DIM = 30
SECOND_H_DIM = 60
GATE_PAD = 128            # each gate padded to 128 output lanes
OUT_PAD = 128             # lane-dense hidden2pos output (sliced to 3 on host)


# ----------------------------- kernel ---------------------------------------

def my_net_v2_kernel(seq, bt,
                     x_ref,
                     w_in1_ref, w_hh1_ref,
                     w_st_ref, b_st_ref,
                     w_in2_ref, b_in2_ref, w_hh2_ref,
                     w_hp_ref, b_hp_ref,
                     out_ref,
                     xg1_scr, xg2_scr):
    f32 = jnp.float32

    def sigmoid_eup(v):
        # sigmoid(x) == 0.5*(1 + tanh(0.5*x)): one EUP op, no divide.
        return 0.5 * jnp.tanh(0.5 * v) + 0.5

    def lstm_step(xg, h, c, w_hh_ref, H):
        # One fused recurrent matmul; gate extraction at 128-lane boundaries.
        gates = xg + jnp.dot(h, w_hh_ref[...], preferred_element_type=f32)
        i_t = sigmoid_eup(gates[:, 0 * GATE_PAD:0 * GATE_PAD + H])
        f_t = sigmoid_eup(gates[:, 1 * GATE_PAD:1 * GATE_PAD + H])
        g_t = jnp.tanh(gates[:, 2 * GATE_PAD:2 * GATE_PAD + H])
        o_t = sigmoid_eup(gates[:, 3 * GATE_PAD:3 * GATE_PAD + H])
        c_n = f_t * c + i_t * g_t
        h_n = o_t * jnp.tanh(c_n)
        return h_n, c_n

    # Hoisted, gate-fused input projection for LSTM1 (spatial_embedding and the
    # summed biases are folded into w_in1; the ones column carries the bias).
    xg1_scr[...] = jnp.dot(x_ref[...], w_in1_ref[...], preferred_element_type=f32)

    # ---- encoder (LSTM1) ----
    h1 = jnp.zeros((bt, FIRST_H_DIM), f32)
    c1 = jnp.zeros((bt, FIRST_H_DIM), f32)
    for t in range(seq):                      # static trip count -> fully unrolled
        lo = t * bt                           # sublane aligned (bt % 8 == 0)
        h1, c1 = lstm_step(xg1_scr[lo:lo + bt, :], h1, c1, w_hh1_ref, FIRST_H_DIM)
        # Interleave LSTM2's input projection with the LSTM1 recurrence; stage in VMEM.
        xg2_scr[lo:lo + bt, :] = (
            jnp.dot(h1, w_in2_ref[...], preferred_element_type=f32) + b_in2_ref[...])

    # ---- state_embedding of final (h, c): one fused matmul via sublane stacking ----
    hc = jnp.concatenate([h1, c1], axis=0)                       # (2*bt, 30)
    hc2 = jnp.dot(hc, w_st_ref[...], preferred_element_type=f32) + b_st_ref[...]
    h2 = hc2[:bt, :]                                             # (bt, 60)
    c2 = hc2[bt:, :]                                             # (bt, 60)

    # ---- encoder2 (LSTM2) with hidden2pos interleaved per step ----
    for t in range(seq):
        lo = t * bt
        h2, c2 = lstm_step(xg2_scr[lo:lo + bt, :], h2, c2, w_hh2_ref, SECOND_H_DIM)
        pos_t = jnp.dot(h2, w_hp_ref[...], preferred_element_type=f32) + b_hp_ref[...]
        out_ref[lo:lo + bt, :] = pos_t.astype(out_ref.dtype)     # lane-dense (bt, 128)


# ----------------------------- wrapper ---------------------------------------

def _full_spec(shape):
    nd = len(shape)
    return pl.BlockSpec(shape, lambda b, _nd=nd: (0,) * _nd)


def my_net_v2_forward(obs_traj, params):
    seq, batch, _ = obs_traj.shape
    # Batch tile: pad to sublane multiple; cap tile at 64 rows and use a
    # "parallel" grid over tiles (both TensorCores on v7x for large batches).
    bt = min(64, -(-batch // 8) * 8)
    batch_p = -(-batch // bt) * bt
    num_tiles = batch_p // bt

    x = obs_traj.astype(jnp.float32)
    if batch_p != batch:
        x = jnp.pad(x, ((0, 0), (0, batch_p - batch), (0, 0)))
    # Append the ones column that carries the folded LSTM1 bias (K: 3 -> 4).
    x = jnp.concatenate([x, jnp.ones((seq, batch_p, 1), jnp.float32)], axis=-1)
    # (seq, batch_p, 4) -> (num_tiles, seq*bt, 4), time-major inside each tile.
    x_tiles = (x.reshape(seq, num_tiles, bt, INPUT_DIM + 1)
                 .transpose(1, 0, 2, 3)
                 .reshape(num_tiles, seq * bt, INPUT_DIM + 1))

    weight_args = (params['w_in1'], params['w_hh1'],
                   params['w_st'], params['b_st'],
                   params['w_in2'], params['b_in2'], params['w_hh2'],
                   params['w_hp'], params['b_hp'])

    in_specs = [pl.BlockSpec((None, seq * bt, INPUT_DIM + 1), lambda b: (b, 0, 0))]
    in_specs += [_full_spec(a.shape) for a in weight_args]

    out_tiles = pl.pallas_call(
        functools.partial(my_net_v2_kernel, seq, bt),
        out_shape=jax.ShapeDtypeStruct((num_tiles, seq * bt, OUT_PAD), jnp.float32),
        grid=(num_tiles,),
        in_specs=in_specs,
        out_specs=pl.BlockSpec((None, seq * bt, OUT_PAD), lambda b: (b, 0, 0)),
        scratch_shapes=[pltpu.VMEM((seq * bt, 4 * GATE_PAD), jnp.float32),   # xg1
                        pltpu.VMEM((seq * bt, 4 * GATE_PAD), jnp.float32)],  # xg2
        compiler_params=pltpu.CompilerParams(
            dimension_semantics=("parallel",)),
    )(x_tiles, *weight_args)

    out = (out_tiles.reshape(num_tiles, seq, bt, OUT_PAD)
                    .transpose(1, 0, 2, 3)
                    .reshape(seq, batch_p, OUT_PAD))
    return out[:, :batch, :INPUT_DIM]


# ----------------------------- parameter prep --------------------------------

def init_raw_params(key):
    """Deterministic PyTorch-style uniform(-1/sqrt(fan), 1/sqrt(fan)) init (PyTorch layout)."""
    ks = jax.random.split(key, 14)

    def uni(k, shape, fan):
        bound = 1.0 / float(np.sqrt(fan))
        return jax.random.uniform(k, shape, jnp.float32, -bound, bound)

    return dict(
        # spatial_embedding: Linear(3, 30)
        w_se=uni(ks[0], (EMBEDDING_DIM, INPUT_DIM), INPUT_DIM),
        b_se=uni(ks[1], (EMBEDDING_DIM,), INPUT_DIM),
        # encoder: LSTM(30, 30)
        w_ih1=uni(ks[2], (4 * FIRST_H_DIM, EMBEDDING_DIM), FIRST_H_DIM),
        w_hh1=uni(ks[3], (4 * FIRST_H_DIM, FIRST_H_DIM), FIRST_H_DIM),
        b_ih1=uni(ks[4], (4 * FIRST_H_DIM,), FIRST_H_DIM),
        b_hh1=uni(ks[5], (4 * FIRST_H_DIM,), FIRST_H_DIM),
        # state_embedding: Linear(30, 60)
        w_st=uni(ks[6], (SECOND_H_DIM, FIRST_H_DIM), FIRST_H_DIM),
        b_st=uni(ks[7], (SECOND_H_DIM,), FIRST_H_DIM),
        # encoder2: LSTM(30, 60)
        w_ih2=uni(ks[8], (4 * SECOND_H_DIM, EMBEDDING_DIM), SECOND_H_DIM),
        w_hh2=uni(ks[9], (4 * SECOND_H_DIM, SECOND_H_DIM), SECOND_H_DIM),
        b_ih2=uni(ks[10], (4 * SECOND_H_DIM,), SECOND_H_DIM),
        b_hh2=uni(ks[11], (4 * SECOND_H_DIM,), SECOND_H_DIM),
        # hidden2pos: Linear(60, 3)
        w_hp=uni(ks[12], (INPUT_DIM, SECOND_H_DIM), SECOND_H_DIM),
        b_hp=uni(ks[13], (INPUT_DIM,), SECOND_H_DIM),
    )


def _fuse_gates(w_t, H):
    """(K, 4H) gate-ordered [i,f,g,o] -> (K, 4*GATE_PAD) with gate g at
    columns [g*GATE_PAD, g*GATE_PAD + H); remaining columns zero."""
    K = w_t.shape[0]
    out = jnp.zeros((K, 4 * GATE_PAD), jnp.float32)
    for g in range(4):
        out = out.at[:, g * GATE_PAD:g * GATE_PAD + H].set(w_t[:, g * H:(g + 1) * H])
    return out


def prepare_params(raw):
    """Host-side weight prep: transpose, fold spatial_embedding + summed biases into
    LSTM1's input weights (ones-column trick), gate-fuse/pad all LSTM weights to
    128-lane gates, pad hidden2pos output to 128 lanes."""
    H1, H2 = FIRST_H_DIM, SECOND_H_DIM

    # Fold spatial_embedding (Linear 3->30) + b_ih1 + b_hh1 into LSTM1 input weights.
    w_in1_full = raw['w_se'].T @ raw['w_ih1'].T                              # (3, 120)
    b_in1_full = raw['b_se'] @ raw['w_ih1'].T + raw['b_ih1'] + raw['b_hh1']  # (120,)
    w_in1_ext = jnp.concatenate([w_in1_full, b_in1_full[None, :]], axis=0)   # (4, 120)

    w_hp_pad = jnp.zeros((H2, OUT_PAD), jnp.float32).at[:, :INPUT_DIM].set(raw['w_hp'].T)
    b_hp_pad = jnp.zeros((1, OUT_PAD), jnp.float32).at[0, :INPUT_DIM].set(raw['b_hp'])

    return dict(
        w_in1=_fuse_gates(w_in1_ext, H1),                  # (4, 512)  bias folded
        w_hh1=_fuse_gates(raw['w_hh1'].T, H1),             # (30, 512)
        w_st=raw['w_st'].T,                                # (30, 60)
        b_st=raw['b_st'][None, :],                         # (1, 60)
        w_in2=_fuse_gates(raw['w_ih2'].T, H2),             # (30, 512)
        b_in2=_fuse_gates((raw['b_ih2'] + raw['b_hh2'])[None, :], H2),  # (1, 512)
        w_hh2=_fuse_gates(raw['w_hh2'].T, H2),             # (60, 512)
        w_hp=w_hp_pad,                                     # (60, 128)
        b_hp=b_hp_pad,                                     # (1, 128)
    )


# ----------------------------- pure-JAX reference ----------------------------

def reference_forward(obs_traj, raw):
    """Pure-JAX reference mirroring the PyTorch forward (unfused weights)."""
    seq, batch, _ = obs_traj.shape
    emb = (obs_traj.reshape(-1, INPUT_DIM) @ raw['w_se'].T + raw['b_se']
           ).reshape(seq, batch, EMBEDDING_DIM)

    def cell(x_t, h, c, w_ih, w_hh, b_ih, b_hh, H):
        g = x_t @ w_ih.T + h @ w_hh.T + b_ih + b_hh
        i = jax.nn.sigmoid(g[:, :H])
        f = jax.nn.sigmoid(g[:, H:2 * H])
        gg = jnp.tanh(g[:, 2 * H:3 * H])
        o = jax.nn.sigmoid(g[:, 3 * H:])
        c_n = f * c + i * gg
        return o * jnp.tanh(c_n), c_n

    h = jnp.zeros((batch, FIRST_H_DIM), jnp.float32)
    c = jnp.zeros((batch, FIRST_H_DIM), jnp.float32)
    outs1 = []
    for t in range(seq):
        h, c = cell(emb[t], h, c, raw['w_ih1'], raw['w_hh1'],
                    raw['b_ih1'], raw['b_hh1'], FIRST_H_DIM)
        outs1.append(h)
    out1 = jnp.stack(outs1)

    h2 = h @ raw['w_st'].T + raw['b_st']
    c2 = c @ raw['w_st'].T + raw['b_st']
    outs2 = []
    for t in range(seq):
        h2, c2 = cell(out1[t], h2, c2, raw['w_ih2'], raw['w_hh2'],
                      raw['b_ih2'], raw['b_hh2'], SECOND_H_DIM)
        outs2.append(h2)
    out2 = jnp.stack(outs2)

    pos = out2.reshape(-1, SECOND_H_DIM) @ raw['w_hp'].T + raw['b_hp']
    return pos.reshape(seq, batch, INPUT_DIM)


# ----------------------------- main -------------------------------------------

if __name__ == "__main__":
    key = jax.random.PRNGKey(0)
    pkey, xkey = jax.random.split(key)
    raw_params = init_raw_params(pkey)
    params = prepare_params(raw_params)

    seq, batch = SEQ_LEN, 4
    obs_traj = jax.random.normal(xkey, (seq, batch, INPUT_DIM), jnp.float32)

    out = jax.block_until_ready(my_net_v2_forward(obs_traj, params))
    assert out.shape == (seq, batch, INPUT_DIM)
    ref = reference_forward(obs_traj, raw_params)
    np.testing.assert_allclose(np.asarray(out), np.asarray(ref), rtol=2e-3, atol=2e-3)

    # Exercise the multi-tile "parallel" grid path (batched inference).
    batch2 = 100
    obs2 = jax.random.normal(jax.random.PRNGKey(1), (seq, batch2, INPUT_DIM), jnp.float32)
    out2 = jax.block_until_ready(my_net_v2_forward(obs2, params))
    ref2 = reference_forward(obs2, raw_params)
    np.testing.assert_allclose(np.asarray(out2), np.asarray(ref2), rtol=2e-3, atol=2e-3)

    print("KERNEL_OK")
</pallas_src>

<mosaic_0001>
module attributes {stable_mosaic.version = 11 : i64} {
  func.func @my_net_v2_kernel(%arg0: i32, %arg1: memref<1x64x4xf32, #tpu.memory_space<vmem>>, %arg2: memref<4x512xf32, #tpu.memory_space<vmem>>, %arg3: memref<30x512xf32, #tpu.memory_space<vmem>>, %arg4: memref<30x60xf32, #tpu.memory_space<vmem>>, %arg5: memref<1x60xf32, #tpu.memory_space<vmem>>, %arg6: memref<30x512xf32, #tpu.memory_space<vmem>>, %arg7: memref<1x512xf32, #tpu.memory_space<vmem>>, %arg8: memref<60x512xf32, #tpu.memory_space<vmem>>, %arg9: memref<60x128xf32, #tpu.memory_space<vmem>>, %arg10: memref<1x128xf32, #tpu.memory_space<vmem>>, %arg11: memref<1x64x128xf32, #tpu.memory_space<vmem>>, %arg12: memref<64x512xf32, #tpu.memory_space<vmem>>, %arg13: memref<64x512xf32, #tpu.memory_space<vmem>>) attributes {dimension_semantics = [#tpu.dimension_semantics<parallel>], iteration_bounds = array<i64: 1>, scalar_prefetch = 0 : i64, scratch_operands = 2 : i64, tpu.core_type = #tpu.core_type<tc>, window_params = [{transform_indices = @transform_0, window_bounds = array<i64: 1, 64, 4>}, {pipeline_mode = #tpu.pipeline_mode<synchronous>, transform_indices = @transform_1, window_bounds = array<i64: 4, 512>}, {pipeline_mode = #tpu.pipeline_mode<synchronous>, transform_indices = @transform_2, window_bounds = array<i64: 30, 512>}, {pipeline_mode = #tpu.pipeline_mode<synchronous>, transform_indices = @transform_3, window_bounds = array<i64: 30, 60>}, {pipeline_mode = #tpu.pipeline_mode<synchronous>, transform_indices = @transform_4, window_bounds = array<i64: 1, 60>}, {pipeline_mode = #tpu.pipeline_mode<synchronous>, transform_indices = @transform_5, window_bounds = array<i64: 30, 512>}, {pipeline_mode = #tpu.pipeline_mode<synchronous>, transform_indices = @transform_6, window_bounds = array<i64: 1, 512>}, {pipeline_mode = #tpu.pipeline_mode<synchronous>, transform_indices = @transform_7, window_bounds = array<i64: 60, 512>}, {pipeline_mode = #tpu.pipeline_mode<synchronous>, transform_indices = @transform_8, window_bounds = array<i64: 60, 128>}, {pipeline_mode = #tpu.pipeline_mode<synchronous>, transform_indices = @transform_9, window_bounds = array<i64: 1, 128>}, {transform_indices = @transform_10, window_bounds = array<i64: 1, 64, 128>}]} {
    %c0 = arith.constant 0 : index
    %c0_0 = arith.constant 0 : index
    %c0_1 = arith.constant 0 : index
    %0 = vector.load %arg1[%c0, %c0_0, %c0_1] : memref<1x64x4xf32, #tpu.memory_space<vmem>>, vector<1x64x4xf32>
    %1 = vector.shape_cast %0 : vector<1x64x4xf32> to vector<64x4xf32>
    %c0_2 = arith.constant 0 : index
    %c0_3 = arith.constant 0 : index
    %2 = vector.load %arg2[%c0_2, %c0_3] : memref<4x512xf32, #tpu.memory_space<vmem>>, vector<4x512xf32>
    %cst = arith.constant dense<0.000000e+00> : vector<64x512xf32>
    %3 = tpu.matmul %1, %2, %cst {dimension_numbers = #tpu.dot_dimension_numbers<[1], [0], [0], [1], [0, 0, 1, 1], [], []>} : vector<64x4xf32>, vector<4x512xf32>, vector<64x512xf32> -> vector<64x512xf32>
    %c0_4 = arith.constant 0 : index
    %c0_5 = arith.constant 0 : index
    %4 = vector.load %arg12[%c0_4, %c0_5] : memref<64x512xf32, #tpu.memory_space<vmem>>, vector<64x512xf32>
    tpu.vector_store %arg12[%c0_4, %c0_5], %3 {strides = array<i32>} : memref<64x512xf32, #tpu.memory_space<vmem>>, vector<64x512xf32>,
    %cst_6 = arith.constant 0.000000e+00 : f32
    %5 = vector.broadcast %cst_6 : f32 to vector<8x30xf32>
    %cst_7 = arith.constant 0.000000e+00 : f32
    %6 = vector.broadcast %cst_7 : f32 to vector<8x30xf32>
    %c0_8 = arith.constant 0 : index
    %c0_9 = arith.constant 0 : index
    %7 = vector.load %arg12[%c0_8, %c0_9] : memref<64x512xf32, #tpu.memory_space<vmem>>, vector<8x512xf32>
    %c0_10 = arith.constant 0 : index
    %c0_11 = arith.constant 0 : index
    %8 = vector.load %arg3[%c0_10, %c0_11] : memref<30x512xf32, #tpu.memory_space<vmem>>, vector<30x512xf32>
    %cst_12 = arith.constant dense<0.000000e+00> : vector<8x512xf32>
    %9 = tpu.matmul %5, %8, %cst_12 {dimension_numbers = #tpu.dot_dimension_numbers<[1], [0], [0], [1], [0, 0, 1, 1], [], []>} : vector<8x30xf32>, vector<30x512xf32>, vector<8x512xf32> -> vector<8x512xf32>
    %10 = arith.addf %7, %9 : vector<8x512xf32>
    %11 = vector.extract_strided_slice %10 {offsets = [0, 0], sizes = [8, 30], strides = [1, 1]} : vector<8x512xf32> to vector<8x30xf32>
    %cst_13 = arith.constant 5.000000e-01 : f32
    %12 = vector.broadcast %cst_13 : f32 to vector<8x30xf32>
    %13 = arith.mulf %12, %11 : vector<8x30xf32>
    %14 = math.tanh %13 : vector<8x30xf32>
    %cst_14 = arith.constant 5.000000e-01 : f32
    %15 = vector.broadcast %cst_14 : f32 to vector<8x30xf32>
    %16 = arith.mulf %15, %14 : vector<8x30xf32>
    %cst_15 = arith.constant 5.000000e-01 : f32
    %17 = vector.broadcast %cst_15 : f32 to vector<8x30xf32>
    %18 = arith.addf %16, %17 : vector<8x30xf32>
    %19 = vector.extract_strided_slice %10 {offsets = [0, 128], sizes = [8, 30], strides = [1, 1]} : vector<8x512xf32> to vector<8x30xf32>
    %cst_16 = arith.constant 5.000000e-01 : f32
    %20 = vector.broadcast %cst_16 : f32 to vector<8x30xf32>
    %21 = arith.mulf %20, %19 : vector<8x30xf32>
    %22 = math.tanh %21 : vector<8x30xf32>
    %cst_17 = arith.constant 5.000000e-01 : f32
    %23 = vector.broadcast %cst_17 : f32 to vector<8x30xf32>
    %24 = arith.mulf %23, %22 : vector<8x30xf32>
    %cst_18 = arith.constant 5.000000e-01 : f32
    %25 = vector.broadcast %cst_18 : f32 to vector<8x30xf32>
    %26 = arith.addf %24, %25 : vector<8x30xf32>
    %27 = vector.extract_strided_slice %10 {offsets = [0, 256], sizes = [8, 30], strides = [1, 1]} : vector<8x512xf32> to vector<8x30xf32>
    %28 = math.tanh %27 : vector<8x30xf32>
    %29 = vector.extract_strided_slice %10 {offsets = [0, 384], sizes = [8, 30], strides = [1, 1]} : vector<8x512xf32> to vector<8x30xf32>
    %cst_19 = arith.constant 5.000000e-01 : f32
    %30 = vector.broadcast %cst_19 : f32 to vector<8x30xf32>
    %31 = arith.mulf %30, %29 : vector<8x30xf32>
    %32 = math.tanh %31 : vector<8x30xf32>
    %cst_20 = arith.constant 5.000000e-01 : f32
    %33 = vector.broadcast %cst_20 : f32 to vector<8x30xf32>
    %34 = arith.mulf %33, %32 : vector<8x30xf32>
    %cst_21 = arith.constant 5.000000e-01 : f32
    %35 = vector.broadcast %cst_21 : f32 to vector<8x30xf32>
    %36 = arith.addf %34, %35 : vector<8x30xf32>
    %37 = arith.mulf %26, %6 : vector<8x30xf32>
    %38 = arith.mulf %18, %28 : vector<8x30xf32>
    %39 = arith.addf %37, %38 : vector<8x30xf32>
    %40 = math.tanh %39 : vector<8x30xf32>
    %41 = arith.mulf %36, %40 : vector<8x30xf32>
    %c0_22 = arith.constant 0 : index
    %c0_23 = arith.constant 0 : index
    %42 = vector.load %arg6[%c0_22, %c0_23] : memref<30x512xf32, #tpu.memory_space<vmem>>, vector<30x512xf32>
    %cst_24 = arith.constant dense<0.000000e+00> : vector<8x512xf32>
    %43 = tpu.matmul %41, %42, %cst_24 {dimension_numbers = #tpu.dot_dimension_numbers<[1], [0], [0], [1], [0, 0, 1, 1], [], []>} : vector<8x30xf32>, vector<30x512xf32>, vector<8x512xf32> -> vector<8x512xf32>
    %c0_25 = arith.constant 0 : index
    %c0_26 = arith.constant 0 : index
    %44 = vector.load %arg7[%c0_25, %c0_26] : memref<1x512xf32, #tpu.memory_space<vmem>>, vector<1x512xf32>
    %45 = vector.broadcast %44 : vector<1x512xf32> to vector<8x512xf32>
    %46 = arith.addf %43, %45 : vector<8x512xf32>
    %c0_27 = arith.constant 0 : index
    %c0_28 = arith.constant 0 : index
    %47 = vector.load %arg13[%c0_27, %c0_28] : memref<64x512xf32, #tpu.memory_space<vmem>>, vector<8x512xf32>
    tpu.vector_store %arg13[%c0_27, %c0_28], %46 {strides = array<i32>} : memref<64x512xf32, #tpu.memory_space<vmem>>, vector<8x512xf32>,
    %c8 = arith.constant 8 : index
    %c0_29 = arith.constant 0 : index
    %48 = vector.load %arg12[%c8, %c0_29] : memref<64x512xf32, #tpu.memory_space<vmem>>, vector<8x512xf32>
    %c0_30 = arith.constant 0 : index
    %c0_31 = arith.constant 0 : index
    %49 = vector.load %arg3[%c0_30, %c0_31] : memref<30x512xf32, #tpu.memory_space<vmem>>, vector<30x512xf32>
    %cst_32 = arith.constant dense<0.000000e+00> : vector<8x512xf32>
    %50 = tpu.matmul %41, %49, %cst_32 {dimension_numbers = #tpu.dot_dimension_numbers<[1], [0], [0], [1], [0, 0, 1, 1], [], []>} : vector<8x30xf32>, vector<30x512xf32>, vector<8x512xf32> -> vector<8x512xf32>
    %51 = arith.addf %48, %50 : vector<8x512xf32>
    %52 = vector.extract_strided_slice %51 {offsets = [0, 0], sizes = [8, 30], strides = [1, 1]} : vector<8x512xf32> to vector<8x30xf32>
    %cst_33 = arith.constant 5.000000e-01 : f32
    %53 = vector.broadcast %cst_33 : f32 to vector<8x30xf32>
    %54 = arith.mulf %53, %52 : vector<8x30xf32>
    %55 = math.tanh %54 : vector<8x30xf32>
    %cst_34 = arith.constant 5.000000e-01 : f32
    %56 = vector.broadcast %cst_34 : f32 to vector<8x30xf32>
    %57 = arith.mulf %56, %55 : vector<8x30xf32>
    %cst_35 = arith.constant 5.000000e-01 : f32
    %58 = vector.broadcast %cst_35 : f32 to vector<8x30xf32>
    %59 = arith.addf %57, %58 : vector<8x30xf32>
    %60 = vector.extract_strided_slice %51 {offsets = [0, 128], sizes = [8, 30], strides = [1, 1]} : vector<8x512xf32> to vector<8x30xf32>
    %cst_36 = arith.constant 5.000000e-01 : f32
    %61 = vector.broadcast %cst_36 : f32 to vector<8x30xf32>
    %62 = arith.mulf %61, %60 : vector<8x30xf32>
    %63 = math.tanh %62 : vector<8x30xf32>
    %cst_37 = arith.constant 5.000000e-01 : f32
    %64 = vector.broadcast %cst_37 : f32 to vector<8x30xf32>
    %65 = arith.mulf %64, %63 : vector<8x30xf32>
    %cst_38 = arith.constant 5.000000e-01 : f32
    %66 = vector.broadcast %cst_38 : f32 to vector<8x30xf32>
    %67 = arith.addf %65, %66 : vector<8x30xf32>
    %68 = vector.extract_strided_slice %51 {offsets = [0, 256], sizes = [8, 30], strides = [1, 1]} : vector<8x512xf32> to vector<8x30xf32>
    %69 = math.tanh %68 : vector<8x30xf32>
    %70 = vector.extract_strided_slice %51 {offsets = [0, 384], sizes = [8, 30], strides = [1, 1]} : vector<8x512xf32> to vector<8x30xf32>
    %cst_39 = arith.constant 5.000000e-01 : f32
    %71 = vector.broadcast %cst_39 : f32 to vector<8x30xf32>
    %72 = arith.mulf %71, %70 : vector<8x30xf32>
    %73 = math.tanh %72 : vector<8x30xf32>
    %cst_40 = arith.constant 5.000000e-01 : f32
    %74 = vector.broadcast %cst_40 : f32 to vector<8x30xf32>
    %75 = arith.mulf %74, %73 : vector<8x30xf32>
    %cst_41 = arith.constant 5.000000e-01 : f32
    %76 = vector.broadcast %cst_41 : f32 to vector<8x30xf32>
    %77 = arith.addf %75, %76 : vector<8x30xf32>
    %78 = arith.mulf %67, %39 : vector<8x30xf32>
    %79 = arith.mulf %59, %69 : vector<8x30xf32>
    %80 = arith.addf %78, %79 : vector<8x30xf32>
    %81 = math.tanh %80 : vector<8x30xf32>
    %82 = arith.mulf %77, %81 : vector<8x30xf32>
    %c0_42 = arith.constant 0 : index
    %c0_43 = arith.constant 0 : index
    %83 = vector.load %arg6[%c0_42, %c0_43] : memref<30x512xf32, #tpu.memory_space<vmem>>, vector<30x512xf32>
    %cst_44 = arith.constant dense<0.000000e+00> : vector<8x512xf32>
    %84 = tpu.matmul %82, %83, %cst_44 {dimension_numbers = #tpu.dot_dimension_numbers<[1], [0], [0], [1], [0, 0, 1, 1], [], []>} : vector<8x30xf32>, vector<30x512xf32>, vector<8x512xf32> -> vector<8x512xf32>
    %c0_45 = arith.constant 0 : index
    %c0_46 = arith.constant 0 : index
    %85 = vector.load %arg7[%c0_45, %c0_46] : memref<1x512xf32, #tpu.memory_space<vmem>>, vector<1x512xf32>
    %86 = vector.broadcast %85 : vector<1x512xf32> to vector<8x512xf32>
    %87 = arith.addf %84, %86 : vector<8x512xf32>
    %c8_47 = arith.constant 8 : index
    %c0_48 = arith.constant 0 : index
    %88 = vector.load %arg13[%c8_47, %c0_48] : memref<64x512xf32, #tpu.memory_space<vmem>>, vector<8x512xf32>
    tpu.vector_store %arg13[%c8_47, %c0_48], %87 {strides = array<i32>} : memref<64x512xf32, #tpu.memory_space<vmem>>, vector<8x512xf32>,
    %c16 = arith.constant 16 : index
    %c0_49 = arith.constant 0 : index
    %89 = vector.load %arg12[%c16, %c0_49] : memref<64x512xf32, #tpu.memory_space<vmem>>, vector<8x512xf32>
    %c0_50 = arith.constant 0 : index
    %c0_51 = arith.constant 0 : index
    %90 = vector.load %arg3[%c0_50, %c0_51] : memref<30x512xf32, #tpu.memory_space<vmem>>, vector<30x512xf32>
    %cst_52 = arith.constant dense<0.000000e+00> : vector<8x512xf32>
    %91 = tpu.matmul %82, %90, %cst_52 {dimension_numbers = #tpu.dot_dimension_numbers<[1], [0], [0], [1], [0, 0, 1, 1], [], []>} : vector<8x30xf32>, vector<30x512xf32>, vector<8x512xf32> -> vector<8x512xf32>
    %92 = arith.addf %89, %91 : vector<8x512xf32>
    %93 = vector.extract_strided_slice %92 {offsets = [0, 0], sizes = [8, 30], strides = [1, 1]} : vector<8x512xf32> to vector<8x30xf32>
    %cst_53 = arith.constant 5.000000e-01 : f32
    %94 = vector.broadcast %cst_53 : f32 to vector<8x30xf32>
    %95 = arith.mulf %94, %93 : vector<8x30xf32>
    %96 = math.tanh %95 : vector<8x30xf32>
    %cst_54 = arith.constant 5.000000e-01 : f32
    %97 = vector.broadcast %cst_54 : f32 to vector<8x30xf32>
    %98 = arith.mulf %97, %96 : vector<8x30xf32>
    %cst_55 = arith.constant 5.000000e-01 : f32
    %99 = vector.broadcast %cst_55 : f32 to vector<8x30xf32>
    %100 = arith.addf %98, %99 : vector<8x30xf32>
    %101 = vector.extract_strided_slice %92 {offsets = [0, 128], sizes = [8, 30], strides = [1, 1]} : vector<8x512xf32> to vector<8x30xf32>
    %cst_56 = arith.constant 5.000000e-01 : f32
    %102 = vector.broadcast %cst_56 : f32 to vector<8x30xf32>
    %103 = arith.mulf %102, %101 : vector<8x30xf32>
    %104 = math.tanh %103 : vector<8x30xf32>
    %cst_57 = arith.constant 5.000000e-01 : f32
    %105 = vector.broadcast %cst_57 : f32 to vector<8x30xf32>
    %106 = arith.mulf %105, %104 : vector<8x30xf32>
    %cst_58 = arith.constant 5.000000e-01 : f32
    %107 = vector.broadcast %cst_58 : f32 to vector<8x30xf32>
    %108 = arith.addf %106, %107 : vector<8x30xf32>
    %109 = vector.extract_strided_slice %92 {offsets = [0, 256], sizes = [8, 30], strides = [1, 1]} : vector<8x512xf32> to vector<8x30xf32>
    %110 = math.tanh %109 : vector<8x30xf32>
    %111 = vector.extract_strided_slice %92 {offsets = [0, 384], sizes = [8, 30], strides = [1, 1]} : vector<8x512xf32> to vector<8x30xf32>
    %cst_59 = arith.constant 5.000000e-01 : f32
    %112 = vector.broadcast %cst_59 : f32 to vector<8x30xf32>
    %113 = arith.mulf %112, %111 : vector<8x30xf32>
    %114 = math.tanh %113 : vector<8x30xf32>
    %cst_60 = arith.constant 5.000000e-01 : f32
    %115 = vector.broadcast %cst_60 : f32 to vector<8x30xf32>
    %116 = arith.mulf %115, %114 : vector<8x30xf32>
    %cst_61 = arith.constant 5.000000e-01 : f32
    %117 = vector.broadcast %cst_61 : f32 to vector<8x30xf32>
    %118 = arith.addf %116, %117 : vector<8x30xf32>
    %119 = arith.mulf %108, %80 : vector<8x30xf32>
    %120 = arith.mulf %100, %110 : vector<8x30xf32>
    %121 = arith.addf %119, %120 : vector<8x30xf32>
    %122 = math.tanh %121 : vector<8x30xf32>
    %123 = arith.mulf %118, %122 : vector<8x30xf32>
    %c0_62 = arith.constant 0 : index
    %c0_63 = arith.constant 0 : index
    %124 = vector.load %arg6[%c0_62, %c0_63] : memref<30x512xf32, #tpu.memory_space<vmem>>, vector<30x512xf32>
    %cst_64 = arith.constant dense<0.000000e+00> : vector<8x512xf32>
    %125 = tpu.matmul %123, %124, %cst_64 {dimension_numbers = #tpu.dot_dimension_numbers<[1], [0], [0], [1], [0, 0, 1, 1], [], []>} : vector<8x30xf32>, vector<30x512xf32>, vector<8x512xf32> -> vector<8x512xf32>
    %c0_65 = arith.constant 0 : index
    %c0_66 = arith.constant 0 : index
    %126 = vector.load %arg7[%c0_65, %c0_66] : memref<1x512xf32, #tpu.memory_space<vmem>>, vector<1x512xf32>
    %127 = vector.broadcast %126 : vector<1x512xf32> to vector<8x512xf32>
    %128 = arith.addf %125, %127 : vector<8x512xf32>
    %c16_67 = arith.constant 16 : index
    %c0_68 = arith.constant 0 : index
    %129 = vector.load %arg13[%c16_67, %c0_68] : memref<64x512xf32, #tpu.memory_space<vmem>>, vector<8x512xf32>
    tpu.vector_store %arg13[%c16_67, %c0_68], %128 {strides = array<i32>} : memref<64x512xf32, #tpu.memory_space<vmem>>, vector<8x512xf32>,
    %c24 = arith.constant 24 : index
    %c0_69 = arith.constant 0 : index
    %130 = vector.load %arg12[%c24, %c0_69] : memref<64x512xf32, #tpu.memory_space<vmem>>, vector<8x512xf32>
    %c0_70 = arith.constant 0 : index
    %c0_71 = arith.constant 0 : index
    %131 = vector.load %arg3[%c0_70, %c0_71] : memref<30x512xf32, #tpu.memory_space<vmem>>, vector<30x512xf32>
    %cst_72 = arith.constant dense<0.000000e+00> : vector<8x512xf32>
    %132 = tpu.matmul %123, %131, %cst_72 {dimension_numbers = #tpu.dot_dimension_numbers<[1], [0], [0], [1], [0, 0, 1, 1], [], []>} : vector<8x30xf32>, vector<30x512xf32>, vector<8x512xf32> -> vector<8x512xf32>
    %133 = arith.addf %130, %132 : vector<8x512xf32>
    %134 = vector.extract_strided_slice %133 {offsets = [0, 0], sizes = [8, 30], strides = [1, 1]} : vector<8x512xf32> to vector<8x30xf32>
    %cst_73 = arith.constant 5.000000e-01 : f32
    %135 = vector.broadcast %cst_73 : f32 to vector<8x30xf32>
    %136 = arith.mulf %135, %134 : vector<8x30xf32>
    %137 = math.tanh %136 : vector<8x30xf32>
    %cst_74 = arith.constant 5.000000e-01 : f32
    %138 = vector.broadcast %cst_74 : f32 to vector<8x30xf32>
    %139 = arith.mulf %138, %137 : vector<8x30xf32>
    %cst_75 = arith.constant 5.000000e-01 : f32
    %140 = vector.broadcast %cst_75 : f32 to vector<8x30xf32>
    %141 = arith.addf %139, %140 : vector<8x30xf32>
    %142 = vector.extract_strided_slice %133 {offsets = [0, 128], sizes = [8, 30], strides = [1, 1]} : vector<8x512xf32> to vector<8x30xf32>
    %cst_76 = arith.constant 5.000000e-01 : f32
    %143 = vector.broadcast %cst_76 : f32 to vector<8x30xf32>
    %144 = arith.mulf %143, %142 : vector<8x30xf32>
    %145 = math.tanh %144 : vector<8x30xf32>
    %cst_77 = arith.constant 5.000000e-01 : f32
    %146 = vector.broadcast %cst_77 : f32 to vector<8x30xf32>
    %147 = arith.mulf %146, %145 : vector<8x30xf32>
    %cst_78 = arith.constant 5.000000e-01 : f32
    %148 = vector.broadcast %cst_78 : f32 to vector<8x30xf32>
    %149 = arith.addf %147, %148 : vector<8x30xf32>
    %150 = vector.extract_strided_slice %133 {offsets = [0, 256], sizes = [8, 30], strides = [1, 1]} : vector<8x512xf32> to vector<8x30xf32>
    %151 = math.tanh %150 : vector<8x30xf32>
    %152 = vector.extract_strided_slice %133 {offsets = [0, 384], sizes = [8, 30], strides = [1, 1]} : vector<8x512xf32> to vector<8x30xf32>
    %cst_79 = arith.constant 5.000000e-01 : f32
    %153 = vector.broadcast %cst_79 : f32 to vector<8x30xf32>
    %154 = arith.mulf %153, %152 : vector<8x30xf32>
    %155 = math.tanh %154 : vector<8x30xf32>
    %cst_80 = arith.constant 5.000000e-01 : f32
    %156 = vector.broadcast %cst_80 : f32 to vector<8x30xf32>
    %157 = arith.mulf %156, %155 : vector<8x30xf32>
    %cst_81 = arith.constant 5.000000e-01 : f32
    %158 = vector.broadcast %cst_81 : f32 to vector<8x30xf32>
    %159 = arith.addf %157, %158 : vector<8x30xf32>
    %160 = arith.mulf %149, %121 : vector<8x30xf32>
    %161 = arith.mulf %141, %151 : vector<8x30xf32>
    %162 = arith.addf %160, %161 : vector<8x30xf32>
    %163 = math.tanh %162 : vector<8x30xf32>
    %164 = arith.mulf %159, %163 : vector<8x30xf32>
    %c0_82 = arith.constant 0 : index
    %c0_83 = arith.constant 0 : index
    %165 = vector.load %arg6[%c0_82, %c0_83] : memref<30x512xf32, #tpu.memory_space<vmem>>, vector<30x512xf32>
    %cst_84 = arith.constant dense<0.000000e+00> : vector<8x512xf32>
    %166 = tpu.matmul %164, %165, %cst_84 {dimension_numbers = #tpu.dot_dimension_numbers<[1], [0], [0], [1], [0, 0, 1, 1], [], []>} : vector<8x30xf32>, vector<30x512xf32>, vector<8x512xf32> -> vector<8x512xf32>
    %c0_85 = arith.constant 0 : index
    %c0_86 = arith.constant 0 : index
    %167 = vector.load %arg7[%c0_85, %c0_86] : memref<1x512xf32, #tpu.memory_space<vmem>>, vector<1x512xf32>
    %168 = vector.broadcast %167 : vector<1x512xf32> to vector<8x512xf32>
    %169 = arith.addf %166, %168 : vector<8x512xf32>
    %c24_87 = arith.constant 24 : index
    %c0_88 = arith.constant 0 : index
    %170 = vector.load %arg13[%c24_87, %c0_88] : memref<64x512xf32, #tpu.memory_space<vmem>>, vector<8x512xf32>
    tpu.vector_store %arg13[%c24_87, %c0_88], %169 {strides = array<i32>} : memref<64x512xf32, #tpu.memory_space<vmem>>, vector<8x512xf32>,
    %c32 = arith.constant 32 : index
    %c0_89 = arith.constant 0 : index
    %171 = vector.load %arg12[%c32, %c0_89] : memref<64x512xf32, #tpu.memory_space<vmem>>, vector<8x512xf32>
    %c0_90 = arith.constant 0 : index
    %c0_91 = arith.constant 0 : index
    %172 = vector.load %arg3[%c0_90, %c0_91] : memref<30x512xf32, #tpu.memory_space<vmem>>, vector<30x512xf32>
    %cst_92 = arith.constant dense<0.000000e+00> : vector<8x512xf32>
    %173 = tpu.matmul %164, %172, %cst_92 {dimension_numbers = #tpu.dot_dimension_numbers<[1], [0], [0], [1], [0, 0, 1, 1], [], []>} : vector<8x30xf32>, vector<30x512xf32>, vector<8x512xf32> -> vector<8x512xf32>
    %174 = arith.addf %171, %173 : vector<8x512xf32>
    %175 = vector.extract_strided_slice %174 {offsets = [0, 0], sizes = [8, 30], strides = [1, 1]} : vector<8x512xf32> to vector<8x30xf32>
    %cst_93 = arith.constant 5.000000e-01 : f32
    %176 = vector.broadcast %cst_93 : f32 to vector<8x30xf32>
    %177 = arith.mulf %176, %175 : vector<8x30xf32>
    %178 = math.tanh %177 : vector<8x30xf32>
    %cst_94 = arith.constant 5.000000e-01 : f32
    %179 = vector.broadcast %cst_94 : f32 to vector<8x30xf32>
    %180 = arith.mulf %179, %178 : vector<8x30xf32>
    %cst_95 = arith.constant 5.000000e-01 : f32
    %181 = vector.broadcast %cst_95 : f32 to vector<8x30xf32>
    %182 = arith.addf %180, %181 : vector<8x30xf32>
    %183 = vector.extract_strided_slice %174 {offsets = [0, 128], sizes = [8, 30], strides = [1, 1]} : vector<8x512xf32> to vector<8x30xf32>
    %cst_96 = arith.constant 5.000000e-01 : f32
    %184 = vector.broadcast %cst_96 : f32 to vector<8x30xf32>
    %185 = arith.mulf %184, %183 : vector<8x30xf32>
    %186 = math.tanh %185 : vector<8x30xf32>
    %cst_97 = arith.constant 5.000000e-01 : f32
    %187 = vector.broadcast %cst_97 : f32 to vector<8x30xf32>
    %188 = arith.mulf %187, %186 : vector<8x30xf32>
    %cst_98 = arith.constant 5.000000e-01 : f32
    %189 = vector.broadcast %cst_98 : f32 to vector<8x30xf32>
    %190 = arith.addf %188, %189 : vector<8x30xf32>
    %191 = vector.extract_strided_slice %174 {offsets = [0, 256], sizes = [8, 30], strides = [1, 1]} : vector<8x512xf32> to vector<8x30xf32>
    %192 = math.tanh %191 : vector<8x30xf32>
    %193 = vector.extract_strided_slice %174 {offsets = [0, 384], sizes = [8, 30], strides = [1, 1]} : vector<8x512xf32> to vector<8x30xf32>
    %cst_99 = arith.constant 5.000000e-01 : f32
    %194 = vector.broadcast %cst_99 : f32 to vector<8x30xf32>
    %195 = arith.mulf %194, %193 : vector<8x30xf32>
    %196 = math.tanh %195 : vector<8x30xf32>
    %cst_100 = arith.constant 5.000000e-01 : f32
    %197 = vector.broadcast %cst_100 : f32 to vector<8x30xf32>
    %198 = arith.mulf %197, %196 : vector<8x30xf32>
    %cst_101 = arith.constant 5.000000e-01 : f32
    %199 = vector.broadcast %cst_101 : f32 to vector<8x30xf32>
    %200 = arith.addf %198, %199 : vector<8x30xf32>
    %201 = arith.mulf %190, %162 : vector<8x30xf32>
    %202 = arith.mulf %182, %192 : vector<8x30xf32>
    %203 = arith.addf %201, %202 : vector<8x30xf32>
    %204 = math.tanh %203 : vector<8x30xf32>
    %205 = arith.mulf %200, %204 : vector<8x30xf32>
    %c0_102 = arith.constant 0 : index
    %c0_103 = arith.constant 0 : index
    %206 = vector.load %arg6[%c0_102, %c0_103] : memref<30x512xf32, #tpu.memory_space<vmem>>, vector<30x512xf32>
    %cst_104 = arith.constant dense<0.000000e+00> : vector<8x512xf32>
    %207 = tpu.matmul %205, %206, %cst_104 {dimension_numbers = #tpu.dot_dimension_numbers<[1], [0], [0], [1], [0, 0, 1, 1], [], []>} : vector<8x30xf32>, vector<30x512xf32>, vector<8x512xf32> -> vector<8x512xf32>
    %c0_105 = arith.constant 0 : index
    %c0_106 = arith.constant 0 : index
    %208 = vector.load %arg7[%c0_105, %c0_106] : memref<1x512xf32, #tpu.memory_space<vmem>>, vector<1x512xf32>
    %209 = vector.broadcast %208 : vector<1x512xf32> to vector<8x512xf32>
    %210 = arith.addf %207, %209 : vector<8x512xf32>
    %c32_107 = arith.constant 32 : index
    %c0_108 = arith.constant 0 : index
    %211 = vector.load %arg13[%c32_107, %c0_108] : memref<64x512xf32, #tpu.memory_space<vmem>>, vector<8x512xf32>
    tpu.vector_store %arg13[%c32_107, %c0_108], %210 {strides = array<i32>} : memref<64x512xf32, #tpu.memory_space<vmem>>, vector<8x512xf32>,
    %c40 = arith.constant 40 : index
    %c0_109 = arith.constant 0 : index
    %212 = vector.load %arg12[%c40, %c0_109] : memref<64x512xf32, #tpu.memory_space<vmem>>, vector<8x512xf32>
    %c0_110 = arith.constant 0 : index
    %c0_111 = arith.constant 0 : index
    %213 = vector.load %arg3[%c0_110, %c0_111] : memref<30x512xf32, #tpu.memory_space<vmem>>, vector<30x512xf32>
    %cst_112 = arith.constant dense<0.000000e+00> : vector<8x512xf32>
    %214 = tpu.matmul %205, %213, %cst_112 {dimension_numbers = #tpu.dot_dimension_numbers<[1], [0], [0], [1], [0, 0, 1, 1], [], []>} : vector<8x30xf32>, vector<30x512xf32>, vector<8x512xf32> -> vector<8x512xf32>
    %215 = arith.addf %212, %214 : vector<8x512xf32>
    %216 = vector.extract_strided_slice %215 {offsets = [0, 0], sizes = [8, 30], strides = [1, 1]} : vector<8x512xf32> to vector<8x30xf32>
    %cst_113 = arith.constant 5.000000e-01 : f32
    %217 = vector.broadcast %cst_113 : f32 to vector<8x30xf32>
    %218 = arith.mulf %217, %216 : vector<8x30xf32>
    %219 = math.tanh %218 : vector<8x30xf32>
    %cst_114 = arith.constant 5.000000e-01 : f32
    %220 = vector.broadcast %cst_114 : f32 to vector<8x30xf32>
    %221 = arith.mulf %220, %219 : vector<8x30xf32>
    %cst_115 = arith.constant 5.000000e-01 : f32
    %222 = vector.broadcast %cst_115 : f32 to vector<8x30xf32>
    %223 = arith.addf %221, %222 : vector<8x30xf32>
    %224 = vector.extract_strided_slice %215 {offsets = [0, 128], sizes = [8, 30], strides = [1, 1]} : vector<8x512xf32> to vector<8x30xf32>
    %cst_116 = arith.constant 5.000000e-01 : f32
    %225 = vector.broadcast %cst_116 : f32 to vector<8x30xf32>
    %226 = arith.mulf %225, %224 : vector<8x30xf32>
    %227 = math.tanh %226 : vector<8x30xf32>
    %cst_117 = arith.constant 5.000000e-01 : f32
    %228 = vector.broadcast %cst_117 : f32 to vector<8x30xf32>
    %229 = arith.mulf %228, %227 : vector<8x30xf32>
    %cst_118 = arith.constant 5.000000e-01 : f32
    %230 = vector.broadcast %cst_118 : f32 to vector<8x30xf32>
    %231 = arith.addf %229, %230 : vector<8x30xf32>
    %232 = vector.extract_strided_slice %215 {offsets = [0, 256], sizes = [8, 30], strides = [1, 1]} : vector<8x512xf32> to vector<8x30xf32>
    %233 = math.tanh %232 : vector<8x30xf32>
    %234 = vector.extract_strided_slice %215 {offsets = [0, 384], sizes = [8, 30], strides = [1, 1]} : vector<8x512xf32> to vector<8x30xf32>
    %cst_119 = arith.constant 5.000000e-01 : f32
    %235 = vector.broadcast %cst_119 : f32 to vector<8x30xf32>
    %236 = arith.mulf %235, %234 : vector<8x30xf32>
    %237 = math.tanh %236 : vector<8x30xf32>
    %cst_120 = arith.constant 5.000000e-01 : f32
    %238 = vector.broadcast %cst_120 : f32 to vector<8x30xf32>
    %239 = arith.mulf %238, %237 : vector<8x30xf32>
    %cst_121 = arith.constant 5.000000e-01 : f32
    %240 = vector.broadcast %cst_121 : f32 to vector<8x30xf32>
    %241 = arith.addf %239, %240 : vector<8x30xf32>
    %242 = arith.mulf %231, %203 : vector<8x30xf32>
    %243 = arith.mulf %223, %233 : vector<8x30xf32>
    %244 = arith.addf %242, %243 : vector<8x30xf32>
    %245 = math.tanh %244 : vector<8x30xf32>
    %246 = arith.mulf %241, %245 : vector<8x30xf32>
    %c0_122 = arith.constant 0 : index
    %c0_123 = arith.constant 0 : index
    %247 = vector.load %arg6[%c0_122, %c0_123] : memref<30x512xf32, #tpu.memory_space<vmem>>, vector<30x512xf32>
    %cst_124 = arith.constant dense<0.000000e+00> : vector<8x512xf32>
    %248 = tpu.matmul %246, %247, %cst_124 {dimension_numbers = #tpu.dot_dimension_numbers<[1], [0], [0], [1], [0, 0, 1, 1], [], []>} : vector<8x30xf32>, vector<30x512xf32>, vector<8x512xf32> -> vector<8x512xf32>
    %c0_125 = arith.constant 0 : index
    %c0_126 = arith.constant 0 : index
    %249 = vector.load %arg7[%c0_125, %c0_126] : memref<1x512xf32, #tpu.memory_space<vmem>>, vector<1x512xf32>
    %250 = vector.broadcast %249 : vector<1x512xf32> to vector<8x512xf32>
    %251 = arith.addf %248, %250 : vector<8x512xf32>
    %c40_127 = arith.constant 40 : index
    %c0_128 = arith.constant 0 : index
    %252 = vector.load %arg13[%c40_127, %c0_128] : memref<64x512xf32, #tpu.memory_space<vmem>>, vector<8x512xf32>
    tpu.vector_store %arg13[%c40_127, %c0_128], %251 {strides = array<i32>} : memref<64x512xf32, #tpu.memory_space<vmem>>, vector<8x512xf32>,
    %c48 = arith.constant 48 : index
    %c0_129 = arith.constant 0 : index
    %253 = vector.load %arg12[%c48, %c0_129] : memref<64x512xf32, #tpu.memory_space<vmem>>, vector<8x512xf32>
    %c0_130 = arith.constant 0 : index
    %c0_131 = arith.constant 0 : index
    %254 = vector.load %arg3[%c0_130, %c0_131] : memref<30x512xf32, #tpu.memory_space<vmem>>, vector<30x512xf32>
    %cst_132 = arith.constant dense<0.000000e+00> : vector<8x512xf32>
    %255 = tpu.matmul %246, %254, %cst_132 {dimension_numbers = #tpu.dot_dimension_numbers<[1], [0], [0], [1], [0, 0, 1, 1], [], []>} : vector<8x30xf32>, vector<30x512xf32>, vector<8x512xf32> -> vector<8x512xf32>
    %256 = arith.addf %253, %255 : vector<8x512xf32>
    %257 = vector.extract_strided_slice %256 {offsets = [0, 0], sizes = [8, 30], strides = [1, 1]} : vector<8x512xf32> to vector<8x30xf32>
    %cst_133 = arith.constant 5.000000e-01 : f32
    %258 = vector.broadcast %cst_133 : f32 to vector<8x30xf32>
    %259 = arith.mulf %258, %257 : vector<8x30xf32>
    %260 = math.tanh %259 : vector<8x30xf32>
    %cst_134 = arith.constant 5.000000e-01 : f32
    %261 = vector.broadcast %cst_134 : f32 to vector<8x30xf32>
    %262 = arith.mulf %261, %260 : vector<8x30xf32>
    %cst_135 = arith.constant 5.000000e-01 : f32
    %263 = vector.broadcast %cst_135 : f32 to vector<8x30xf32>
    %264 = arith.addf %262, %263 : vector<8x30xf32>
    %265 = vector.extract_strided_slice %256 {offsets = [0, 128], sizes = [8, 30], strides = [1, 1]} : vector<8x512xf32> to vector<8x30xf32>
    %cst_136 = arith.constant 5.000000e-01 : f32
    %266 = vector.broadcast %cst_136 : f32 to vector<8x30xf32>
    %267 = arith.mulf %266, %265 : vector<8x30xf32>
    %268 = math.tanh %267 : vector<8x30xf32>
    %cst_137 = arith.constant 5.000000e-01 : f32
    %269 = vector.broadcast %cst_137 : f32 to vector<8x30xf32>
    %270 = arith.mulf %269, %268 : vector<8x30xf32>
    %cst_138 = arith.constant 5.000000e-01 : f32
    %271 = vector.broadcast %cst_138 : f32 to vector<8x30xf32>
    %272 = arith.addf %270, %271 : vector<8x30xf32>
    %273 = vector.extract_strided_slice %256 {offsets = [0, 256], sizes = [8, 30], strides = [1, 1]} : vector<8x512xf32> to vector<8x30xf32>
    %274 = math.tanh %273 : vector<8x30xf32>
    %275 = vector.extract_strided_slice %256 {offsets = [0, 384], sizes = [8, 30], strides = [1, 1]} : vector<8x512xf32> to vector<8x30xf32>
    %cst_139 = arith.constant 5.000000e-01 : f32
    %276 = vector.broadcast %cst_139 : f32 to vector<8x30xf32>
    %277 = arith.mulf %276, %275 : vector<8x30xf32>
    %278 = math.tanh %277 : vector<8x30xf32>
    %cst_140 = arith.constant 5.000000e-01 : f32
    %279 = vector.broadcast %cst_140 : f32 to vector<8x30xf32>
    %280 = arith.mulf %279, %278 : vector<8x30xf32>
    %cst_141 = arith.constant 5.000000e-01 : f32
    %281 = vector.broadcast %cst_141 : f32 to vector<8x30xf32>
    %282 = arith.addf %280, %281 : vector<8x30xf32>
    %283 = arith.mulf %272, %244 : vector<8x30xf32>
    %284 = arith.mulf %264, %274 : vector<8x30xf32>
    %285 = arith.addf %283, %284 : vector<8x30xf32>
    %286 = math.tanh %285 : vector<8x30xf32>
    %287 = arith.mulf %282, %286 : vector<8x30xf32>
    %c0_142 = arith.constant 0 : index
    %c0_143 = arith.constant 0 : index
    %288 = vector.load %arg6[%c0_142, %c0_143] : memref<30x512xf32, #tpu.memory_space<vmem>>, vector<30x512xf32>
    %cst_144 = arith.constant dense<0.000000e+00> : vector<8x512xf32>
    %289 = tpu.matmul %287, %288, %cst_144 {dimension_numbers = #tpu.dot_dimension_numbers<[1], [0], [0], [1], [0, 0, 1, 1], [], []>} : vector<8x30xf32>, vector<30x512xf32>, vector<8x512xf32> -> vector<8x512xf32>
    %c0_145 = arith.constant 0 : index
    %c0_146 = arith.constant 0 : index
    %290 = vector.load %arg7[%c0_145, %c0_146] : memref<1x512xf32, #tpu.memory_space<vmem>>, vector<1x512xf32>
    %291 = vector.broadcast %290 : vector<1x512xf32> to vector<8x512xf32>
    %292 = arith.addf %289, %291 : vector<8x512xf32>
    %c48_147 = arith.constant 48 : index
    %c0_148 = arith.constant 0 : index
    %293 = vector.load %arg13[%c48_147, %c0_148] : memref<64x512xf32, #tpu.memory_space<vmem>>, vector<8x512xf32>
    tpu.vector_store %arg13[%c48_147, %c0_148], %292 {strides = array<i32>} : memref<64x512xf32, #tpu.memory_space<vmem>>, vector<8x512xf32>,
    %c56 = arith.constant 56 : index
    %c0_149 = arith.constant 0 : index
    %294 = vector.load %arg12[%c56, %c0_149] : memref<64x512xf32, #tpu.memory_space<vmem>>, vector<8x512xf32>
    %c0_150 = arith.constant 0 : index
    %c0_151 = arith.constant 0 : index
    %295 = vector.load %arg3[%c0_150, %c0_151] : memref<30x512xf32, #tpu.memory_space<vmem>>, vector<30x512xf32>
    %cst_152 = arith.constant dense<0.000000e+00> : vector<8x512xf32>
    %296 = tpu.matmul %287, %295, %cst_152 {dimension_numbers = #tpu.dot_dimension_numbers<[1], [0], [0], [1], [0, 0, 1, 1], [], []>} : vector<8x30xf32>, vector<30x512xf32>, vector<8x512xf32> -> vector<8x512xf32>
    %297 = arith.addf %294, %296 : vector<8x512xf32>
    %298 = vector.extract_strided_slice %297 {offsets = [0, 0], sizes = [8, 30], strides = [1, 1]} : vector<8x512xf32> to vector<8x30xf32>
    %cst_153 = arith.constant 5.000000e-01 : f32
    %299 = vector.broadcast %cst_153 : f32 to vector<8x30xf32>
    %300 = arith.mulf %299, %298 : vector<8x30xf32>
    %301 = math.tanh %300 : vector<8x30xf32>
    %cst_154 = arith.constant 5.000000e-01 : f32
    %302 = vector.broadcast %cst_154 : f32 to vector<8x30xf32>
    %303 = arith.mulf %302, %301 : vector<8x30xf32>
    %cst_155 = arith.constant 5.000000e-01 : f32
    %304 = vector.broadcast %cst_155 : f32 to vector<8x30xf32>
    %305 = arith.addf %303, %304 : vector<8x30xf32>
    %306 = vector.extract_strided_slice %297 {offsets = [0, 128], sizes = [8, 30], strides = [1, 1]} : vector<8x512xf32> to vector<8x30xf32>
    %cst_156 = arith.constant 5.000000e-01 : f32
    %307 = vector.broadcast %cst_156 : f32 to vector<8x30xf32>
    %308 = arith.mulf %307, %306 : vector<8x30xf32>
    %309 = math.tanh %308 : vector<8x30xf32>
    %cst_157 = arith.constant 5.000000e-01 : f32
    %310 = vector.broadcast %cst_157 : f32 to vector<8x30xf32>
    %311 = arith.mulf %310, %309 : vector<8x30xf32>
    %cst_158 = arith.constant 5.000000e-01 : f32
    %312 = vector.broadcast %cst_158 : f32 to vector<8x30xf32>
    %313 = arith.addf %311, %312 : vector<8x30xf32>
    %314 = vector.extract_strided_slice %297 {offsets = [0, 256], sizes = [8, 30], strides = [1, 1]} : vector<8x512xf32> to vector<8x30xf32>
    %315 = math.tanh %314 : vector<8x30xf32>
    %316 = vector.extract_strided_slice %297 {offsets = [0, 384], sizes = [8, 30], strides = [1, 1]} : vector<8x512xf32> to vector<8x30xf32>
    %cst_159 = arith.constant 5.000000e-01 : f32
    %317 = vector.broadcast %cst_159 : f32 to vector<8x30xf32>
    %318 = arith.mulf %317, %316 : vector<8x30xf32>
    %319 = math.tanh %318 : vector<8x30xf32>
    %cst_160 = arith.constant 5.000000e-01 : f32
    %320 = vector.broadcast %cst_160 : f32 to vector<8x30xf32>
    %321 = arith.mulf %320, %319 : vector<8x30xf32>
    %cst_161 = arith.constant 5.000000e-01 : f32
    %322 = vector.broadcast %cst_161 : f32 to vector<8x30xf32>
    %323 = arith.addf %321, %322 : vector<8x30xf32>
    %324 = arith.mulf %313, %285 : vector<8x30xf32>
    %325 = arith.mulf %305, %315 : vector<8x30xf32>
    %326 = arith.addf %324, %325 : vector<8x30xf32>
    %327 = math.tanh %326 : vector<8x30xf32>
    %328 = arith.mulf %323, %327 : vector<8x30xf32>
    %c0_162 = arith.constant 0 : index
    %c0_163 = arith.constant 0 : index
    %329 = vector.load %arg6[%c0_162, %c0_163] : memref<30x512xf32, #tpu.memory_space<vmem>>, vector<30x512xf32>
    %cst_164 = arith.constant dense<0.000000e+00> : vector<8x512xf32>
    %330 = tpu.matmul %328, %329, %cst_164 {dimension_numbers = #tpu.dot_dimension_numbers<[1], [0], [0], [1], [0, 0, 1, 1], [], []>} : vector<8x30xf32>, vector<30x512xf32>, vector<8x512xf32> -> vector<8x512xf32>
    %c0_165 = arith.constant 0 : index
    %c0_166 = arith.constant 0 : index
    %331 = vector.load %arg7[%c0_165, %c0_166] : memref<1x512xf32, #tpu.memory_space<vmem>>, vector<1x512xf32>
    %332 = vector.broadcast %331 : vector<1x512xf32> to vector<8x512xf32>
    %333 = arith.addf %330, %332 : vector<8x512xf32>
    %c56_167 = arith.constant 56 : index
    %c0_168 = arith.constant 0 : index
    %334 = vector.load %arg13[%c56_167, %c0_168] : memref<64x512xf32, #tpu.memory_space<vmem>>, vector<8x512xf32>
    tpu.vector_store %arg13[%c56_167, %c0_168], %333 {strides = array<i32>} : memref<64x512xf32, #tpu.memory_space<vmem>>, vector<8x512xf32>,
    %335 = tpu.concatenate %328, %326 in 0 : vector<8x30xf32>, vector<8x30xf32> -> vector<16x30xf32>
    %c0_169 = arith.constant 0 : index
    %c0_170 = arith.constant 0 : index
    %336 = vector.load %arg4[%c0_169, %c0_170] : memref<30x60xf32, #tpu.memory_space<vmem>>, vector<30x60xf32>
    %cst_171 = arith.constant dense<0.000000e+00> : vector<16x60xf32>
    %337 = tpu.matmul %335, %336, %cst_171 {dimension_numbers = #tpu.dot_dimension_numbers<[1], [0], [0], [1], [0, 0, 1, 1], [], []>} : vector<16x30xf32>, vector<30x60xf32>, vector<16x60xf32> -> vector<16x60xf32>
    %c0_172 = arith.constant 0 : index
    %c0_173 = arith.constant 0 : index
    %338 = vector.load %arg5[%c0_172, %c0_173] : memref<1x60xf32, #tpu.memory_space<vmem>>, vector<1x60xf32>
    %339 = vector.broadcast %338 : vector<1x60xf32> to vector<16x60xf32>
    %340 = arith.addf %337, %339 : vector<16x60xf32>
    %341 = vector.extract_strided_slice %340 {offsets = [0, 0], sizes = [8, 60], strides = [1, 1]} : vector<16x60xf32> to vector<8x60xf32>
    %342 = vector.extract_strided_slice %340 {offsets = [8, 0], sizes = [8, 60], strides = [1, 1]} : vector<16x60xf32> to vector<8x60xf32>
    %c0_174 = arith.constant 0 : index
    %c0_175 = arith.constant 0 : index
    %343 = vector.load %arg13[%c0_174, %c0_175] : memref<64x512xf32, #tpu.memory_space<vmem>>, vector<8x512xf32>
    %c0_176 = arith.constant 0 : index
    %c0_177 = arith.constant 0 : index
    %344 = vector.load %arg8[%c0_176, %c0_177] : memref<60x512xf32, #tpu.memory_space<vmem>>, vector<60x512xf32>
    %cst_178 = arith.constant dense<0.000000e+00> : vector<8x512xf32>
    %345 = tpu.matmul %341, %344, %cst_178 {dimension_numbers = #tpu.dot_dimension_numbers<[1], [0], [0], [1], [0, 0, 1, 1], [], []>} : vector<8x60xf32>, vector<60x512xf32>, vector<8x512xf32> -> vector<8x512xf32>
    %346 = arith.addf %343, %345 : vector<8x512xf32>
    %347 = vector.extract_strided_slice %346 {offsets = [0, 0], sizes = [8, 60], strides = [1, 1]} : vector<8x512xf32> to vector<8x60xf32>
    %cst_179 = arith.constant 5.000000e-01 : f32
    %348 = vector.broadcast %cst_179 : f32 to vector<8x60xf32>
    %349 = arith.mulf %348, %347 : vector<8x60xf32>
    %350 = math.tanh %349 : vector<8x60xf32>
    %cst_180 = arith.constant 5.000000e-01 : f32
    %351 = vector.broadcast %cst_180 : f32 to vector<8x60xf32>
    %352 = arith.mulf %351, %350 : vector<8x60xf32>
    %cst_181 = arith.constant 5.000000e-01 : f32
    %353 = vector.broadcast %cst_181 : f32 to vector<8x60xf32>
    %354 = arith.addf %352, %353 : vector<8x60xf32>
    %355 = vector.extract_strided_slice %346 {offsets = [0, 128], sizes = [8, 60], strides = [1, 1]} : vector<8x512xf32> to vector<8x60xf32>
    %cst_182 = arith.constant 5.000000e-01 : f32
    %356 = vector.broadcast %cst_182 : f32 to vector<8x60xf32>
    %357 = arith.mulf %356, %355 : vector<8x60xf32>
    %358 = math.tanh %357 : vector<8x60xf32>
    %cst_183 = arith.constant 5.000000e-01 : f32
    %359 = vector.broadcast %cst_183 : f32 to vector<8x60xf32>
    %360 = arith.mulf %359, %358 : vector<8x60xf32>
    %cst_184 = arith.constant 5.000000e-01 : f32
    %361 = vector.broadcast %cst_184 : f32 to vector<8x60xf32>
    %362 = arith.addf %360, %361 : vector<8x60xf32>
    %363 = vector.extract_strided_slice %346 {offsets = [0, 256], sizes = [8, 60], strides = [1, 1]} : vector<8x512xf32> to vector<8x60xf32>
    %364 = math.tanh %363 : vector<8x60xf32>
    %365 = vector.extract_strided_slice %346 {offsets = [0, 384], sizes = [8, 60], strides = [1, 1]} : vector<8x512xf32> to vector<8x60xf32>
    %cst_185 = arith.constant 5.000000e-01 : f32
    %366 = vector.broadcast %cst_185 : f32 to vector<8x60xf32>
    %367 = arith.mulf %366, %365 : vector<8x60xf32>
    %368 = math.tanh %367 : vector<8x60xf32>
    %cst_186 = arith.constant 5.000000e-01 : f32
    %369 = vector.broadcast %cst_186 : f32 to vector<8x60xf32>
    %370 = arith.mulf %369, %368 : vector<8x60xf32>
    %cst_187 = arith.constant 5.000000e-01 : f32
    %371 = vector.broadcast %cst_187 : f32 to vector<8x60xf32>
    %372 = arith.addf %370, %371 : vector<8x60xf32>
    %373 = arith.mulf %362, %342 : vector<8x60xf32>
    %374 = arith.mulf %354, %364 : vector<8x60xf32>
    %375 = arith.addf %373, %374 : vector<8x60xf32>
    %376 = math.tanh %375 : vector<8x60xf32>
    %377 = arith.mulf %372, %376 : vector<8x60xf32>
    %c0_188 = arith.constant 0 : index
    %c0_189 = arith.constant 0 : index
    %378 = vector.load %arg9[%c0_188, %c0_189] : memref<60x128xf32, #tpu.memory_space<vmem>>, vector<60x128xf32>
    %cst_190 = arith.constant dense<0.000000e+00> : vector<8x128xf32>
    %379 = tpu.matmul %377, %378, %cst_190 {dimension_numbers = #tpu.dot_dimension_numbers<[1], [0], [0], [1], [0, 0, 1, 1], [], []>} : vector<8x60xf32>, vector<60x128xf32>, vector<8x128xf32> -> vector<8x128xf32>
    %c0_191 = arith.constant 0 : index
    %c0_192 = arith.constant 0 : index
    %380 = vector.load %arg10[%c0_191, %c0_192] : memref<1x128xf32, #tpu.memory_space<vmem>>, vector<1x128xf32>
    %381 = vector.broadcast %380 : vector<1x128xf32> to vector<8x128xf32>
    %382 = arith.addf %379, %381 : vector<8x128xf32>
    %c0_193 = arith.constant 0 : index
    %c0_194 = arith.constant 0 : index
    %c0_195 = arith.constant 0 : index
    %383 = vector.load %arg11[%c0_193, %c0_194, %c0_195] : memref<1x64x128xf32, #tpu.memory_space<vmem>>, vector<1x8x128xf32>
    %384 = vector.shape_cast %383 : vector<1x8x128xf32> to vector<8x128xf32>
    %385 = vector.shape_cast %382 : vector<8x128xf32> to vector<1x8x128xf32>
    tpu.vector_store %arg11[%c0_193, %c0_194, %c0_195], %385 {strides = array<i32>} : memref<1x64x128xf32, #tpu.memory_space<vmem>>, vector<1x8x128xf32>,
    %c8_196 = arith.constant 8 : index
    %c0_197 = arith.constant 0 : index
    %386 = vector.load %arg13[%c8_196, %c0_197] : memref<64x512xf32, #tpu.memory_space<vmem>>, vector<8x512xf32>
    %c0_198 = arith.constant 0 : index
    %c0_199 = arith.constant 0 : index
    %387 = vector.load %arg8[%c0_198, %c0_199] : memref<60x512xf32, #tpu.memory_space<vmem>>, vector<60x512xf32>
    %cst_200 = arith.constant dense<0.000000e+00> : vector<8x512xf32>
    %388 = tpu.matmul %377, %387, %cst_200 {dimension_numbers = #tpu.dot_dimension_numbers<[1], [0], [0], [1], [0, 0, 1, 1], [], []>} : vector<8x60xf32>, vector<60x512xf32>, vector<8x512xf32> -> vector<8x512xf32>
    %389 = arith.addf %386, %388 : vector<8x512xf32>
    %390 = vector.extract_strided_slice %389 {offsets = [0, 0], sizes = [8, 60], strides = [1, 1]} : vector<8x512xf32> to vector<8x60xf32>
    %cst_201 = arith.constant 5.000000e-01 : f32
    %391 = vector.broadcast %cst_201 : f32 to vector<8x60xf32>
    %392 = arith.mulf %391, %390 : vector<8x60xf32>
    %393 = math.tanh %392 : vector<8x60xf32>
    %cst_202 = arith.constant 5.000000e-01 : f32
    %394 = vector.broadcast %cst_202 : f32 to vector<8x60xf32>
    %395 = arith.mulf %394, %393 : vector<8x60xf32>
    %cst_203 = arith.constant 5.000000e-01 : f32
    %396 = vector.broadcast %cst_203 : f32 to vector<8x60xf32>
    %397 = arith.addf %395, %396 : vector<8x60xf32>
    %398 = vector.extract_strided_slice %389 {offsets = [0, 128], sizes = [8, 60], strides = [1, 1]} : vector<8x512xf32> to vector<8x60xf32>
    %cst_204 = arith.constant 5.000000e-01 : f32
    %399 = vector.broadcast %cst_204 : f32 to vector<8x60xf32>
    %400 = arith.mulf %399, %398 : vector<8x60xf32>
    %401 = math.tanh %400 : vector<8x60xf32>
    %cst_205 = arith.constant 5.000000e-01 : f32
    %402 = vector.broadcast %cst_205 : f32 to vector<8x60xf32>
    %403 = arith.mulf %402, %401 : vector<8x60xf32>
    %cst_206 = arith.constant 5.000000e-01 : f32
    %404 = vector.broadcast %cst_206 : f32 to vector<8x60xf32>
    %405 = arith.addf %403, %404 : vector<8x60xf32>
    %406 = vector.extract_strided_slice %389 {offsets = [0, 256], sizes = [8, 60], strides = [1, 1]} : vector<8x512xf32> to vector<8x60xf32>
    %407 = math.tanh %406 : vector<8x60xf32>
    %408 = vector.extract_strided_slice %389 {offsets = [0, 384], sizes = [8, 60], strides = [1, 1]} : vector<8x512xf32> to vector<8x60xf32>
    %cst_207 = arith.constant 5.000000e-01 : f32
    %409 = vector.broadcast %cst_207 : f32 to vector<8x60xf32>
    %410 = arith.mulf %409, %408 : vector<8x60xf32>
    %411 = math.tanh %410 : vector<8x60xf32>
    %cst_208 = arith.constant 5.000000e-01 : f32
    %412 = vector.broadcast %cst_208 : f32 to vector<8x60xf32>
    %413 = arith.mulf %412, %411 : vector<8x60xf32>
    %cst_209 = arith.constant 5.000000e-01 : f32
    %414 = vector.broadcast %cst_209 : f32 to vector<8x60xf32>
    %415 = arith.addf %413, %414 : vector<8x60xf32>
    %416 = arith.mulf %405, %375 : vector<8x60xf32>
    %417 = arith.mulf %397, %407 : vector<8x60xf32>
    %418 = arith.addf %416, %417 : vector<8x60xf32>
    %419 = math.tanh %418 : vector<8x60xf32>
    %420 = arith.mulf %415, %419 : vector<8x60xf32>
    %c0_210 = arith.constant 0 : index
    %c0_211 = arith.constant 0 : index
    %421 = vector.load %arg9[%c0_210, %c0_211] : memref<60x128xf32, #tpu.memory_space<vmem>>, vector<60x128xf32>
    %cst_212 = arith.constant dense<0.000000e+00> : vector<8x128xf32>
    %422 = tpu.matmul %420, %421, %cst_212 {dimension_numbers = #tpu.dot_dimension_numbers<[1], [0], [0], [1], [0, 0, 1, 1], [], []>} : vector<8x60xf32>, vector<60x128xf32>, vector<8x128xf32> -> vector<8x128xf32>
    %c0_213 = arith.constant 0 : index
    %c0_214 = arith.constant 0 : index
    %423 = vector.load %arg10[%c0_213, %c0_214] : memref<1x128xf32, #tpu.memory_space<vmem>>, vector<1x128xf32>
    %424 = vector.broadcast %423 : vector<1x128xf32> to vector<8x128xf32>
    %425 = arith.addf %422, %424 : vector<8x128xf32>
    %c0_215 = arith.constant 0 : index
    %c8_216 = arith.constant 8 : index
    %c0_217 = arith.constant 0 : index
    %426 = vector.load %arg11[%c0_215, %c8_216, %c0_217] : memref<1x64x128xf32, #tpu.memory_space<vmem>>, vector<1x8x128xf32>
    %427 = vector.shape_cast %426 : vector<1x8x128xf32> to vector<8x128xf32>
    %428 = vector.shape_cast %425 : vector<8x128xf32> to vector<1x8x128xf32>
    tpu.vector_store %arg11[%c0_215, %c8_216, %c0_217], %428 {strides = array<i32>} : memref<1x64x128xf32, #tpu.memory_space<vmem>>, vector<1x8x128xf32>,
    %c16_218 = arith.constant 16 : index
    %c0_219 = arith.constant 0 : index
    %429 = vector.load %arg13[%c16_218, %c0_219] : memref<64x512xf32, #tpu.memory_space<vmem>>, vector<8x512xf32>
    %c0_220 = arith.constant 0 : index
    %c0_221 = arith.constant 0 : index
    %430 = vector.load %arg8[%c0_220, %c0_221] : memref<60x512xf32, #tpu.memory_space<vmem>>, vector<60x512xf32>
    %cst_222 = arith.constant dense<0.000000e+00> : vector<8x512xf32>
    %431 = tpu.matmul %420, %430, %cst_222 {dimension_numbers = #tpu.dot_dimension_numbers<[1], [0], [0], [1], [0, 0, 1, 1], [], []>} : vector<8x60xf32>, vector<60x512xf32>, vector<8x512xf32> -> vector<8x512xf32>
    %432 = arith.addf %429, %431 : vector<8x512xf32>
    %433 = vector.extract_strided_slice %432 {offsets = [0, 0], sizes = [8, 60], strides = [1, 1]} : vector<8x512xf32> to vector<8x60xf32>
    %cst_223 = arith.constant 5.000000e-01 : f32
    %434 = vector.broadcast %cst_223 : f32 to vector<8x60xf32>
    %435 = arith.mulf %434, %433 : vector<8x60xf32>
    %436 = math.tanh %435 : vector<8x60xf32>
    %cst_224 = arith.constant 5.000000e-01 : f32
    %437 = vector.broadcast %cst_224 : f32 to vector<8x60xf32>
    %438 = arith.mulf %437, %436 : vector<8x60xf32>
    %cst_225 = arith.constant 5.000000e-01 : f32
    %439 = vector.broadcast %cst_225 : f32 to vector<8x60xf32>
    %440 = arith.addf %438, %439 : vector<8x60xf32>
    %441 = vector.extract_strided_slice %432 {offsets = [0, 128], sizes = [8, 60], strides = [1, 1]} : vector<8x512xf32> to vector<8x60xf32>
    %cst_226 = arith.constant 5.000000e-01 : f32
    %442 = vector.broadcast %cst_226 : f32 to vector<8x60xf32>
    %443 = arith.mulf %442, %441 : vector<8x60xf32>
    %444 = math.tanh %443 : vector<8x60xf32>
    %cst_227 = arith.constant 5.000000e-01 : f32
    %445 = vector.broadcast %cst_227 : f32 to vector<8x60xf32>
    %446 = arith.mulf %445, %444 : vector<8x60xf32>
    %cst_228 = arith.constant 5.000000e-01 : f32
    %447 = vector.broadcast %cst_228 : f32 to vector<8x60xf32>
    %448 = arith.addf %446, %447 : vector<8x60xf32>
    %449 = vector.extract_strided_slice %432 {offsets = [0, 256], sizes = [8, 60], strides = [1, 1]} : vector<8x512xf32> to vector<8x60xf32>
    %450 = math.tanh %449 : vector<8x60xf32>
    %451 = vector.extract_strided_slice %432 {offsets = [0, 384], sizes = [8, 60], strides = [1, 1]} : vector<8x512xf32> to vector<8x60xf32>
    %cst_229 = arith.constant 5.000000e-01 : f32
    %452 = vector.broadcast %cst_229 : f32 to vector<8x60xf32>
    %453 = arith.mulf %452, %451 : vector<8x60xf32>
    %454 = math.tanh %453 : vector<8x60xf32>
    %cst_230 = arith.constant 5.000000e-01 : f32
    %455 = vector.broadcast %cst_230 : f32 to vector<8x60xf32>
    %456 = arith.mulf %455, %454 : vector<8x60xf32>
    %cst_231 = arith.constant 5.000000e-01 : f32
    %457 = vector.broadcast %cst_231 : f32 to vector<8x60xf32>
    %458 = arith.addf %456, %457 : vector<8x60xf32>
    %459 = arith.mulf %448, %418 : vector<8x60xf32>
    %460 = arith.mulf %440, %450 : vector<8x60xf32>
    %461 = arith.addf %459, %460 : vector<8x60xf32>
    %462 = math.tanh %461 : vector<8x60xf32>
    %463 = arith.mulf %458, %462 : vector<8x60xf32>
    %c0_232 = arith.constant 0 : index
    %c0_233 = arith.constant 0 : index
    %464 = vector.load %arg9[%c0_232, %c0_233] : memref<60x128xf32, #tpu.memory_space<vmem>>, vector<60x128xf32>
    %cst_234 = arith.constant dense<0.000000e+00> : vector<8x128xf32>
    %465 = tpu.matmul %463, %464, %cst_234 {dimension_numbers = #tpu.dot_dimension_numbers<[1], [0], [0], [1], [0, 0, 1, 1], [], []>} : vector<8x60xf32>, vector<60x128xf32>, vector<8x128xf32> -> vector<8x128xf32>
    %c0_235 = arith.constant 0 : index
    %c0_236 = arith.constant 0 : index
    %466 = vector.load %arg10[%c0_235, %c0_236] : memref<1x128xf32, #tpu.memory_space<vmem>>, vector<1x128xf32>
    %467 = vector.broadcast %466 : vector<1x128xf32> to vector<8x128xf32>
    %468 = arith.addf %465, %467 : vector<8x128xf32>
    %c0_237 = arith.constant 0 : index
    %c16_238 = arith.constant 16 : index
    %c0_239 = arith.constant 0 : index
    %469 = vector.load %arg11[%c0_237, %c16_238, %c0_239] : memref<1x64x128xf32, #tpu.memory_space<vmem>>, vector<1x8x128xf32>
    %470 = vector.shape_cast %469 : vector<1x8x128xf32> to vector<8x128xf32>
    %471 = vector.shape_cast %468 : vector<8x128xf32> to vector<1x8x128xf32>
    tpu.vector_store %arg11[%c0_237, %c16_238, %c0_239], %471 {strides = array<i32>} : memref<1x64x128xf32, #tpu.memory_space<vmem>>, vector<1x8x128xf32>,
    %c24_240 = arith.constant 24 : index
    %c0_241 = arith.constant 0 : index
    %472 = vector.load %arg13[%c24_240, %c0_241] : memref<64x512xf32, #tpu.memory_space<vmem>>, vector<8x512xf32>
    %c0_242 = arith.constant 0 : index
    %c0_243 = arith.constant 0 : index
    %473 = vector.load %arg8[%c0_242, %c0_243] : memref<60x512xf32, #tpu.memory_space<vmem>>, vector<60x512xf32>
    %cst_244 = arith.constant dense<0.000000e+00> : vector<8x512xf32>
    %474 = tpu.matmul %463, %473, %cst_244 {dimension_numbers = #tpu.dot_dimension_numbers<[1], [0], [0], [1], [0, 0, 1, 1], [], []>} : vector<8x60xf32>, vector<60x512xf32>, vector<8x512xf32> -> vector<8x512xf32>
    %475 = arith.addf %472, %474 : vector<8x512xf32>
    %476 = vector.extract_strided_slice %475 {offsets = [0, 0], sizes = [8, 60], strides = [1, 1]} : vector<8x512xf32> to vector<8x60xf32>
    %cst_245 = arith.constant 5.000000e-01 : f32
    %477 = vector.broadcast %cst_245 : f32 to vector<8x60xf32>
    %478 = arith.mulf %477, %476 : vector<8x60xf32>
    %479 = math.tanh %478 : vector<8x60xf32>
    %cst_246 = arith.constant 5.000000e-01 : f32
    %480 = vector.broadcast %cst_246 : f32 to vector<8x60xf32>
    %481 = arith.mulf %480, %479 : vector<8x60xf32>
    %cst_247 = arith.constant 5.000000e-01 : f32
    %482 = vector.broadcast %cst_247 : f32 to vector<8x60xf32>
    %483 = arith.addf %481, %482 : vector<8x60xf32>
    %484 = vector.extract_strided_slice %475 {offsets = [0, 128], sizes = [8, 60], strides = [1, 1]} : vector<8x512xf32> to vector<8x60xf32>
    %cst_248 = arith.constant 5.000000e-01 : f32
    %485 = vector.broadcast %cst_248 : f32 to vector<8x60xf32>
    %486 = arith.mulf %485, %484 : vector<8x60xf32>
    %487 = math.tanh %486 : vector<8x60xf32>
    %cst_249 = arith.constant 5.000000e-01 : f32
    %488 = vector.broadcast %cst_249 : f32 to vector<8x60xf32>
    %489 = arith.mulf %488, %487 : vector<8x60xf32>
    %cst_250 = arith.constant 5.000000e-01 : f32
    %490 = vector.broadcast %cst_250 : f32 to vector<8x60xf32>
    %491 = arith.addf %489, %490 : vector<8x60xf32>
    %492 = vector.extract_strided_slice %475 {offsets = [0, 256], sizes = [8, 60], strides = [1, 1]} : vector<8x512xf32> to vector<8x60xf32>
    %493 = math.tanh %492 : vector<8x60xf32>
    %494 = vector.extract_strided_slice %475 {offsets = [0, 384], sizes = [8, 60], strides = [1, 1]} : vector<8x512xf32> to vector<8x60xf32>
    %cst_251 = arith.constant 5.000000e-01 : f32
    %495 = vector.broadcast %cst_251 : f32 to vector<8x60xf32>
    %496 = arith.mulf %495, %494 : vector<8x60xf32>
    %497 = math.tanh %496 : vector<8x60xf32>
    %cst_252 = arith.constant 5.000000e-01 : f32
    %498 = vector.broadcast %cst_252 : f32 to vector<8x60xf32>
    %499 = arith.mulf %498, %497 : vector<8x60xf32>
    %cst_253 = arith.constant 5.000000e-01 : f32
    %500 = vector.broadcast %cst_253 : f32 to vector<8x60xf32>
    %501 = arith.addf %499, %500 : vector<8x60xf32>
    %502 = arith.mulf %491, %461 : vector<8x60xf32>
    %503 = arith.mulf %483, %493 : vector<8x60xf32>
    %504 = arith.addf %502, %503 : vector<8x60xf32>
    %505 = math.tanh %504 : vector<8x60xf32>
    %506 = arith.mulf %501, %505 : vector<8x60xf32>
    %c0_254 = arith.constant 0 : index
    %c0_255 = arith.constant 0 : index
    %507 = vector.load %arg9[%c0_254, %c0_255] : memref<60x128xf32, #tpu.memory_space<vmem>>, vector<60x128xf32>
    %cst_256 = arith.constant dense<0.000000e+00> : vector<8x128xf32>
    %508 = tpu.matmul %506, %507, %cst_256 {dimension_numbers = #tpu.dot_dimension_numbers<[1], [0], [0], [1], [0, 0, 1, 1], [], []>} : vector<8x60xf32>, vector<60x128xf32>, vector<8x128xf32> -> vector<8x128xf32>
    %c0_257 = arith.constant 0 : index
    %c0_258 = arith.constant 0 : index
    %509 = vector.load %arg10[%c0_257, %c0_258] : memref<1x128xf32, #tpu.memory_space<vmem>>, vector<1x128xf32>
    %510 = vector.broadcast %509 : vector<1x128xf32> to vector<8x128xf32>
    %511 = arith.addf %508, %510 : vector<8x128xf32>
    %c0_259 = arith.constant 0 : index
    %c24_260 = arith.constant 24 : index
    %c0_261 = arith.constant 0 : index
    %512 = vector.load %arg11[%c0_259, %c24_260, %c0_261] : memref<1x64x128xf32, #tpu.memory_space<vmem>>, vector<1x8x128xf32>
    %513 = vector.shape_cast %512 : vector<1x8x128xf32> to vector<8x128xf32>
    %514 = vector.shape_cast %511 : vector<8x128xf32> to vector<1x8x128xf32>
    tpu.vector_store %arg11[%c0_259, %c24_260, %c0_261], %514 {strides = array<i32>} : memref<1x64x128xf32, #tpu.memory_space<vmem>>, vector<1x8x128xf32>,
    %c32_262 = arith.constant 32 : index
    %c0_263 = arith.constant 0 : index
    %515 = vector.load %arg13[%c32_262, %c0_263] : memref<64x512xf32, #tpu.memory_space<vmem>>, vector<8x512xf32>
    %c0_264 = arith.constant 0 : index
    %c0_265 = arith.constant 0 : index
    %516 = vector.load %arg8[%c0_264, %c0_265] : memref<60x512xf32, #tpu.memory_space<vmem>>, vector<60x512xf32>
    %cst_266 = arith.constant dense<0.000000e+00> : vector<8x512xf32>
    %517 = tpu.matmul %506, %516, %cst_266 {dimension_numbers = #tpu.dot_dimension_numbers<[1], [0], [0], [1], [0, 0, 1, 1], [], []>} : vector<8x60xf32>, vector<60x512xf32>, vector<8x512xf32> -> vector<8x512xf32>
    %518 = arith.addf %515, %517 : vector<8x512xf32>
    %519 = vector.extract_strided_slice %518 {offsets = [0, 0], sizes = [8, 60], strides = [1, 1]} : vector<8x512xf32> to vector<8x60xf32>
    %cst_267 = arith.constant 5.000000e-01 : f32
    %520 = vector.broadcast %cst_267 : f32 to vector<8x60xf32>
    %521 = arith.mulf %520, %519 : vector<8x60xf32>
    %522 = math.tanh %521 : vector<8x60xf32>
    %cst_268 = arith.constant 5.000000e-01 : f32
    %523 = vector.broadcast %cst_268 : f32 to vector<8x60xf32>
    %524 = arith.mulf %523, %522 : vector<8x60xf32>
    %cst_269 = arith.constant 5.000000e-01 : f32
    %525 = vector.broadcast %cst_269 : f32 to vector<8x60xf32>
    %526 = arith.addf %524, %525 : vector<8x60xf32>
    %527 = vector.extract_strided_slice %518 {offsets = [0, 128], sizes = [8, 60], strides = [1, 1]} : vector<8x512xf32> to vector<8x60xf32>
    %cst_270 = arith.constant 5.000000e-01 : f32
    %528 = vector.broadcast %cst_270 : f32 to vector<8x60xf32>
    %529 = arith.mulf %528, %527 : vector<8x60xf32>
    %530 = math.tanh %529 : vector<8x60xf32>
    %cst_271 = arith.constant 5.000000e-01 : f32
    %531 = vector.broadcast %cst_271 : f32 to vector<8x60xf32>
    %532 = arith.mulf %531, %530 : vector<8x60xf32>
    %cst_272 = arith.constant 5.000000e-01 : f32
    %533 = vector.broadcast %cst_272 : f32 to vector<8x60xf32>
    %534 = arith.addf %532, %533 : vector<8x60xf32>
    %535 = vector.extract_strided_slice %518 {offsets = [0, 256], sizes = [8, 60], strides = [1, 1]} : vector<8x512xf32> to vector<8x60xf32>
    %536 = math.tanh %535 : vector<8x60xf32>
    %537 = vector.extract_strided_slice %518 {offsets = [0, 384], sizes = [8, 60], strides = [1, 1]} : vector<8x512xf32> to vector<8x60xf32>
    %cst_273 = arith.constant 5.000000e-01 : f32
    %538 = vector.broadcast %cst_273 : f32 to vector<8x60xf32>
    %539 = arith.mulf %538, %537 : vector<8x60xf32>
    %540 = math.tanh %539 : vector<8x60xf32>
    %cst_274 = arith.constant 5.000000e-01 : f32
    %541 = vector.broadcast %cst_274 : f32 to vector<8x60xf32>
    %542 = arith.mulf %541, %540 : vector<8x60xf32>
    %cst_275 = arith.constant 5.000000e-01 : f32
    %543 = vector.broadcast %cst_275 : f32 to vector<8x60xf32>
    %544 = arith.addf %542, %543 : vector<8x60xf32>
    %545 = arith.mulf %534, %504 : vector<8x60xf32>
    %546 = arith.mulf %526, %536 : vector<8x60xf32>
    %547 = arith.addf %545, %546 : vector<8x60xf32>
    %548 = math.tanh %547 : vector<8x60xf32>
    %549 = arith.mulf %544, %548 : vector<8x60xf32>
    %c0_276 = arith.constant 0 : index
    %c0_277 = arith.constant 0 : index
    %550 = vector.load %arg9[%c0_276, %c0_277] : memref<60x128xf32, #tpu.memory_space<vmem>>, vector<60x128xf32>
    %cst_278 = arith.constant dense<0.000000e+00> : vector<8x128xf32>
    %551 = tpu.matmul %549, %550, %cst_278 {dimension_numbers = #tpu.dot_dimension_numbers<[1], [0], [0], [1], [0, 0, 1, 1], [], []>} : vector<8x60xf32>, vector<60x128xf32>, vector<8x128xf32> -> vector<8x128xf32>
    %c0_279 = arith.constant 0 : index
    %c0_280 = arith.constant 0 : index
    %552 = vector.load %arg10[%c0_279, %c0_280] : memref<1x128xf32, #tpu.memory_space<vmem>>, vector<1x128xf32>
    %553 = vector.broadcast %552 : vector<1x128xf32> to vector<8x128xf32>
    %554 = arith.addf %551, %553 : vector<8x128xf32>
    %c0_281 = arith.constant 0 : index
    %c32_282 = arith.constant 32 : index
    %c0_283 = arith.constant 0 : index
    %555 = vector.load %arg11[%c0_281, %c32_282, %c0_283] : memref<1x64x128xf32, #tpu.memory_space<vmem>>, vector<1x8x128xf32>
    %556 = vector.shape_cast %555 : vector<1x8x128xf32> to vector<8x128xf32>
    %557 = vector.shape_cast %554 : vector<8x128xf32> to vector<1x8x128xf32>
    tpu.vector_store %arg11[%c0_281, %c32_282, %c0_283], %557 {strides = array<i32>} : memref<1x64x128xf32, #tpu.memory_space<vmem>>, vector<1x8x128xf32>,
    %c40_284 = arith.constant 40 : index
    %c0_285 = arith.constant 0 : index
    %558 = vector.load %arg13[%c40_284, %c0_285] : memref<64x512xf32, #tpu.memory_space<vmem>>, vector<8x512xf32>
    %c0_286 = arith.constant 0 : index
    %c0_287 = arith.constant 0 : index
    %559 = vector.load %arg8[%c0_286, %c0_287] : memref<60x512xf32, #tpu.memory_space<vmem>>, vector<60x512xf32>
    %cst_288 = arith.constant dense<0.000000e+00> : vector<8x512xf32>
    %560 = tpu.matmul %549, %559, %cst_288 {dimension_numbers = #tpu.dot_dimension_numbers<[1], [0], [0], [1], [0, 0, 1, 1], [], []>} : vector<8x60xf32>, vector<60x512xf32>, vector<8x512xf32> -> vector<8x512xf32>
    %561 = arith.addf %558, %560 : vector<8x512xf32>
    %562 = vector.extract_strided_slice %561 {offsets = [0, 0], sizes = [8, 60], strides = [1, 1]} : vector<8x512xf32> to vector<8x60xf32>
    %cst_289 = arith.constant 5.000000e-01 : f32
    %563 = vector.broadcast %cst_289 : f32 to vector<8x60xf32>
    %564 = arith.mulf %563, %562 : vector<8x60xf32>
    %565 = math.tanh %564 : vector<8x60xf32>
    %cst_290 = arith.constant 5.000000e-01 : f32
    %566 = vector.broadcast %cst_290 : f32 to vector<8x60xf32>
    %567 = arith.mulf %566, %565 : vector<8x60xf32>
    %cst_291 = arith.constant 5.000000e-01 : f32
    %568 = vector.broadcast %cst_291 : f32 to vector<8x60xf32>
    %569 = arith.addf %567, %568 : vector<8x60xf32>
    %570 = vector.extract_strided_slice %561 {offsets = [0, 128], sizes = [8, 60], strides = [1, 1]} : vector<8x512xf32> to vector<8x60xf32>
    %cst_292 = arith.constant 5.000000e-01 : f32
    %571 = vector.broadcast %cst_292 : f32 to vector<8x60xf32>
    %572 = arith.mulf %571, %570 : vector<8x60xf32>
    %573 = math.tanh %572 : vector<8x60xf32>
    %cst_293 = arith.constant 5.000000e-01 : f32
    %574 = vector.broadcast %cst_293 : f32 to vector<8x60xf32>
    %575 = arith.mulf %574, %573 : vector<8x60xf32>
    %cst_294 = arith.constant 5.000000e-01 : f32
    %576 = vector.broadcast %cst_294 : f32 to vector<8x60xf32>
    %577 = arith.addf %575, %576 : vector<8x60xf32>
    %578 = vector.extract_strided_slice %561 {offsets = [0, 256], sizes = [8, 60], strides = [1, 1]} : vector<8x512xf32> to vector<8x60xf32>
    %579 = math.tanh %578 : vector<8x60xf32>
    %580 = vector.extract_strided_slice %561 {offsets = [0, 384], sizes = [8, 60], strides = [1, 1]} : vector<8x512xf32> to vector<8x60xf32>
    %cst_295 = arith.constant 5.000000e-01 : f32
    %581 = vector.broadcast %cst_295 : f32 to vector<8x60xf32>
    %582 = arith.mulf %581, %580 : vector<8x60xf32>
    %583 = math.tanh %582 : vector<8x60xf32>
    %cst_296 = arith.constant 5.000000e-01 : f32
    %584 = vector.broadcast %cst_296 : f32 to vector<8x60xf32>
    %585 = arith.mulf %584, %583 : vector<8x60xf32>
    %cst_297 = arith.constant 5.000000e-01 : f32
    %586 = vector.broadcast %cst_297 : f32 to vector<8x60xf32>
    %587 = arith.addf %585, %586 : vector<8x60xf32>
    %588 = arith.mulf %577, %547 : vector<8x60xf32>
    %589 = arith.mulf %569, %579 : vector<8x60xf32>
    %590 = arith.addf %588, %589 : vector<8x60xf32>
    %591 = math.tanh %590 : vector<8x60xf32>
    %592 = arith.mulf %587, %591 : vector<8x60xf32>
    %c0_298 = arith.constant 0 : index
    %c0_299 = arith.constant 0 : index
    %593 = vector.load %arg9[%c0_298, %c0_299] : memref<60x128xf32, #tpu.memory_space<vmem>>, vector<60x128xf32>
    %cst_300 = arith.constant dense<0.000000e+00> : vector<8x128xf32>
    %594 = tpu.matmul %592, %593, %cst_300 {dimension_numbers = #tpu.dot_dimension_numbers<[1], [0], [0], [1], [0, 0, 1, 1], [], []>} : vector<8x60xf32>, vector<60x128xf32>, vector<8x128xf32> -> vector<8x128xf32>
    %c0_301 = arith.constant 0 : index
    %c0_302 = arith.constant 0 : index
    %595 = vector.load %arg10[%c0_301, %c0_302] : memref<1x128xf32, #tpu.memory_space<vmem>>, vector<1x128xf32>
    %596 = vector.broadcast %595 : vector<1x128xf32> to vector<8x128xf32>
    %597 = arith.addf %594, %596 : vector<8x128xf32>
    %c0_303 = arith.constant 0 : index
    %c40_304 = arith.constant 40 : index
    %c0_305 = arith.constant 0 : index
    %598 = vector.load %arg11[%c0_303, %c40_304, %c0_305] : memref<1x64x128xf32, #tpu.memory_space<vmem>>, vector<1x8x128xf32>
    %599 = vector.shape_cast %598 : vector<1x8x128xf32> to vector<8x128xf32>
    %600 = vector.shape_cast %597 : vector<8x128xf32> to vector<1x8x128xf32>
    tpu.vector_store %arg11[%c0_303, %c40_304, %c0_305], %600 {strides = array<i32>} : memref<1x64x128xf32, #tpu.memory_space<vmem>>, vector<1x8x128xf32>,
    %c48_306 = arith.constant 48 : index
    %c0_307 = arith.constant 0 : index
    %601 = vector.load %arg13[%c48_306, %c0_307] : memref<64x512xf32, #tpu.memory_space<vmem>>, vector<8x512xf32>
    %c0_308 = arith.constant 0 : index
    %c0_309 = arith.constant 0 : index
    %602 = vector.load %arg8[%c0_308, %c0_309] : memref<60x512xf32, #tpu.memory_space<vmem>>, vector<60x512xf32>
    %cst_310 = arith.constant dense<0.000000e+00> : vector<8x512xf32>
    %603 = tpu.matmul %592, %602, %cst_310 {dimension_numbers = #tpu.dot_dimension_numbers<[1], [0], [0], [1], [0, 0, 1, 1], [], []>} : vector<8x60xf32>, vector<60x512xf32>, vector<8x512xf32> -> vector<8x512xf32>
    %604 = arith.addf %601, %603 : vector<8x512xf32>
    %605 = vector.extract_strided_slice %604 {offsets = [0, 0], sizes = [8, 60], strides = [1, 1]} : vector<8x512xf32> to vector<8x60xf32>
    %cst_311 = arith.constant 5.000000e-01 : f32
    %606 = vector.broadcast %cst_311 : f32 to vector<8x60xf32>
    %607 = arith.mulf %606, %605 : vector<8x60xf32>
    %608 = math.tanh %607 : vector<8x60xf32>
    %cst_312 = arith.constant 5.000000e-01 : f32
    %609 = vector.broadcast %cst_312 : f32 to vector<8x60xf32>
    %610 = arith.mulf %609, %608 : vector<8x60xf32>
    %cst_313 = arith.constant 5.000000e-01 : f32
    %611 = vector.broadcast %cst_313 : f32 to vector<8x60xf32>
    %612 = arith.addf %610, %611 : vector<8x60xf32>
    %613 = vector.extract_strided_slice %604 {offsets = [0, 128], sizes = [8, 60], strides = [1, 1]} : vector<8x512xf32> to vector<8x60xf32>
    %cst_314 = arith.constant 5.000000e-01 : f32
    %614 = vector.broadcast %cst_314 : f32 to vector<8x60xf32>
    %615 = arith.mulf %614, %613 : vector<8x60xf32>
    %616 = math.tanh %615 : vector<8x60xf32>
    %cst_315 = arith.constant 5.000000e-01 : f32
    %617 = vector.broadcast %cst_315 : f32 to vector<8x60xf32>
    %618 = arith.mulf %617, %616 : vector<8x60xf32>
    %cst_316 = arith.constant 5.000000e-01 : f32
    %619 = vector.broadcast %cst_316 : f32 to vector<8x60xf32>
    %620 = arith.addf %618, %619 : vector<8x60xf32>
    %621 = vector.extract_strided_slice %604 {offsets = [0, 256], sizes = [8, 60], strides = [1, 1]} : vector<8x512xf32> to vector<8x60xf32>
    %622 = math.tanh %621 : vector<8x60xf32>
    %623 = vector.extract_strided_slice %604 {offsets = [0, 384], sizes = [8, 60], strides = [1, 1]} : vector<8x512xf32> to vector<8x60xf32>
    %cst_317 = arith.constant 5.000000e-01 : f32
    %624 = vector.broadcast %cst_317 : f32 to vector<8x60xf32>
    %625 = arith.mulf %624, %623 : vector<8x60xf32>
    %626 = math.tanh %625 : vector<8x60xf32>
    %cst_318 = arith.constant 5.000000e-01 : f32
    %627 = vector.broadcast %cst_318 : f32 to vector<8x60xf32>
    %628 = arith.mulf %627, %626 : vector<8x60xf32>
    %cst_319 = arith.constant 5.000000e-01 : f32
    %629 = vector.broadcast %cst_319 : f32 to vector<8x60xf32>
    %630 = arith.addf %628, %629 : vector<8x60xf32>
    %631 = arith.mulf %620, %590 : vector<8x60xf32>
    %632 = arith.mulf %612, %622 : vector<8x60xf32>
    %633 = arith.addf %631, %632 : vector<8x60xf32>
    %634 = math.tanh %633 : vector<8x60xf32>
    %635 = arith.mulf %630, %634 : vector<8x60xf32>
    %c0_320 = arith.constant 0 : index
    %c0_321 = arith.constant 0 : index
    %636 = vector.load %arg9[%c0_320, %c0_321] : memref<60x128xf32, #tpu.memory_space<vmem>>, vector<60x128xf32>
    %cst_322 = arith.constant dense<0.000000e+00> : vector<8x128xf32>
    %637 = tpu.matmul %635, %636, %cst_322 {dimension_numbers = #tpu.dot_dimension_numbers<[1], [0], [0], [1], [0, 0, 1, 1], [], []>} : vector<8x60xf32>, vector<60x128xf32>, vector<8x128xf32> -> vector<8x128xf32>
    %c0_323 = arith.constant 0 : index
    %c0_324 = arith.constant 0 : index
    %638 = vector.load %arg10[%c0_323, %c0_324] : memref<1x128xf32, #tpu.memory_space<vmem>>, vector<1x128xf32>
    %639 = vector.broadcast %638 : vector<1x128xf32> to vector<8x128xf32>
    %640 = arith.addf %637, %639 : vector<8x128xf32>
    %c0_325 = arith.constant 0 : index
    %c48_326 = arith.constant 48 : index
    %c0_327 = arith.constant 0 : index
    %641 = vector.load %arg11[%c0_325, %c48_326, %c0_327] : memref<1x64x128xf32, #tpu.memory_space<vmem>>, vector<1x8x128xf32>
    %642 = vector.shape_cast %641 : vector<1x8x128xf32> to vector<8x128xf32>
    %643 = vector.shape_cast %640 : vector<8x128xf32> to vector<1x8x128xf32>
    tpu.vector_store %arg11[%c0_325, %c48_326, %c0_327], %643 {strides = array<i32>} : memref<1x64x128xf32, #tpu.memory_space<vmem>>, vector<1x8x128xf32>,
    %c56_328 = arith.constant 56 : index
    %c0_329 = arith.constant 0 : index
    %644 = vector.load %arg13[%c56_328, %c0_329] : memref<64x512xf32, #tpu.memory_space<vmem>>, vector<8x512xf32>
    %c0_330 = arith.constant 0 : index
    %c0_331 = arith.constant 0 : index
    %645 = vector.load %arg8[%c0_330, %c0_331] : memref<60x512xf32, #tpu.memory_space<vmem>>, vector<60x512xf32>
    %cst_332 = arith.constant dense<0.000000e+00> : vector<8x512xf32>
    %646 = tpu.matmul %635, %645, %cst_332 {dimension_numbers = #tpu.dot_dimension_numbers<[1], [0], [0], [1], [0, 0, 1, 1], [], []>} : vector<8x60xf32>, vector<60x512xf32>, vector<8x512xf32> -> vector<8x512xf32>
    %647 = arith.addf %644, %646 : vector<8x512xf32>
    %648 = vector.extract_strided_slice %647 {offsets = [0, 0], sizes = [8, 60], strides = [1, 1]} : vector<8x512xf32> to vector<8x60xf32>
    %cst_333 = arith.constant 5.000000e-01 : f32
    %649 = vector.broadcast %cst_333 : f32 to vector<8x60xf32>
    %650 = arith.mulf %649, %648 : vector<8x60xf32>
    %651 = math.tanh %650 : vector<8x60xf32>
    %cst_334 = arith.constant 5.000000e-01 : f32
    %652 = vector.broadcast %cst_334 : f32 to vector<8x60xf32>
    %653 = arith.mulf %652, %651 : vector<8x60xf32>
    %cst_335 = arith.constant 5.000000e-01 : f32
    %654 = vector.broadcast %cst_335 : f32 to vector<8x60xf32>
    %655 = arith.addf %653, %654 : vector<8x60xf32>
    %656 = vector.extract_strided_slice %647 {offsets = [0, 128], sizes = [8, 60], strides = [1, 1]} : vector<8x512xf32> to vector<8x60xf32>
    %cst_336 = arith.constant 5.000000e-01 : f32
    %657 = vector.broadcast %cst_336 : f32 to vector<8x60xf32>
    %658 = arith.mulf %657, %656 : vector<8x60xf32>
    %659 = math.tanh %658 : vector<8x60xf32>
    %cst_337 = arith.constant 5.000000e-01 : f32
    %660 = vector.broadcast %cst_337 : f32 to vector<8x60xf32>
    %661 = arith.mulf %660, %659 : vector<8x60xf32>
    %cst_338 = arith.constant 5.000000e-01 : f32
    %662 = vector.broadcast %cst_338 : f32 to vector<8x60xf32>
    %663 = arith.addf %661, %662 : vector<8x60xf32>
    %664 = vector.extract_strided_slice %647 {offsets = [0, 256], sizes = [8, 60], strides = [1, 1]} : vector<8x512xf32> to vector<8x60xf32>
    %665 = math.tanh %664 : vector<8x60xf32>
    %666 = vector.extract_strided_slice %647 {offsets = [0, 384], sizes = [8, 60], strides = [1, 1]} : vector<8x512xf32> to vector<8x60xf32>
    %cst_339 = arith.constant 5.000000e-01 : f32
    %667 = vector.broadcast %cst_339 : f32 to vector<8x60xf32>
    %668 = arith.mulf %667, %666 : vector<8x60xf32>
    %669 = math.tanh %668 : vector<8x60xf32>
    %cst_340 = arith.constant 5.000000e-01 : f32
    %670 = vector.broadcast %cst_340 : f32 to vector<8x60xf32>
    %671 = arith.mulf %670, %669 : vector<8x60xf32>
    %cst_341 = arith.constant 5.000000e-01 : f32
    %672 = vector.broadcast %cst_341 : f32 to vector<8x60xf32>
    %673 = arith.addf %671, %672 : vector<8x60xf32>
    %674 = arith.mulf %663, %633 : vector<8x60xf32>
    %675 = arith.mulf %655, %665 : vector<8x60xf32>
    %676 = arith.addf %674, %675 : vector<8x60xf32>
    %677 = math.tanh %676 : vector<8x60xf32>
    %678 = arith.mulf %673, %677 : vector<8x60xf32>
    %c0_342 = arith.constant 0 : index
    %c0_343 = arith.constant 0 : index
    %679 = vector.load %arg9[%c0_342, %c0_343] : memref<60x128xf32, #tpu.memory_space<vmem>>, vector<60x128xf32>
    %cst_344 = arith.constant dense<0.000000e+00> : vector<8x128xf32>
    %680 = tpu.matmul %678, %679, %cst_344 {dimension_numbers = #tpu.dot_dimension_numbers<[1], [0], [0], [1], [0, 0, 1, 1], [], []>} : vector<8x60xf32>, vector<60x128xf32>, vector<8x128xf32> -> vector<8x128xf32>
    %c0_345 = arith.constant 0 : index
    %c0_346 = arith.constant 0 : index
    %681 = vector.load %arg10[%c0_345, %c0_346] : memref<1x128xf32, #tpu.memory_space<vmem>>, vector<1x128xf32>
    %682 = vector.broadcast %681 : vector<1x128xf32> to vector<8x128xf32>
    %683 = arith.addf %680, %682 : vector<8x128xf32>
    %c0_347 = arith.constant 0 : index
    %c56_348 = arith.constant 56 : index
    %c0_349 = arith.constant 0 : index
    %684 = vector.load %arg11[%c0_347, %c56_348, %c0_349] : memref<1x64x128xf32, #tpu.memory_space<vmem>>, vector<1x8x128xf32>
    %685 = vector.shape_cast %684 : vector<1x8x128xf32> to vector<8x128xf32>
    %686 = vector.shape_cast %683 : vector<8x128xf32> to vector<1x8x128xf32>
    tpu.vector_store %arg11[%c0_347, %c56_348, %c0_349], %686 {strides = array<i32>} : memref<1x64x128xf32, #tpu.memory_space<vmem>>, vector<1x8x128xf32>,
    return
  }
  func.func @transform_0(%arg0: i32) -> (i32, i32, i32) {
    %c0_i32 = arith.constant 0 : i32
    %c0_i32_0 = arith.constant 0 : i32
    %c0_i32_1 = arith.constant 0 : i32
    return %arg0, %c0_i32, %c0_i32_0 : i32, i32, i32
  }
  func.func @transform_1(%arg0: i32) -> (i32, i32) {
    %c0_i32 = arith.constant 0 : i32
    %c0_i32_0 = arith.constant 0 : i32
    %c0_i32_1 = arith.constant 0 : i32
    return %c0_i32, %c0_i32_0 : i32, i32
  }
  func.func @transform_2(%arg0: i32) -> (i32, i32) {
    %c0_i32 = arith.constant 0 : i32
    %c0_i32_0 = arith.constant 0 : i32
    %c0_i32_1 = arith.constant 0 : i32
    return %c0_i32, %c0_i32_0 : i32, i32
  }
  func.func @transform_3(%arg0: i32) -> (i32, i32) {
    %c0_i32 = arith.constant 0 : i32
    %c0_i32_0 = arith.constant 0 : i32
    %c0_i32_1 = arith.constant 0 : i32
    return %c0_i32, %c0_i32_0 : i32, i32
  }
  func.func @transform_4(%arg0: i32) -> (i32, i32) {
    %c0_i32 = arith.constant 0 : i32
    %c0_i32_0 = arith.constant 0 : i32
    %c0_i32_1 = arith.constant 0 : i32
    return %c0_i32, %c0_i32_0 : i32, i32
  }
  func.func @transform_5(%arg0: i32) -> (i32, i32) {
    %c0_i32 = arith.constant 0 : i32
    %c0_i32_0 = arith.constant 0 : i32
    %c0_i32_1 = arith.constant 0 : i32
    return %c0_i32, %c0_i32_0 : i32, i32
  }
  func.func @transform_6(%arg0: i32) -> (i32, i32) {
    %c0_i32 = arith.constant 0 : i32
    %c0_i32_0 = arith.constant 0 : i32
    %c0_i32_1 = arith.constant 0 : i32
    return %c0_i32, %c0_i32_0 : i32, i32
  }
  func.func @transform_7(%arg0: i32) -> (i32, i32) {
    %c0_i32 = arith.constant 0 : i32
    %c0_i32_0 = arith.constant 0 : i32
    %c0_i32_1 = arith.constant 0 : i32
    return %c0_i32, %c0_i32_0 : i32, i32
  }
  func.func @transform_8(%arg0: i32) -> (i32, i32) {
    %c0_i32 = arith.constant 0 : i32
    %c0_i32_0 = arith.constant 0 : i32
    %c0_i32_1 = arith.constant 0 : i32
    return %c0_i32, %c0_i32_0 : i32, i32
  }
  func.func @transform_9(%arg0: i32) -> (i32, i32) {
    %c0_i32 = arith.constant 0 : i32
    %c0_i32_0 = arith.constant 0 : i32
    %c0_i32_1 = arith.constant 0 : i32
    return %c0_i32, %c0_i32_0 : i32, i32
  }
  func.func @transform_10(%arg0: i32) -> (i32, i32, i32) {
    %c0_i32 = arith.constant 0 : i32
    %c0_i32_0 = arith.constant 0 : i32
    %c0_i32_1 = arith.constant 0 : i32
    return %arg0, %c0_i32, %c0_i32_0 : i32, i32, i32
  }
}

</mosaic_0001>

<bundles_post_ra>
// kernel: tpu_custom_call.1
= control target key start
LH: loop header
LB: loop body
LE: loop exit
PB: predicated region body
PF: predicated region fallthrough
CT: control target
= control target key end

     0   :  { %15 = vsyncpa [#allocation5], 0  ;;  %s8915_s0 = inlined_call_operand.vmem [shape: f32[1,64,4], index: 0, kind: input, shape index: {}]   ;;  %s8916_s1 = inlined_call_operand.hbm [shape: f32[4,512], index: 1, kind: input, shape index: {}]   ;;  %s8917_s2 = inlined_call_operand.hbm [shape: f32[30,512], index: 2, kind: input, shape index: {}]   ;;  %s8918_s3 = inlined_call_operand.vmem [shape: f32[30,60], index: 3, kind: input, shape index: {}]   ;;  %s8919_s4 = inlined_call_operand.vmem [shape: f32[1,60], index: 4, kind: input, shape index: {}]   ;;  %s8920_s5 = inlined_call_operand.hbm [shape: f32[30,512], index: 5, kind: input, shape index: {}]   ;;  %s8921_s6 = inlined_call_operand.hbm [shape: f32[1,512], index: 6, kind: input, shape index: {}]   ;;  %s8922_s7 = inlined_call_operand.hbm [shape: f32[60,512], index: 7, kind: input, shape index: {}]   ;;  %s8923_s8 = inlined_call_operand.vmem [shape: f32[60,128], index: 8, kind: input, shape index: {}]   ;;  %s8924_s9 = inlined_call_operand.vmem [shape: f32[1,128], index: 9, kind: input, shape index: {}]   ;;  %s8925_s10 = inlined_call_operand.hbm [shape: f32[1,64,128], index: 10, kind: output, shape index: {}]  }
   0x1   :  { %16 = vsyncpa [#allocation8], 0 }
   0x2   :  { %17 = vsyncpa [#allocation11], 0 }
   0x3   :  { %18 = vsyncpa [#allocation6], 0  ;;  %s7685_s13 = smov [#allocation7]   ;;  %s7545_s17 = scalar_lea.hbm %s8917_s2, 2048 }
   0x4   :  { %s36_s14 = sshll.u32 %s7685_s13, 4  ;;  %p7546_p0 = scmp.ne.s32.totalorder %s8917_s2, %s7545_s17  ;;  %s37_s14 = int_to_ptr.vmem [resolvable:$true] %s36_s14 }
   0x5   :  { %p7549_p1 = scmp.lt.u32.totalorder %s7545_s17, %s8917_s2 }
   0x7   :  { %p7551_p2 = pnand %p7549_p1, %p7546_p0 }
   0x9   :  { %7554 = shalt.err (!%p7551_p2)
}
   0xa   :  { %s7555_s22 = scalar_lea.vmem %s37_s14, 2048  ;;  %p7560_p4 = scmp.lt.s32.totalorder %s37_s14, %s37_s14 }
   0xb   :  { %p7556_p3 = scmp.ne.s32.totalorder %s37_s14, %s7555_s22  ;;  %p7561_p5 = scmp.lt.s32.totalorder %s7555_s22, %s7555_s22 }
   0xd   :  { %p7562_p6 = por %p7561_p5, %p7560_p4 }
   0xf   :  { %p7563_p7 = pnand %p7562_p6, %p7556_p3 }
  0x11   :  { %7566 = shalt.err (!%p7563_p7)
}
  0x12   :  { %s7686_s23 = smov 512   ;;  %s7687_s24 = smov 32  }
  0x13   :  { %42 = dma.hbm_to_vmem [thread:$0]  %s8917_s2, 2048, %s37_s14, [#allocation8], %s7686_s23, %s7686_s23, %s7687_s24  }
  0x14   :  { %s7688_s27 = smov [#allocation10]   ;;  %s7689_s29 = smov [#allocation4]  }
  0x15   :  { %s65_s28 = sshll.u32 %s7688_s27, 4  ;;  %s27_s30 = sshll.u32 %s7689_s29, 4  ;;  %s66_s28 = int_to_ptr.vmem [resolvable:$true] %s65_s28  ;;  %s28_s30 = int_to_ptr.vmem [resolvable:$true] %s27_s30 }
  0x16   :  { %s7567_s13 = scalar_lea.hbm %s8921_s6, 64 }
  0x17   :  { %p7568_p8 = scmp.ne.s32.totalorder %s8921_s6, %s7567_s13  ;;  %p7571_p9 = scmp.lt.u32.totalorder %s7567_s13, %s8921_s6 }
  0x19   :  { %p7573_p10 = pnand %p7571_p9, %p7568_p8 }
  0x1b   :  { %7576 = shalt.err (!%p7573_p10)
}
  0x1c   :  { %s7577_s2 = scalar_lea.vmem %s66_s28, 64  ;;  %p7582_p12 = scmp.lt.s32.totalorder %s66_s28, %s66_s28 }
  0x1d   :  { %p7578_p11 = scmp.ne.s32.totalorder %s66_s28, %s7577_s2  ;;  %p7583_p13 = scmp.lt.s32.totalorder %s7577_s2, %s7577_s2 }
  0x1f   :  { %p7584_p0 = por %p7583_p13, %p7582_p12 }
  0x21   :  { %p7585_p1 = pnand %p7584_p0, %p7578_p11 }
  0x23   :  { %7588 = shalt.err (!%p7585_p1)
}
  0x24   :  { %68 = dma.hbm_to_vmem [thread:$0]  %s8921_s6, 64, %s66_s28, [#allocation11]  }
  0x25   :  { %s7589_s22 = scalar_lea.hbm %s8916_s1, 256 }
  0x26   :  { %p7590_p2 = scmp.ne.s32.totalorder %s8916_s1, %s7589_s22  ;;  %p7593_p3 = scmp.lt.u32.totalorder %s7589_s22, %s8916_s1 }
  0x28   :  { %p7595_p4 = pnand %p7593_p3, %p7590_p2 }
  0x2a   :  { %7598 = shalt.err (!%p7595_p4)
}
  0x2b   :  { %s7599_s11 = scalar_lea.vmem %s28_s30, 256  ;;  %p7604_p6 = scmp.lt.s32.totalorder %s28_s30, %s28_s30 }
  0x2c   :  { %p7600_p5 = scmp.ne.s32.totalorder %s28_s30, %s7599_s11  ;;  %p7605_p7 = scmp.lt.s32.totalorder %s7599_s11, %s7599_s11 }
  0x2e   :  { %p7606_p8 = por %p7605_p7, %p7604_p6 }
  0x30   :  { %p7607_p9 = pnand %p7606_p8, %p7600_p5 }
  0x32   :  { %7610 = shalt.err (!%p7607_p9)
}
  0x33   :  { %30 = dma.hbm_to_vmem [thread:$0]  %s8916_s1, 256, %s28_s30, [#allocation5]  }
  0x34   :  { %s7690_s12 = smov [#allocation9]   ;;  %s7691_s15 = smov [#allocation12]  }
  0x35   :  { %s52_s13 = sshll.u32 %s7690_s12, 4  ;;  %s74_s16 = sshll.u32 %s7691_s15, 4  ;;  %s53_s13 = int_to_ptr.vmem [resolvable:$true] %s52_s13  ;;  %s75_s16 = int_to_ptr.vmem [resolvable:$true] %s74_s16 }
  0x36   :  { %s7611_s2 = scalar_lea.hbm %s8920_s5, 2048 }
  0x37   :  { %p7612_p10 = scmp.ne.s32.totalorder %s8920_s5, %s7611_s2  ;;  %p7615_p11 = scmp.lt.u32.totalorder %s7611_s2, %s8920_s5 }
  0x39   :  { %p7617_p12 = pnand %p7615_p11, %p7612_p10 }
  0x3b   :  { %7620 = shalt.err (!%p7617_p12)
}
  0x3c   :  { %s7621_s1 = scalar_lea.vmem %s53_s13, 2048  ;;  %p7626_p0 = scmp.lt.s32.totalorder %s53_s13, %s53_s13 }
  0x3d   :  { %p7622_p13 = scmp.ne.s32.totalorder %s53_s13, %s7621_s1  ;;  %p7627_p1 = scmp.lt.s32.totalorder %s7621_s1, %s7621_s1 }
  0x3f   :  { %p7628_p2 = por %p7627_p1, %p7626_p0 }
  0x41   :  { %p7629_p3 = pnand %p7628_p2, %p7622_p13 }
  0x43   :  { %7632 = shalt.err (!%p7629_p3)
}
  0x44   :  { %58 = dma.hbm_to_vmem [thread:$0]  %s8920_s5, 2048, %s53_s13, [#allocation8], %s7686_s23, %s7686_s23, %s7687_s24  }
  0x45   :  { %s7633_s27 = scalar_lea.hbm %s8922_s7, 4096 }
  0x46   :  { %p7634_p4 = scmp.ne.s32.totalorder %s8922_s7, %s7633_s27  ;;  %p7637_p5 = scmp.lt.u32.totalorder %s7633_s27, %s8922_s7 }
  0x48   :  { %p7639_p6 = pnand %p7637_p5, %p7634_p4 }
  0x4a   :  { %7642 = shalt.err (!%p7639_p6)
}
  0x4b   :  { %s7643_s12 = scalar_lea.vmem %s75_s16, 4096  ;;  %p7648_p8 = scmp.lt.s32.totalorder %s75_s16, %s75_s16 }
  0x4c   :  { %p7644_p7 = scmp.ne.s32.totalorder %s75_s16, %s7643_s12  ;;  %p7649_p9 = scmp.lt.s32.totalorder %s7643_s12, %s7643_s12 }
  0x4e   :  { %p7650_p10 = por %p7649_p9, %p7648_p8 }
  0x50   :  { %p7651_p11 = pnand %p7650_p10, %p7644_p7 }
  0x52   :  { %7654 = shalt.err (!%p7651_p11)
}
  0x53   :  { %80 = dma.hbm_to_vmem [thread:$0]  %s8922_s7, 4096, %s75_s16, [#allocation11], %s7686_s23, %s7686_s23, %s7687_s24  }
  0x54   :  { %7677 = dma.done.wait [#allocation5], 256  }
  0x55   :  { %7678 = vsyncadd [#allocation5], 4294967040 }
  0x56   :  { %7679 = dma.done.wait [#allocation8], 4096  }
  0x57   :  { %7680 = vsyncadd [#allocation8], 4294963200 }
  0x58   :  { %7681 = dma.done.wait [#allocation11], 4160  }
  0x59   :  { %7682 = vsyncadd [#allocation11], 4294963136  ;;  %vm139_vm0 = vcmask 1043456   ;;  %vm7692_vm1 = vmmov 1   ;;  %v7693_v1 = vmov 0.0   ;;  %v108_v2 = vld [vmem:[#allocation4] sm:$0xff] }
  0x5a   :  { %vm7825_vm2 = vmpackc.low %vm139_vm0, %vm7692_vm1  ;;  %212 = vmatprep.mubr.f32.mxu0 %v7693_v1  ;;  %254 = vmatprep.mubr.f32.mxu1 %v7693_v1  ;;  %v100_v3 = vld [vmem:[%s8915_s0] sm:$0xff]  ;;  %v112_v4 = vcombine.high %v108_v2, %v108_v2  ;;  %v109_v5 = vld [vmem:[#allocation4 + $0x8] sm:$0xff]  ;;  %vm114_vm3 = vcmask 31744   ;;  %vm430_vm4 = vcmask 1045504   ;;  %vm426_vm6 = vcmask 244736  }
  0x5b   :  { %v411_v6 = vld [vmem:[#allocation7 + $0x8] sm:$0xff]  ;;  %v113_v9 = vcombine.high %v109_v5, %v109_v5  ;;  %v410_v11 = vld [vmem:[#allocation7] sm:$0xff]  ;;  %v413_v14 = vld [vmem:[#allocation7 + $0x18] sm:$0xff]  ;;  %vm3699_vm7 = vcmask 490496   ;;  %vm7695_vm8 = vmmov 0  }
  0x5c   :  { %v415_v7 = vld [vmem:[#allocation7 + $0x28] sm:$0xff]  ;;  %v414_v12 = vld [vmem:[#allocation7 + $0x20] sm:$0xff]  ;;  %6118 = vmatprep.subr.msk.mxu0 %vm139_vm0, %v112_v4  ;;  %7271 = vmatprep.subr.msk.mxu1 %vm139_vm0, %v112_v4  ;;  %v417_v15 = vld [vmem:[#allocation7 + $0x38] sm:$0xff] }
  0x5d   :  { %v7837_v8 = vld [vmem:[%s8915_s0 + $0x38] sm:$0xff]  ;;  %v7839_v10 = vpack.c.bf16 %v415_v7, %v411_v6  ;;  %v7843_v13 = vpack.c.bf16 %v414_v12, %v410_v11  ;;  %6119 = vmatpush1.msk.msra.mxu0 %vm139_vm0, %v108_v2  ;;  %7272 = vmatpush1.msk.msra.mxu1 %vm139_vm0, %v108_v2  ;;  %v412_v16 = vld [vmem:[#allocation7 + $0x10] sm:$0xff]  ;;  %v101_v20 = vld [vmem:[%s8915_s0 + $0x8] sm:$0xff]  ;;  %v7857_v21 = vpack.c.bf16 %v417_v15, %v413_v14 }
  0x5e   :  { %v416_v17 = vld [vmem:[#allocation7 + $0x30] sm:$0xff]  ;;  %6120 = vmatmul.mubr.msk.f32.vlgmr.msra.gmra.mrb[0].mxu0 %vm114_vm3, %v100_v3  ;;  %6127 = vmatmul.mubr.msk.f32.vlgmr.msra.gmra.mrb[0].mxu1 %vm114_vm3, %v7837_v8  ;;  %v7850_v18 = vld [vmem:[#allocation7 + $0x48] sm:$0xff]  ;;  %v7863_v23 = vld [vmem:[#allocation7 + $0x40] sm:$0xff] }
  0x5f   :  { %v423_v19 = vld [vmem:[#allocation7 + $0x68] sm:$0x3f]  ;;  %6128 = vmatprep.subr.msk.mxu1 %vm139_vm0, %v113_v9  ;;  %6550 = vmatprep.subr.bf16.mxu0 %v7839_v10  ;;  %v7861_v22 = vpack.c.bf16 %v416_v17, %v412_v16  ;;  %v7865_v24 = vld [vmem:[#allocation7 + $0x58] sm:$0xff]  ;;  %v422_v27 = vld [vmem:[#allocation7 + $0x60] sm:$0x3f] }
  0x60   :  { %6129 = vmatpush1.msk.msra.mxu1 %vm139_vm0, %v109_v5  ;;  %6552 = vmatpush1.bf16.msra.mxu0 %v7843_v13  ;;  %v425_v25 = vld [vmem:[#allocation7 + $0x78] sm:$0x3f]  ;;  %v6553_v26 = vpack.c.bf16 %v423_v19, %v7850_v18  ;;  %v7871_v29 = vld [vmem:[#allocation7 + $0x50] sm:$0xff]  ;;  %vm7877_vm5 = vmpackc.low %vm430_vm4, %vm7692_vm1  ;;  %v6556_v33 = vpack.c.bf16 %v422_v27, %v7863_v23 }
  0x61   :  { %218 = vmatprep.mubr.f32.mxu0 %v7693_v1  ;;  %325 = vmatprep.mubr.f32.mxu1 %v7693_v1  ;;  %v6563_v28 = vpack.c.bf16 %v425_v25, %v7865_v24  ;;  %v424_v30 = vld [vmem:[#allocation7 + $0x70] sm:$0x3f]  ;;  %v102_v32 = vld [vmem:[%s8915_s0 + $0x10] sm:$0xff]  ;;  %v103_v35 = vld [vmem:[%s8915_s0 + $0x18] sm:$0xff] }
  0x62   :  { %6121 = vmatmul.mubr.msk.f32.gmra.mrb[2].mxu0 %vm114_vm3, %v101_v20  ;;  %6130 = vmatmul.mubr.msk.f32.vlgmr.msra.gmra.mrb[2].mxu1 %vm114_vm3, %v100_v3  ;;  %v6566_v34 = vpack.c.bf16 %v424_v30, %v7871_v29  ;;  %v104_v36 = vld [vmem:[%s8915_s0 + $0x20] sm:$0xff]  ;;  %v105_v37 = vld [vmem:[%s8915_s0 + $0x28] sm:$0xff]  ;;  %v106_v38 = vld [vmem:[%s8915_s0 + $0x30] sm:$0xff] }
  0x63   :  { %6560 = vmatprep.subr.bf16.mxu1 %v7857_v21  ;;  %224 = vmatprep.mubr.f32.mxu0 %v7693_v1  ;;  %v608_v39 = vld [vmem:[#allocation9 + $0x8] sm:$0xff]  ;;  %v610_v41 = vld [vmem:[#allocation9 + $0x18] sm:$0xff]  ;;  %v607_v44 = vld [vmem:[#allocation9] sm:$0xff] }
  0x64   :  { %6562 = vmatpush1.bf16.msra.mxu1 %v7861_v22  ;;  %331 = vmatprep.mubr.f32.mxu1 %v7693_v1  ;;  %v612_v40 = vld [vmem:[#allocation9 + $0x28] sm:$0xff]  ;;  %v614_v43 = vld [vmem:[#allocation9 + $0x38] sm:$0xff]  ;;  %v611_v45 = vld [vmem:[#allocation9 + $0x20] sm:$0xff] }
  0x65   :  { %6555 = vmatprep.subr.msk.bf16.mxu0 %vm7877_vm5, %v6553_v26  ;;  %6565 = vmatprep.subr.msk.bf16.mxu1 %vm7877_vm5, %v6563_v28  ;;  %v7939_v42 = vpack.c.bf16 %v612_v40, %v608_v39  ;;  %v7941_v46 = vpack.c.bf16 %v614_v43, %v610_v41  ;;  %v7943_v47 = vpack.c.bf16 %v611_v45, %v607_v44  ;;  %v609_v48 = vld [vmem:[#allocation9 + $0x10] sm:$0xff]  ;;  %v7950_v51 = vld [vmem:[#allocation9 + $0x48] sm:$0xff]  ;;  %v7952_v53 = vld [vmem:[#allocation9 + $0x58] sm:$0xff] }
  0x66   :  { %6122 = vmatmul.mubr.msk.f32.gmra.mrb[4].mxu0 %vm114_vm3, %v102_v32  ;;  %6131 = vmatmul.mubr.msk.f32.gmra.mrb[4].mxu1 %vm114_vm3, %v101_v20  ;;  %v613_v49 = vld [vmem:[#allocation9 + $0x30] sm:$0xff]  ;;  %v620_v52 = vld [vmem:[#allocation9 + $0x68] sm:$0x3f]  ;;  %v622_v55 = vld [vmem:[#allocation9 + $0x78] sm:$0x3f] }
  0x67   :  { %230 = vmatprep.mubr.f32.mxu0 %v7693_v1  ;;  %337 = vmatprep.mubr.f32.mxu1 %v7693_v1  ;;  %v7946_v50 = vpack.c.bf16 %v613_v49, %v609_v48  ;;  %v6573_v54 = vpack.c.bf16 %v620_v52, %v7950_v51  ;;  %v7956_v56 = vld [vmem:[#allocation9 + $0x40] sm:$0xff]  ;;  %v6583_v58 = vpack.c.bf16 %v622_v55, %v7952_v53  ;;  %v7960_v60 = vld [vmem:[#allocation9 + $0x50] sm:$0xff]  ;;  %v823_v30 = vld [vmem:[#allocation7 + $0x68] sm:$0x3f] }
  0x68   :  { %6558 = vmatpush1.bf16.msk.msra.mxu0 %vm7877_vm5, %v6556_v33  ;;  %6568 = vmatpush1.bf16.msk.msra.mxu1 %vm7877_vm5, %v6566_v34  ;;  %v619_v57 = vld [vmem:[#allocation9 + $0x60] sm:$0x3f]  ;;  %v621_v61 = vld [vmem:[#allocation9 + $0x70] sm:$0x3f]  ;;  %v1015_v43 = vld [vmem:[#allocation9 + $0x68] sm:$0x3f] }
  0x69   :  { %6570 = vmatprep.subr.bf16.mxu0 %v7939_v42  ;;  %6580 = vmatprep.subr.bf16.mxu1 %v7941_v46  ;;  %v6576_v59 = vpack.c.bf16 %v619_v57, %v7956_v56  ;;  %v6586_v62 = vpack.c.bf16 %v621_v61, %v7960_v60  ;;  %v824_v39 = vld [vmem:[#allocation7 + $0x70] sm:$0x3f]  ;;  %v1017_v44 = vld [vmem:[#allocation9 + $0x78] sm:$0x3f]  ;;  %v6613_v45 = vpack.c.bf16 %v1015_v43, %v7950_v51  ;;  %v1014_v49 = vld [vmem:[#allocation9 + $0x60] sm:$0x3f] }
  0x6a   :  { %6123 = vmatmul.mubr.msk.f32.gmra.mrb[6].mxu0 %vm114_vm3, %v103_v35  ;;  %6132 = vmatmul.mubr.msk.f32.gmra.mrb[6].mxu1 %vm114_vm3, %v102_v32  ;;  %v825_v32 = vld [vmem:[#allocation7 + $0x78] sm:$0x3f]  ;;  %v6606_v41 = vpack.c.bf16 %v824_v39, %v7871_v29  ;;  %v6623_v48 = vpack.c.bf16 %v1017_v44, %v7952_v53  ;;  %v1016_v52 = vld [vmem:[#allocation9 + $0x70] sm:$0x3f] }
  0x6b   :  { %236 = vmatprep.mubr.f32.mxu0 %v7693_v1  ;;  %343 = vmatprep.mubr.f32.mxu1 %v7693_v1  ;;  %v6626_v55 = vpack.c.bf16 %v1016_v52, %v7960_v60  ;;  %v1411_v43 = vld [vmem:[#allocation9 + $0x70] sm:$0x3f] }
  0x6e   :  { %6124 = vmatmul.mubr.msk.f32.gmra.mrb[8].mxu0 %vm114_vm3, %v104_v36  ;;  %6133 = vmatmul.mubr.msk.f32.gmra.mrb[8].mxu1 %vm114_vm3, %v103_v35 }
  0x6f   :  { %242 = vmatprep.mubr.f32.mxu0 %v7693_v1  ;;  %349 = vmatprep.mubr.f32.mxu1 %v7693_v1 }
  0x72   :  { %6125 = vmatmul.mubr.msk.f32.gmra.mrb[10].mxu0 %vm114_vm3, %v105_v37  ;;  %6134 = vmatmul.mubr.msk.f32.gmra.mrb[10].mxu1 %vm114_vm3, %v104_v36  ;;  %v6593_v36 = vpack.c.bf16 %v823_v30, %v7850_v18 }
  0x73   :  { %248 = vmatprep.mubr.f32.mxu0 %v7693_v1  ;;  %355 = vmatprep.mubr.f32.mxu1 %v7693_v1 }
  0x76   :  { %6126 = vmatmul.mubr.msk.f32.gmra.mrb[12].mxu0 %vm114_vm3, %v106_v38  ;;  %6135 = vmatmul.mubr.msk.f32.gmra.mrb[12].mxu1 %vm114_vm3, %v105_v37  ;;  %v6603_v37 = vpack.c.bf16 %v825_v32, %v7865_v24 }
  0x77   :  { %361 = vmatprep.mubr.f32.mxu1 %v7693_v1  ;;  %507 = vmatprep.mubr.f32.mxu0 %v7693_v1 }
  0x7a   :  { %6136 = vmatmul.mubr.msk.f32.gmra.mrb[14].mxu1 %vm114_vm3, %v106_v38  ;;  %508 = vmatmul.mubr.f32.vlgmr.msra.gmra.mrb[0].mxu0 %v7693_v1  ;;  %v822_v38 = vld [vmem:[#allocation7 + $0x60] sm:$0x3f] }
  0x7b   :  { %367 = vmatprep.mubr.f32.mxu1 %v7693_v1  ;;  %724 = vmatprep.mubr.f32.mxu0 %v7693_v1  ;;  %v6596_v40 = vpack.c.bf16 %v822_v38, %v7863_v23  ;;  %v1412_v38 = vld [vmem:[#allocation9 + $0x78] sm:$0x3f] }
  0x7c   :  { %6572 = vmatpush1.bf16.msra.mxu0 %v7943_v47 }
  0x7d   :  { %6575 = vmatprep.subr.msk.bf16.mxu0 %vm7877_vm5, %v6573_v54  ;;  %v6616_v54 = vpack.c.bf16 %v1014_v49, %v7956_v56 }
  0x7e   :  { %6137 = vmatmul.mubr.msk.f32.gmra.mrb[16].mxu1 %vm114_vm3, %v7837_v8 }
  0x7f   :  { %578 = vmatprep.mubr.f32.mxu1 %v7693_v1 }
  0x80   :  { %6578 = vmatpush1.bf16.msk.msra.mxu0 %vm7877_vm5, %v6576_v59 }
  0x81   :  { %6590 = vmatprep.subr.bf16.mxu0 %v7839_v10 }
  0x82   :  { %579 = vmatmul.mubr.f32.vlgmr.msra.gmra.mrb[2].mxu1 %v7693_v1 }
  0x83   :  { %795 = vmatprep.mubr.f32.mxu1 %v7693_v1  ;;  %6582 = vmatpush1.bf16.msra.mxu1 %v7946_v50 }
  0x84   :  { %6585 = vmatprep.subr.msk.bf16.mxu1 %vm7877_vm5, %v6583_v58 }
  0x87   :  { %6588 = vmatpush1.bf16.msk.msra.mxu1 %vm7877_vm5, %v6586_v62 }
  0x88   :  { %6600 = vmatprep.subr.bf16.mxu1 %v7857_v21 }
 0x131   :  { %v7973_v63 = vpop.f32.mrb[0].mxu1 }
 0x132   :  { %v7975_v2 = vpop.f32.mrb[1].mxu1 }
 0x14d   :  { %v509_v3 = vpop.f32.mrb[0].mxu0 }
 0x14e   :  { %v589_v4 = vmul.f32 0.5, %v509_v3  ;;  %v511_v5 = vpop.f32.mrb[1].mxu0 }
 0x14f   :  { %v593_v6 = vmul.f32 0.5, %v511_v5 }
 0x150   :  { %7385 = vtanh.f32 %v589_v4 }
 0x151   :  { %7387 = vtanh.f32 %v593_v6 }
 0x155   :  { %v580_v7 = vpop.f32.mrb[2].mxu1 }
 0x156   :  { %7389 = vtanh.f32 %v580_v7  ;;  %v582_v8 = vpop.f32.mrb[3].mxu1 }
 0x157   :  { %v598_v9 = vmul.f32 0.5, %v582_v8 }
 0x159   :  { %7391 = vtanh.f32 %v598_v9 }
 0x15a   :  { %v7386_v11 = vpop.eup %7385 }
 0x15b   :  { %v7388_v12 = vpop.eup %7387  ;;  %v591_v14 = vmul.f32 0.5, %v7386_v11 }
 0x15c   :  { %v595_v15 = vmul.f32 0.5, %v7388_v12 }
 0x15d   :  { %v592_v17 = vadd.f32 0.5, %v591_v14 }
 0x15e   :  { %v596_v16 = vadd.f32 0.5, %v595_v15 }
 0x160   :  { %v7390_v19 = vpop.eup %7389  ;;  %v602_v20 = vmul.f32 0.0, %v596_v16 }
 0x161   :  { %v603_v25 = vmul.f32 %v7390_v19, %v592_v17 }
 0x163   :  { %v7977_v26 = vadd.f32 %v603_v25, %v602_v20  ;;  %v7392_v27 = vpop.eup %7391  ;;  %v1218_v20 = vld [vmem:[#allocation7 + $0x68] sm:$0x3f]  ;;  %v1220_v25 = vld [vmem:[#allocation7 + $0x78] sm:$0x3f] }
 0x164   :  { %v600_v28 = vmul.f32 0.5, %v7392_v27  ;;  %v6633_v32 = vpack.c.bf16 %v1218_v20, %v7850_v18 }
 0x165   :  { %7393 = vtanh.f32 %v7977_v26 }
 0x166   :  { %v601_v33 = vadd.f32 0.5, %v600_v28 }
 0x16f   :  { %v7394_v34 = vpop.eup %7393 }
 0x170   :  { %v606_v35 = vmul.f32 %v7394_v34, %v601_v33  ;;  %v6643_v33 = vpack.c.bf16 %v1220_v25, %v7865_v24  ;;  %v1217_v34 = vld [vmem:[#allocation7 + $0x60] sm:$0x3f] }
 0x172   :  { %6144 = vmatmul.mubr.msk.f32.vlgmr.msra.gmra.mrb[14].mxu0 %vm426_vm6, %v606_v35  ;;  %6147 = vmatmul.mubr.msk.f32.vlgmr.msra.gmra.mrb[18].mxu1 %vm426_vm6, %v606_v35 }
 0x173   :  { %6592 = vmatpush1.bf16.msra.mxu0 %v7843_v13  ;;  %6602 = vmatpush1.bf16.msra.mxu1 %v7861_v22 }
 0x174   :  { %6595 = vmatprep.subr.msk.bf16.mxu0 %vm7877_vm5, %v6593_v36  ;;  %6605 = vmatprep.subr.msk.bf16.mxu1 %vm7877_vm5, %v6603_v37  ;;  %v1410_v37 = vld [vmem:[#allocation9 + $0x68] sm:$0x3f] }
 0x175   :  { %902 = vmatprep.mubr.f32.mxu0 %v7693_v1  ;;  %973 = vmatprep.mubr.f32.mxu1 %v7693_v1  ;;  %v6653_v39 = vpack.c.bf16 %v1410_v37, %v7950_v51  ;;  %v1806_v37 = vld [vmem:[#allocation9 + $0x70] sm:$0x3f] }
 0x177   :  { %6598 = vmatpush1.bf16.msk.msra.mxu0 %vm7877_vm5, %v6596_v40  ;;  %6608 = vmatpush1.bf16.msk.msra.mxu1 %vm7877_vm5, %v6606_v41  ;;  %v6663_v40 = vpack.c.bf16 %v1412_v38, %v7952_v53  ;;  %v1409_v41 = vld [vmem:[#allocation9 + $0x60] sm:$0x3f] }
 0x178   :  { %6610 = vmatprep.subr.bf16.mxu0 %v7939_v42  ;;  %6620 = vmatprep.subr.bf16.mxu1 %v7941_v46  ;;  %v6656_v44 = vpack.c.bf16 %v1409_v41, %v7956_v56 }
 0x17a   :  { %6150 = vmatmul.mubr.msk.f32.vlgmr.msra.gmra.mrb[2].mxu0 %vm426_vm6, %v606_v35  ;;  %6153 = vmatmul.mubr.msk.f32.vlgmr.msra.gmra.mrb[4].mxu1 %vm426_vm6, %v606_v35  ;;  %v1219_v35 = vld [vmem:[#allocation7 + $0x70] sm:$0x3f] }
 0x17b   :  { %6612 = vmatpush1.bf16.msra.mxu0 %v7943_v47  ;;  %6622 = vmatpush1.bf16.msra.mxu1 %v7946_v50  ;;  %v6646_v36 = vpack.c.bf16 %v1219_v35, %v7871_v29 }
 0x17c   :  { %1119 = vmatprep.mubr.f32.mxu0 %v7693_v1  ;;  %1190 = vmatprep.mubr.f32.mxu1 %v7693_v1 }
 0x17d   :  { %6615 = vmatprep.subr.msk.bf16.mxu0 %vm7877_vm5, %v6613_v45  ;;  %6625 = vmatprep.subr.msk.bf16.mxu1 %vm7877_vm5, %v6623_v48  ;;  %v6666_v45 = vpack.c.bf16 %v1411_v43, %v7960_v60 }
 0x17f   :  { %6618 = vmatpush1.bf16.msk.msra.mxu0 %vm7877_vm5, %v6616_v54  ;;  %6628 = vmatpush1.bf16.msk.msra.mxu1 %vm7877_vm5, %v6626_v55 }
 0x180   :  { %6630 = vmatprep.subr.bf16.mxu0 %v7839_v10  ;;  %6640 = vmatprep.subr.bf16.mxu1 %v7857_v21 }
 0x24d   :  { %v904_v57 = vpop.f32.mrb[2].mxu0  ;;  %v975_v58 = vpop.f32.mrb[4].mxu1 }
 0x24e   :  { %v984_v59 = vmul.f32 0.5, %v904_v57  ;;  %v906_v61 = vpop.f32.mrb[3].mxu0  ;;  %v977_v62 = vpop.f32.mrb[5].mxu1 }
 0x24f   :  { %v988_v3 = vmul.f32 0.5, %v906_v61  ;;  %v993_v4 = vmul.f32 0.5, %v977_v62 }
 0x250   :  { %7395 = vtanh.f32 %v984_v59 }
 0x251   :  { %7397 = vtanh.f32 %v988_v3 }
 0x252   :  { %7399 = vtanh.f32 %v975_v58 }
 0x253   :  { %7401 = vtanh.f32 %v993_v4 }
 0x25a   :  { %v7396_v5 = vpop.eup %7395 }
 0x25b   :  { %v7398_v6 = vpop.eup %7397  ;;  %v986_v7 = vmul.f32 0.5, %v7396_v5 }
 0x25c   :  { %v990_v8 = vmul.f32 0.5, %v7398_v6  ;;  %v7400_v11 = vpop.eup %7399 }
 0x25d   :  { %v987_v9 = vadd.f32 0.5, %v986_v7  ;;  %v7402_v17 = vpop.eup %7401 }
 0x25e   :  { %v991_v12 = vadd.f32 0.5, %v990_v8  ;;  %v995_v19 = vmul.f32 0.5, %v7402_v17 }
 0x25f   :  { %v998_v14 = vmul.f32 %v7400_v11, %v987_v9 }
 0x260   :  { %v997_v15 = vmul.f32 %v991_v12, %v7977_v26  ;;  %v996_v27 = vadd.f32 0.5, %v995_v19  ;;  %v6636_v26 = vpack.c.bf16 %v1217_v34, %v7863_v23  ;;  %v1807_v34 = vld [vmem:[#allocation9 + $0x78] sm:$0x3f] }
 0x262   :  { %v8021_v16 = vadd.f32 %v998_v14, %v997_v15  ;;  %v1613_v14 = vld [vmem:[#allocation7 + $0x68] sm:$0x3f]  ;;  %v1615_v15 = vld [vmem:[#allocation7 + $0x78] sm:$0x3f] }
 0x263   :  { %v6673_v25 = vpack.c.bf16 %v1613_v14, %v7850_v18 }
 0x264   :  { %7403 = vtanh.f32 %v8021_v16 }
 0x26e   :  { %v7404_v28 = vpop.eup %7403 }
 0x26f   :  { %v1001_v30 = vmul.f32 %v7404_v28, %v996_v27  ;;  %v6683_v27 = vpack.c.bf16 %v1615_v15, %v7865_v24  ;;  %v1612_v28 = vld [vmem:[#allocation7 + $0x60] sm:$0x3f] }
 0x271   :  { %6156 = vmatmul.mubr.msk.f32.vlgmr.msra.gmra.mrb[16].mxu0 %vm426_vm6, %v1001_v30  ;;  %6159 = vmatmul.mubr.msk.f32.vlgmr.msra.gmra.mrb[20].mxu1 %vm426_vm6, %v1001_v30 }
 0x272   :  { %6632 = vmatpush1.bf16.msra.mxu0 %v7843_v13  ;;  %6642 = vmatpush1.bf16.msra.mxu1 %v7861_v22 }
 0x273   :  { %6635 = vmatprep.subr.msk.bf16.mxu0 %vm7877_vm5, %v6633_v32  ;;  %6645 = vmatprep.subr.msk.bf16.mxu1 %vm7877_vm5, %v6643_v33  ;;  %v1805_v33 = vld [vmem:[#allocation9 + $0x68] sm:$0x3f] }
 0x274   :  { %1297 = vmatprep.mubr.f32.mxu0 %v7693_v1  ;;  %1368 = vmatprep.mubr.f32.mxu1 %v7693_v1  ;;  %v6693_v35 = vpack.c.bf16 %v1805_v33, %v7950_v51 }
 0x276   :  { %6638 = vmatpush1.bf16.msk.msra.mxu0 %vm7877_vm5, %v6636_v26  ;;  %6648 = vmatpush1.bf16.msk.msra.mxu1 %vm7877_vm5, %v6646_v36  ;;  %v6703_v26 = vpack.c.bf16 %v1807_v34, %v7952_v53  ;;  %v1804_v36 = vld [vmem:[#allocation9 + $0x60] sm:$0x3f] }
 0x277   :  { %6650 = vmatprep.subr.bf16.mxu0 %v7939_v42  ;;  %6660 = vmatprep.subr.bf16.mxu1 %v7941_v46  ;;  %v6696_v38 = vpack.c.bf16 %v1804_v36, %v7956_v56 }
 0x279   :  { %6162 = vmatmul.mubr.msk.f32.vlgmr.msra.gmra.mrb[4].mxu0 %vm426_vm6, %v1001_v30  ;;  %6165 = vmatmul.mubr.msk.f32.vlgmr.msra.gmra.mrb[6].mxu1 %vm426_vm6, %v1001_v30  ;;  %v1614_v30 = vld [vmem:[#allocation7 + $0x70] sm:$0x3f] }
 0x27a   :  { %6652 = vmatpush1.bf16.msra.mxu0 %v7943_v47  ;;  %6662 = vmatpush1.bf16.msra.mxu1 %v7946_v50  ;;  %v6686_v32 = vpack.c.bf16 %v1614_v30, %v7871_v29 }
 0x27b   :  { %1514 = vmatprep.mubr.f32.mxu0 %v7693_v1  ;;  %1585 = vmatprep.mubr.f32.mxu1 %v7693_v1 }
 0x27c   :  { %6655 = vmatprep.subr.msk.bf16.mxu0 %vm7877_vm5, %v6653_v39  ;;  %6665 = vmatprep.subr.msk.bf16.mxu1 %vm7877_vm5, %v6663_v40  ;;  %v6706_v39 = vpack.c.bf16 %v1806_v37, %v7960_v60 }
 0x27e   :  { %6658 = vmatpush1.bf16.msk.msra.mxu0 %vm7877_vm5, %v6656_v44  ;;  %6668 = vmatpush1.bf16.msk.msra.mxu1 %vm7877_vm5, %v6666_v45 }
 0x27f   :  { %6670 = vmatprep.subr.bf16.mxu0 %v7839_v10  ;;  %6680 = vmatprep.subr.bf16.mxu1 %v7857_v21 }
 0x34c   :  { %v1299_v48 = vpop.f32.mrb[4].mxu0  ;;  %v1370_v49 = vpop.f32.mrb[6].mxu1 }
 0x34d   :  { %v1379_v52 = vmul.f32 0.5, %v1299_v48  ;;  %v1301_v54 = vpop.f32.mrb[5].mxu0  ;;  %v1372_v55 = vpop.f32.mrb[7].mxu1 }
 0x34e   :  { %v1383_v57 = vmul.f32 0.5, %v1301_v54  ;;  %v1388_v58 = vmul.f32 0.5, %v1372_v55 }
 0x34f   :  { %7405 = vtanh.f32 %v1379_v52 }
 0x350   :  { %7407 = vtanh.f32 %v1383_v57 }
 0x351   :  { %7409 = vtanh.f32 %v1370_v49 }
 0x352   :  { %7411 = vtanh.f32 %v1388_v58 }
 0x359   :  { %v7406_v59 = vpop.eup %7405 }
 0x35a   :  { %v7408_v61 = vpop.eup %7407  ;;  %v1381_v62 = vmul.f32 0.5, %v7406_v59 }
 0x35b   :  { %v1385_v3 = vmul.f32 0.5, %v7408_v61  ;;  %v7410_v5 = vpop.eup %7409 }
 0x35c   :  { %v1382_v4 = vadd.f32 0.5, %v1381_v62  ;;  %v7412_v11 = vpop.eup %7411 }
 0x35d   :  { %v1386_v6 = vadd.f32 0.5, %v1385_v3  ;;  %v1390_v12 = vmul.f32 0.5, %v7412_v11 }
 0x35e   :  { %v1393_v7 = vmul.f32 %v7410_v5, %v1382_v4 }
 0x35f   :  { %v1392_v8 = vmul.f32 %v1386_v6, %v8021_v16  ;;  %v1391_v17 = vadd.f32 0.5, %v1390_v12  ;;  %v6676_v16 = vpack.c.bf16 %v1612_v28, %v7863_v23 }
 0x361   :  { %v8065_v9 = vadd.f32 %v1393_v7, %v1392_v8  ;;  %v2008_v7 = vld [vmem:[#allocation7 + $0x68] sm:$0x3f]  ;;  %v2010_v8 = vld [vmem:[#allocation7 + $0x78] sm:$0x3f] }
 0x362   :  { %v6713_v15 = vpack.c.bf16 %v2008_v7, %v7850_v18 }
 0x363   :  { %7413 = vtanh.f32 %v8065_v9 }
 0x36d   :  { %v7414_v19 = vpop.eup %7413 }
 0x36e   :  { %v1396_v20 = vmul.f32 %v7414_v19, %v1391_v17  ;;  %v6723_v17 = vpack.c.bf16 %v2010_v8, %v7865_v24  ;;  %v2007_v19 = vld [vmem:[#allocation7 + $0x60] sm:$0x3f] }
 0x370   :  { %6168 = vmatmul.mubr.msk.f32.vlgmr.msra.gmra.mrb[18].mxu0 %vm426_vm6, %v1396_v20  ;;  %6171 = vmatmul.mubr.msk.f32.vlgmr.msra.gmra.mrb[22].mxu1 %vm426_vm6, %v1396_v20 }
 0x371   :  { %6672 = vmatpush1.bf16.msra.mxu0 %v7843_v13  ;;  %6682 = vmatpush1.bf16.msra.mxu1 %v7861_v22 }
 0x372   :  { %6675 = vmatprep.subr.msk.bf16.mxu0 %vm7877_vm5, %v6673_v25  ;;  %6685 = vmatprep.subr.msk.bf16.mxu1 %vm7877_vm5, %v6683_v27  ;;  %v2202_v27 = vld [vmem:[#allocation9 + $0x78] sm:$0x3f] }
 0x373   :  { %1692 = vmatprep.mubr.f32.mxu0 %v7693_v1  ;;  %1763 = vmatprep.mubr.f32.mxu1 %v7693_v1  ;;  %v6743_v30 = vpack.c.bf16 %v2202_v27, %v7952_v53 }
 0x375   :  { %6678 = vmatpush1.bf16.msk.msra.mxu0 %vm7877_vm5, %v6676_v16  ;;  %6688 = vmatpush1.bf16.msk.msra.mxu1 %vm7877_vm5, %v6686_v32  ;;  %v2199_v16 = vld [vmem:[#allocation9 + $0x60] sm:$0x3f]  ;;  %v2201_v32 = vld [vmem:[#allocation9 + $0x70] sm:$0x3f] }
 0x376   :  { %6690 = vmatprep.subr.bf16.mxu0 %v7939_v42  ;;  %6700 = vmatprep.subr.bf16.mxu1 %v7941_v46  ;;  %v6736_v33 = vpack.c.bf16 %v2199_v16, %v7956_v56  ;;  %v6746_v34 = vpack.c.bf16 %v2201_v32, %v7960_v60 }
 0x378   :  { %6174 = vmatmul.mubr.msk.f32.vlgmr.msra.gmra.mrb[6].mxu0 %vm426_vm6, %v1396_v20  ;;  %6177 = vmatmul.mubr.msk.f32.vlgmr.msra.gmra.mrb[8].mxu1 %vm426_vm6, %v1396_v20  ;;  %v2009_v20 = vld [vmem:[#allocation7 + $0x70] sm:$0x3f] }
 0x379   :  { %6692 = vmatpush1.bf16.msra.mxu0 %v7943_v47  ;;  %6702 = vmatpush1.bf16.msra.mxu1 %v7946_v50  ;;  %v6726_v25 = vpack.c.bf16 %v2009_v20, %v7871_v29 }
 0x37a   :  { %1909 = vmatprep.mubr.f32.mxu0 %v7693_v1  ;;  %1980 = vmatprep.mubr.f32.mxu1 %v7693_v1 }
 0x37b   :  { %6695 = vmatprep.subr.msk.bf16.mxu0 %vm7877_vm5, %v6693_v35  ;;  %6705 = vmatprep.subr.msk.bf16.mxu1 %vm7877_vm5, %v6703_v26 }
 0x37d   :  { %6698 = vmatpush1.bf16.msk.msra.mxu0 %vm7877_vm5, %v6696_v38  ;;  %6708 = vmatpush1.bf16.msk.msra.mxu1 %vm7877_vm5, %v6706_v39 }
 0x37e   :  { %6710 = vmatprep.subr.bf16.mxu0 %v7839_v10  ;;  %6720 = vmatprep.subr.bf16.mxu1 %v7857_v21 }
 0x44b   :  { %v1694_v40 = vpop.f32.mrb[6].mxu0  ;;  %v1765_v41 = vpop.f32.mrb[8].mxu1 }
 0x44c   :  { %v1774_v43 = vmul.f32 0.5, %v1694_v40  ;;  %v1696_v44 = vpop.f32.mrb[7].mxu0  ;;  %v1767_v45 = vpop.f32.mrb[9].mxu1 }
 0x44d   :  { %v1778_v48 = vmul.f32 0.5, %v1696_v44  ;;  %v1783_v49 = vmul.f32 0.5, %v1767_v45 }
 0x44e   :  { %7415 = vtanh.f32 %v1774_v43 }
 0x44f   :  { %7417 = vtanh.f32 %v1778_v48 }
 0x450   :  { %7419 = vtanh.f32 %v1765_v41 }
 0x451   :  { %7421 = vtanh.f32 %v1783_v49 }
 0x458   :  { %v7416_v52 = vpop.eup %7415 }
 0x459   :  { %v7418_v54 = vpop.eup %7417  ;;  %v1776_v55 = vmul.f32 0.5, %v7416_v52 }
 0x45a   :  { %v1780_v57 = vmul.f32 0.5, %v7418_v54  ;;  %v7420_v59 = vpop.eup %7419 }
 0x45b   :  { %v1777_v58 = vadd.f32 0.5, %v1776_v55  ;;  %v7422_v5 = vpop.eup %7421 }
 0x45c   :  { %v1781_v61 = vadd.f32 0.5, %v1780_v57  ;;  %v1785_v6 = vmul.f32 0.5, %v7422_v5 }
 0x45d   :  { %v1788_v62 = vmul.f32 %v7420_v59, %v1777_v58  ;;  %v2390_v58 = vld [vmem:[#allocation7] sm:$0xff] }
 0x45e   :  { %v1787_v3 = vmul.f32 %v1781_v61, %v8065_v9  ;;  %v1786_v11 = vadd.f32 0.5, %v1785_v6  ;;  %v6716_v9 = vpack.c.bf16 %v2007_v19, %v7863_v23  ;;  %v2394_v59 = vld [vmem:[#allocation7 + $0x20] sm:$0xff]  ;;  %v2403_v61 = vld [vmem:[#allocation7 + $0x68] sm:$0x3f] }
 0x45f   :  { %v8156_v6 = vpack.c.bf16 %v2394_v59, %v2390_v58  ;;  %v6753_v8 = vpack.c.bf16 %v2403_v61, %v7850_v18  ;;  %v2595_v18 = vld [vmem:[#allocation9 + $0x68] sm:$0x3f]  ;;  %v2797_v59 = vld [vmem:[#allocation7 + $0x60] sm:$0x3f]  ;;  %v8216_v61 = vld [vmem:[#allocation7 + $0x50] sm:$0xff] }
 0x460   :  { %v8109_v4 = vadd.f32 %v1788_v62, %v1787_v3  ;;  %v2405_v62 = vld [vmem:[#allocation7 + $0x78] sm:$0x3f] }
 0x462   :  { %7423 = vtanh.f32 %v8109_v4 }
 0x46c   :  { %v7424_v12 = vpop.eup %7423 }
 0x46d   :  { %v1791_v14 = vmul.f32 %v7424_v12, %v1786_v11  ;;  %v6763_v11 = vpack.c.bf16 %v2405_v62, %v7865_v24  ;;  %v2404_v12 = vld [vmem:[#allocation7 + $0x70] sm:$0x3f] }
 0x46e   :  { %v2799_v62 = vld [vmem:[#allocation7 + $0x70] sm:$0x3f] }
 0x46f   :  { %6180 = vmatmul.mubr.msk.f32.vlgmr.msra.gmra.mrb[20].mxu0 %vm426_vm6, %v1791_v14  ;;  %6183 = vmatmul.mubr.msk.f32.vlgmr.msra.gmra.mrb[24].mxu1 %vm426_vm6, %v1791_v14 }
 0x470   :  { %6712 = vmatpush1.bf16.msra.mxu0 %v7843_v13  ;;  %6722 = vmatpush1.bf16.msra.mxu1 %v7861_v22  ;;  %v2200_v13 = vld [vmem:[#allocation9 + $0x68] sm:$0x3f] }
 0x471   :  { %6715 = vmatprep.subr.msk.bf16.mxu0 %vm7877_vm5, %v6713_v15  ;;  %6725 = vmatprep.subr.msk.bf16.mxu1 %vm7877_vm5, %v6723_v17  ;;  %v6733_v28 = vpack.c.bf16 %v2200_v13, %v7950_v51  ;;  %v6766_v15 = vpack.c.bf16 %v2404_v12, %v7871_v29  ;;  %v2594_v29 = vld [vmem:[#allocation9 + $0x60] sm:$0x3f]  ;;  %v2984_v12 = vld [vmem:[#allocation9 + $0x38] sm:$0xff] }
 0x472   :  { %2087 = vmatprep.mubr.f32.mxu0 %v7693_v1  ;;  %2158 = vmatprep.mubr.f32.mxu1 %v7693_v1 }
 0x474   :  { %6718 = vmatpush1.bf16.msk.msra.mxu0 %vm7877_vm5, %v6716_v9  ;;  %6728 = vmatpush1.bf16.msk.msra.mxu1 %vm7877_vm5, %v6726_v25 }
 0x475   :  { %6730 = vmatprep.subr.bf16.mxu0 %v7939_v42  ;;  %6740 = vmatprep.subr.bf16.mxu1 %v7941_v46 }
 0x477   :  { %6186 = vmatmul.mubr.msk.f32.vlgmr.msra.gmra.mrb[8].mxu0 %vm426_vm6, %v1791_v14  ;;  %6189 = vmatmul.mubr.msk.f32.vlgmr.msra.gmra.mrb[10].mxu1 %vm426_vm6, %v1791_v14 }
 0x478   :  { %6732 = vmatpush1.bf16.msra.mxu0 %v7943_v47  ;;  %6742 = vmatpush1.bf16.msra.mxu1 %v7946_v50 }
 0x479   :  { %2304 = vmatprep.mubr.f32.mxu0 %v7693_v1  ;;  %2375 = vmatprep.mubr.f32.mxu1 %v7693_v1 }
 0x47a   :  { %6735 = vmatprep.subr.msk.bf16.mxu0 %vm7877_vm5, %v6733_v28  ;;  %6745 = vmatprep.subr.msk.bf16.mxu1 %vm7877_vm5, %v6743_v30 }
 0x47c   :  { %6738 = vmatpush1.bf16.msk.msra.mxu0 %vm7877_vm5, %v6736_v33  ;;  %6748 = vmatpush1.bf16.msk.msra.mxu1 %vm7877_vm5, %v6746_v34 }
 0x47d   :  { %6750 = vmatprep.subr.bf16.mxu0 %v7839_v10  ;;  %6760 = vmatprep.subr.bf16.mxu1 %v7857_v21 }
 0x54a   :  { %v2089_v35 = vpop.f32.mrb[8].mxu0  ;;  %v2160_v26 = vpop.f32.mrb[10].mxu1 }
 0x54b   :  { %v2169_v36 = vmul.f32 0.5, %v2089_v35  ;;  %v2091_v37 = vpop.f32.mrb[9].mxu0  ;;  %v2162_v38 = vpop.f32.mrb[11].mxu1 }
 0x54c   :  { %v2173_v39 = vmul.f32 0.5, %v2091_v37  ;;  %v2178_v40 = vmul.f32 0.5, %v2162_v38 }
 0x54d   :  { %7425 = vtanh.f32 %v2169_v36 }
 0x54e   :  { %7427 = vtanh.f32 %v2173_v39 }
 0x54f   :  { %7429 = vtanh.f32 %v2160_v26 }
 0x550   :  { %7431 = vtanh.f32 %v2178_v40 }
 0x557   :  { %v7426_v41 = vpop.eup %7425 }
 0x558   :  { %v7428_v43 = vpop.eup %7427  ;;  %v2171_v44 = vmul.f32 0.5, %v7426_v41  ;;  %v2787_v41 = vld [vmem:[#allocation7 + $0x10] sm:$0xff] }
 0x559   :  { %v2175_v45 = vmul.f32 0.5, %v7428_v43  ;;  %v7430_v49 = vpop.eup %7429  ;;  %v2791_v43 = vld [vmem:[#allocation7 + $0x30] sm:$0xff] }
 0x55a   :  { %v2172_v48 = vadd.f32 0.5, %v2171_v44  ;;  %v7432_v55 = vpop.eup %7431  ;;  %v8206_v44 = vld [vmem:[#allocation7 + $0x48] sm:$0xff] }
 0x55b   :  { %v2176_v10 = vadd.f32 0.5, %v2175_v45  ;;  %v2180_v57 = vmul.f32 0.5, %v7432_v55  ;;  %v2798_v45 = vld [vmem:[#allocation7 + $0x68] sm:$0x3f]  ;;  %v8212_v55 = vld [vmem:[#allocation7 + $0x40] sm:$0xff] }
 0x55c   :  { %v2183_v52 = vmul.f32 %v7430_v49, %v2172_v48  ;;  %v8208_v48 = vld [vmem:[#allocation7 + $0x58] sm:$0xff] }
 0x55d   :  { %v2182_v21 = vmul.f32 %v2176_v10, %v8109_v4  ;;  %v2181_v3 = vadd.f32 0.5, %v2180_v57  ;;  %v2402_v4 = vld [vmem:[#allocation7 + $0x60] sm:$0x3f]  ;;  %v2800_v49 = vld [vmem:[#allocation7 + $0x78] sm:$0x3f]  ;;  %v6793_v57 = vpack.c.bf16 %v2798_v45, %v8206_v44 }
 0x55e   :  { %v6756_v14 = vpack.c.bf16 %v2402_v4, %v7863_v23  ;;  %v6773_v23 = vpack.c.bf16 %v2595_v18, %v7950_v51  ;;  %v2788_v51 = vld [vmem:[#allocation7 + $0x18] sm:$0xff]  ;;  %v6803_v58 = vpack.c.bf16 %v2800_v49, %v8208_v48 }
 0x55f   :  { %v8153_v54 = vadd.f32 %v2183_v52, %v2182_v21  ;;  %v8210_v21 = vpack.c.bf16 %v2791_v43, %v2787_v41 }
 0x561   :  { %7433 = vtanh.f32 %v8153_v54 }
 0x56b   :  { %v7434_v5 = vpop.eup %7433 }
 0x56c   :  { %v2186_v7 = vmul.f32 %v7434_v5, %v2181_v3  ;;  %v6796_v3 = vpack.c.bf16 %v2797_v59, %v8212_v55  ;;  %v6806_v5 = vpack.c.bf16 %v2799_v62, %v8216_v61 }
 0x56e   :  { %6192 = vmatmul.mubr.msk.f32.vlgmr.msra.gmra.mrb[22].mxu0 %vm426_vm6, %v2186_v7  ;;  %6195 = vmatmul.mubr.msk.f32.vlgmr.msra.gmra.mrb[26].mxu1 %vm426_vm6, %v2186_v7 }
 0x56f   :  { %6752 = vmatpush1.bf16.msra.mxu0 %v8156_v6  ;;  %6762 = vmatpush1.bf16.msra.mxu1 %v7861_v22  ;;  %v2597_v22 = vld [vmem:[#allocation9 + $0x78] sm:$0x3f] }
 0x570   :  { %6755 = vmatprep.subr.msk.bf16.mxu0 %vm7877_vm5, %v6753_v8  ;;  %6765 = vmatprep.subr.msk.bf16.mxu1 %vm7877_vm5, %v6763_v11  ;;  %v6783_v24 = vpack.c.bf16 %v2597_v22, %v7952_v53  ;;  %v2982_v8 = vld [vmem:[#allocation9 + $0x28] sm:$0xff]  ;;  %v2980_v11 = vld [vmem:[#allocation9 + $0x18] sm:$0xff] }
 0x571   :  { %2482 = vmatprep.mubr.f32.mxu0 %v7693_v1  ;;  %2553 = vmatprep.mubr.f32.mxu1 %v7693_v1  ;;  %v8240_v18 = vpack.c.bf16 %v2984_v12, %v2980_v11  ;;  %v3572_v12 = vld [vmem:[%s8918_s3 + $0x8] sm:$0xff] }
 0x573   :  { %6758 = vmatpush1.bf16.msk.msra.mxu0 %vm7877_vm5, %v6756_v14  ;;  %6768 = vmatpush1.bf16.msk.msra.mxu1 %vm7877_vm5, %v6766_v15  ;;  %v2977_v14 = vld [vmem:[#allocation9] sm:$0xff] }
 0x574   :  { %6770 = vmatprep.subr.bf16.mxu0 %v7939_v42  ;;  %6780 = vmatprep.subr.bf16.mxu1 %v7941_v46  ;;  %v2596_v42 = vld [vmem:[#allocation9 + $0x70] sm:$0x3f]  ;;  %v6776_v46 = vpack.c.bf16 %v2594_v29, %v7956_v56  ;;  %v2792_v56 = vld [vmem:[#allocation7 + $0x38] sm:$0xff]  ;;  %v2981_v15 = vld [vmem:[#allocation9 + $0x20] sm:$0xff] }
 0x575   :  { %v6786_v17 = vpack.c.bf16 %v2596_v42, %v7960_v60  ;;  %v8198_v19 = vpack.c.bf16 %v2792_v56, %v2788_v51  ;;  %v8242_v22 = vpack.c.bf16 %v2981_v15, %v2977_v14  ;;  %v8249_v42 = vld [vmem:[#allocation9 + $0x48] sm:$0xff]  ;;  %v8255_v51 = vld [vmem:[#allocation9 + $0x40] sm:$0xff] }
 0x576   :  { %6198 = vmatmul.mubr.msk.f32.vlgmr.msra.gmra.mrb[10].mxu0 %vm426_vm6, %v2186_v7  ;;  %6201 = vmatmul.mubr.msk.f32.vlgmr.msra.gmra.mrb[12].mxu1 %vm426_vm6, %v2186_v7  ;;  %v2978_v7 = vld [vmem:[#allocation9 + $0x8] sm:$0xff]  ;;  %v2989_v56 = vld [vmem:[#allocation9 + $0x60] sm:$0x3f] }
 0x577   :  { %6772 = vmatpush1.bf16.msra.mxu0 %v7943_v47  ;;  %6782 = vmatpush1.bf16.msra.mxu1 %v7946_v50  ;;  %v2786_v47 = vld [vmem:[#allocation7 + $0x8] sm:$0xff]  ;;  %v8238_v4 = vpack.c.bf16 %v2982_v8, %v2978_v7  ;;  %v3386_v8 = vld [vmem:[#allocation9 + $0x70] sm:$0x3f]  ;;  %v3670_v15 = vld [vmem:[#allocation12 + $0x18] sm:$0xff] }
 0x578   :  { %2699 = vmatprep.mubr.f32.mxu0 %v7693_v1  ;;  %2770 = vmatprep.mubr.f32.mxu1 %v7693_v1  ;;  %v2790_v50 = vld [vmem:[#allocation7 + $0x28] sm:$0xff] }
 0x579   :  { %6775 = vmatprep.subr.msk.bf16.mxu0 %vm7877_vm5, %v6773_v23  ;;  %6785 = vmatprep.subr.msk.bf16.mxu1 %vm7877_vm5, %v6783_v24  ;;  %v8196_v53 = vpack.c.bf16 %v2790_v50, %v2786_v47  ;;  %v2979_v23 = vld [vmem:[#allocation9 + $0x10] sm:$0xff]  ;;  %v2992_v50 = vld [vmem:[#allocation9 + $0x78] sm:$0x3f] }
 0x57a   :  { %v2983_v24 = vld [vmem:[#allocation9 + $0x30] sm:$0xff] }
 0x57b   :  { %6778 = vmatpush1.bf16.msk.msra.mxu0 %vm7877_vm5, %v6776_v46  ;;  %6788 = vmatpush1.bf16.msk.msra.mxu1 %vm7877_vm5, %v6786_v17  ;;  %v8245_v29 = vpack.c.bf16 %v2983_v24, %v2979_v23  ;;  %v2990_v46 = vld [vmem:[#allocation9 + $0x68] sm:$0x3f]  ;;  %v8251_v17 = vld [vmem:[#allocation9 + $0x58] sm:$0xff] }
 0x57c   :  { %6790 = vmatprep.subr.bf16.mxu0 %v8196_v53  ;;  %6800 = vmatprep.subr.bf16.mxu1 %v8198_v19  ;;  %v6813_v47 = vpack.c.bf16 %v2990_v46, %v8249_v42 }
 0x649   :  { %v2484_v60 = vpop.f32.mrb[10].mxu0  ;;  %v2555_v20 = vpop.f32.mrb[12].mxu1 }
 0x64a   :  { %v2564_v9 = vmul.f32 0.5, %v2484_v60  ;;  %v2486_v25 = vpop.f32.mrb[11].mxu0  ;;  %v2557_v13 = vpop.f32.mrb[13].mxu1  ;;  %v6823_v60 = vpack.c.bf16 %v2992_v50, %v8251_v17 }
 0x64b   :  { %v2568_v27 = vmul.f32 0.5, %v2486_v25  ;;  %v2573_v28 = vmul.f32 0.5, %v2557_v13  ;;  %v2991_v25 = vld [vmem:[#allocation9 + $0x70] sm:$0x3f] }
 0x64c   :  { %7435 = vtanh.f32 %v2564_v9  ;;  %v8259_v9 = vld [vmem:[#allocation9 + $0x50] sm:$0xff] }
 0x64d   :  { %7437 = vtanh.f32 %v2568_v27  ;;  %v6826_v13 = vpack.c.bf16 %v2991_v25, %v8259_v9  ;;  %v6866_v11 = vpack.c.bf16 %v3386_v8, %v8259_v9  ;;  %v3684_v8 = vld [vmem:[#allocation12 + $0x88] sm:$0xff] }
 0x64e   :  { %7439 = vtanh.f32 %v2555_v20  ;;  %v6816_v20 = vpack.c.bf16 %v2989_v56, %v8255_v51 }
 0x64f   :  { %7441 = vtanh.f32 %v2573_v28 }
 0x656   :  { %v7436_v30 = vpop.eup %7435 }
 0x657   :  { %v7438_v16 = vpop.eup %7437  ;;  %v2566_v32 = vmul.f32 0.5, %v7436_v30 }
 0x658   :  { %v2570_v33 = vmul.f32 0.5, %v7438_v16  ;;  %v7440_v35 = vpop.eup %7439 }
 0x659   :  { %v2567_v34 = vadd.f32 0.5, %v2566_v32  ;;  %v7442_v39 = vpop.eup %7441 }
 0x65a   :  { %v2571_v26 = vadd.f32 0.5, %v2570_v33  ;;  %v2575_v40 = vmul.f32 0.5, %v7442_v39 }
 0x65b   :  { %v2578_v36 = vmul.f32 %v7440_v35, %v2567_v34 }
 0x65c   :  { %v2577_v37 = vmul.f32 %v2571_v26, %v8153_v54  ;;  %v2576_v10 = vadd.f32 0.5, %v2575_v40 }
 0x65e   :  { %v8203_v38 = vadd.f32 %v2578_v36, %v2577_v37 }
 0x660   :  { %7443 = vtanh.f32 %v8203_v38 }
 0x66a   :  { %v7444_v52 = vpop.eup %7443 }
 0x66b   :  { %v2581_v54 = vmul.f32 %v7444_v52, %v2576_v10  ;;  %v3193_v10 = vld [vmem:[#allocation7 + $0x68] sm:$0x3f]  ;;  %v3195_v52 = vld [vmem:[#allocation7 + $0x78] sm:$0x3f] }
 0x66c   :  { %v6833_v59 = vpack.c.bf16 %v3193_v10, %v8206_v44  ;;  %v6843_v62 = vpack.c.bf16 %v3195_v52, %v8208_v48  ;;  %v3384_v48 = vld [vmem:[#allocation9 + $0x60] sm:$0x3f]  ;;  %v3681_v10 = vld [vmem:[#allocation12 + $0x70] sm:$0xff] }
 0x66d   :  { %6204 = vmatmul.mubr.msk.f32.vlgmr.msra.gmra.mrb[24].mxu0 %vm426_vm6, %v2581_v54  ;;  %6207 = vmatmul.mubr.msk.f32.vlgmr.msra.gmra.mrb[28].mxu1 %vm426_vm6, %v2581_v54  ;;  %v3686_v52 = vld [vmem:[#allocation12 + $0x98] sm:$0xff] }
 0x66e   :  { %6792 = vmatpush1.bf16.msra.mxu0 %v8156_v6  ;;  %6802 = vmatpush1.bf16.msra.mxu1 %v8210_v21 }
 0x66f   :  { %6795 = vmatprep.subr.msk.bf16.mxu0 %vm7877_vm5, %v6793_v57  ;;  %6805 = vmatprep.subr.msk.bf16.mxu1 %vm7877_vm5, %v6803_v58 }
 0x670   :  { %2877 = vmatprep.mubr.f32.mxu0 %v7693_v1  ;;  %2948 = vmatprep.mubr.f32.mxu1 %v7693_v1 }
 0x672   :  { %6798 = vmatpush1.bf16.msk.msra.mxu0 %vm7877_vm5, %v6796_v3  ;;  %6808 = vmatpush1.bf16.msk.msra.mxu1 %vm7877_vm5, %v6806_v5  ;;  %v3192_v3 = vld [vmem:[#allocation7 + $0x60] sm:$0x3f]  ;;  %v3194_v5 = vld [vmem:[#allocation7 + $0x70] sm:$0x3f] }
 0x673   :  { %6810 = vmatprep.subr.bf16.mxu0 %v8238_v4  ;;  %6820 = vmatprep.subr.bf16.mxu1 %v8240_v18  ;;  %v6846_v7 = vpack.c.bf16 %v3194_v5, %v8216_v61  ;;  %v3680_v5 = vld [vmem:[#allocation12 + $0x68] sm:$0xff] }
 0x675   :  { %6210 = vmatmul.mubr.msk.f32.vlgmr.msra.gmra.mrb[12].mxu0 %vm426_vm6, %v2581_v54  ;;  %6213 = vmatmul.mubr.msk.f32.vlgmr.msra.gmra.mrb[14].mxu1 %vm426_vm6, %v2581_v54 }
 0x676   :  { %3094 = vmatprep.mubr.f32.mxu0 %v7693_v1  ;;  %3165 = vmatprep.mubr.f32.mxu1 %v7693_v1 }
 0x677   :  { %6812 = vmatpush1.bf16.msra.mxu0 %v8242_v22  ;;  %6822 = vmatpush1.bf16.msra.mxu1 %v8245_v29 }
 0x678   :  { %6815 = vmatprep.subr.msk.bf16.mxu0 %vm7877_vm5, %v6813_v47  ;;  %6825 = vmatprep.subr.msk.bf16.mxu1 %vm7877_vm5, %v6823_v60 }
 0x67b   :  { %6818 = vmatpush1.bf16.msk.msra.mxu0 %vm7877_vm5, %v6816_v20  ;;  %6828 = vmatpush1.bf16.msk.msra.mxu1 %vm7877_vm5, %v6826_v13 }
 0x67c   :  { %6830 = vmatprep.subr.bf16.mxu0 %v8196_v53  ;;  %6840 = vmatprep.subr.bf16.mxu1 %v8198_v19 }
 0x748   :  { %v2879_v27 = vpop.f32.mrb[12].mxu0  ;;  %v2950_v28 = vpop.f32.mrb[14].mxu1 }
 0x749   :  { %v2959_v30 = vmul.f32 0.5, %v2879_v27  ;;  %v2881_v16 = vpop.f32.mrb[13].mxu0  ;;  %v2952_v32 = vpop.f32.mrb[15].mxu1 }
 0x74a   :  { %v2963_v33 = vmul.f32 0.5, %v2881_v16  ;;  %v2968_v34 = vmul.f32 0.5, %v2952_v32  ;;  %v3573_v32 = vld [vmem:[%s8918_s3 + $0x10] sm:$0xff] }
 0x74b   :  { %7445 = vtanh.f32 %v2959_v30 }
 0x74c   :  { %7447 = vtanh.f32 %v2963_v33  ;;  %v3574_v33 = vld [vmem:[%s8918_s3 + $0x18] sm:$0x3f] }
 0x74d   :  { %7449 = vtanh.f32 %v2950_v28 }
 0x74e   :  { %7451 = vtanh.f32 %v2968_v34  ;;  %v3669_v34 = vld [vmem:[#allocation12 + $0x10] sm:$0xff] }
 0x755   :  { %v7446_v35 = vpop.eup %7445 }
 0x756   :  { %v7448_v26 = vpop.eup %7447  ;;  %v2961_v36 = vmul.f32 0.5, %v7446_v35  ;;  %v3673_v35 = vld [vmem:[#allocation12 + $0x30] sm:$0xff] }
 0x757   :  { %v2965_v37 = vmul.f32 0.5, %v7448_v26  ;;  %v7450_v40 = vpop.eup %7449 }
 0x758   :  { %v2962_v39 = vadd.f32 0.5, %v2961_v36  ;;  %v7452_v45 = vpop.eup %7451  ;;  %v3678_v36 = vld [vmem:[#allocation12 + $0x58] sm:$0xff] }
 0x759   :  { %v2966_v53 = vadd.f32 0.5, %v2965_v37  ;;  %v2970_v49 = vmul.f32 0.5, %v7452_v45  ;;  %v3682_v37 = vld [vmem:[#allocation12 + $0x78] sm:$0xff] }
 0x75a   :  { %v2973_v41 = vmul.f32 %v7450_v40, %v2962_v39  ;;  %v8334_v45 = vpack.c.bf16 %v3682_v37, %v3678_v36  ;;  %v8443_v36 = vld [vmem:[%s8923_s8 + $0x30] sm:$0xff]  ;;  %v3886_v37 = vld [vmem:[%s8923_s8 + $0x38] sm:$0xf] }
 0x75b   :  { %v2972_v19 = vmul.f32 %v2966_v53, %v8203_v38  ;;  %v2971_v54 = vadd.f32 0.5, %v2970_v49  ;;  %v6836_v38 = vpack.c.bf16 %v3192_v3, %v8212_v55  ;;  %v6856_v55 = vpack.c.bf16 %v3384_v48, %v8255_v51  ;;  %v3677_v49 = vld [vmem:[#allocation12 + $0x50] sm:$0xff] }
 0x75c   :  { %v6873_v53 = vpack.c.bf16 %v3574_v33, %v3573_v32  ;;  %v8344_v3 = vpack.c.bf16 %v3681_v10, %v3677_v49  ;;  %v3882_v32 = vld [vmem:[%s8923_s8 + $0x18] sm:$0xff]  ;;  %v625_v49 = vlaneseq }
 0x75d   :  { %v8273_v43 = vadd.f32 %v2973_v41, %v2972_v19  ;;  %v3668_v41 = vld [vmem:[#allocation12 + $0x8] sm:$0xff]  ;;  %v8332_v19 = vpack.c.bf16 %v3673_v35, %v3669_v34  ;;  %v3884_v35 = vld [vmem:[%s8923_s8 + $0x28] sm:$0xff] }
 0x75e   :  { %v3883_v34 = vld [vmem:[%s8923_s8 + $0x20] sm:$0xff]  ;;  %v626_v10 = vshrl.u32 %v625_v49, 7  ;;  %v4190_v49 = vld [vmem:[%s8923_s8 + $0x38] sm:$0xf] }
 0x75f   :  { %7453 = vtanh.f32 %v8273_v43 }
 0x769   :  { %v7454_v57 = vpop.eup %7453 }
 0x76a   :  { %v2976_v58 = vmul.f32 %v7454_v57, %v2971_v54  ;;  %v3690_v54 = vld [vmem:[#allocation12 + $0xb8] sm:$0xff] }
 0x76c   :  { %6216 = vmatmul.mubr.msk.f32.vlgmr.msra.gmra.mrb[26].mxu0 %vm426_vm6, %v2976_v58  ;;  %6219 = vmatmul.mubr.msk.f32.vlgmr.msra.gmra.mrb[30].mxu1 %vm426_vm6, %v2976_v58 }
 0x76d   :  { %6832 = vmatpush1.bf16.msra.mxu0 %v8156_v6  ;;  %6842 = vmatpush1.bf16.msra.mxu1 %v8210_v21  ;;  %v3385_v6 = vld [vmem:[#allocation9 + $0x68] sm:$0x3f]  ;;  %v3387_v21 = vld [vmem:[#allocation9 + $0x78] sm:$0x3f] }
 0x76e   :  { %6835 = vmatprep.subr.msk.bf16.mxu0 %vm7877_vm5, %v6833_v59  ;;  %6845 = vmatprep.subr.msk.bf16.mxu1 %vm7877_vm5, %v6843_v62  ;;  %v6853_v44 = vpack.c.bf16 %v3385_v6, %v8249_v42  ;;  %v6863_v61 = vpack.c.bf16 %v3387_v21, %v8251_v17  ;;  %v3671_v59 = vld [vmem:[#allocation12 + $0x20] sm:$0xff]  ;;  %v3676_v62 = vld [vmem:[#allocation12 + $0x48] sm:$0xff]  ;;  %v3689_v6 = vld [vmem:[#allocation12 + $0xb0] sm:$0xff] }
 0x76f   :  { %3272 = vmatprep.mubr.f32.mxu0 %v7693_v1  ;;  %3343 = vmatprep.mubr.f32.mxu1 %v7693_v1  ;;  %v8355_v48 = vpack.c.bf16 %v3680_v5, %v3676_v62  ;;  %v3675_v21 = vld [vmem:[#allocation12 + $0x40] sm:$0xff]  ;;  %v8466_v62 = vsub.s32 2, %v626_v10 }
 0x771   :  { %6838 = vmatpush1.bf16.msk.msra.mxu0 %vm7877_vm5, %v6836_v38  ;;  %6848 = vmatpush1.bf16.msk.msra.mxu1 %vm7877_vm5, %v6846_v7  ;;  %v8347_v38 = vpack.c.bf16 %v3690_v54, %v3686_v52  ;;  %v3685_v7 = vld [vmem:[#allocation12 + $0x90] sm:$0xff]  ;;  %v8461_v52 = vsub.s32 0, %v626_v10  ;;  %v623_v54 = vld [vmem:[#allocation10] sm:$0xf] }
 0x772   :  { %6850 = vmatprep.subr.bf16.mxu0 %v8238_v4  ;;  %6860 = vmatprep.subr.bf16.mxu1 %v8240_v18  ;;  %v3571_v4 = vld [vmem:[%s8918_s3] sm:$0xff]  ;;  %v3674_v18 = vld [vmem:[#allocation12 + $0x38] sm:$0xff] }
 0x773   :  { %v6869_v14 = vpack.c.bf16 %v3572_v12, %v3571_v4  ;;  %v3683_v12 = vld [vmem:[#allocation12 + $0x80] sm:$0xff] }
 0x774   :  { %6222 = vmatmul.mubr.msk.f32.vlgmr.msra.gmra.mrb[28].mxu0 %vm426_vm6, %v2976_v58  ;;  %6225 = vmatmul.mubr.msk.f32.vlgmr.msra.gmra.mrb[16].mxu1 %vm426_vm6, %v2976_v58  ;;  %v3667_v58 = vld [vmem:[#allocation12] sm:$0xff] }
 0x775   :  { %6852 = vmatpush1.bf16.msra.mxu0 %v8242_v22  ;;  %6862 = vmatpush1.bf16.msra.mxu1 %v8245_v29  ;;  %v8320_v22 = vpack.c.bf16 %v3674_v18, %v3670_v15  ;;  %v8375_v18 = vld [vmem:[#allocation12 + $0xc8] sm:$0xff] }
 0x776   :  { %3489 = vmatprep.mubr.f32.mxu0 %v7693_v1  ;;  %3560 = vmatprep.mubr.f32.mxu1 %v7693_v1 }
 0x777   :  { %6855 = vmatprep.subr.msk.bf16.mxu0 %vm7877_vm5, %v6853_v44  ;;  %6865 = vmatprep.subr.msk.bf16.mxu1 %vm7877_vm5, %v6863_v61  ;;  %v8352_v44 = vpack.c.bf16 %v3671_v59, %v3667_v58  ;;  %v8358_v61 = vpack.c.bf16 %v3689_v6, %v3685_v7  ;;  %v8463_v58 = vsub.s32 1, %v626_v10  ;;  %v628_v59 = vrot.slane %v623_v54, %v8461_v52 }
 0x779   :  { %6858 = vmatpush1.bf16.msk.msra.mxu0 %vm7877_vm5, %v6856_v55  ;;  %6868 = vmatpush1.bf16.msk.msra.mxu1 %vm7877_vm5, %v6866_v11  ;;  %v3679_v55 = vld [vmem:[#allocation12 + $0x60] sm:$0xff]  ;;  %v3688_v11 = vld [vmem:[#allocation12 + $0xa8] sm:$0xff]  ;;  %v632_v5 = vrot.slane %v623_v54, %v8463_v58 }
 0x77a   :  { %6870 = vmatprep.subr.bf16.mxu0 %v6869_v14  ;;  %6898 = vmatprep.subr.bf16.mxu1 %v8320_v22  ;;  %v8363_v31 = vpack.c.bf16 %v3679_v55, %v3675_v21  ;;  %v8367_v4 = vpack.c.bf16 %v3688_v11, %v3684_v8  ;;  %v636_v55 = vrot.slane %v623_v54, %v8466_v62  ;;  %v8470_v11 = vsub.s32 3, %v626_v10  ;;  %v4310_v10 = vld [vmem:[#allocation12 + $0xf8] sm:$0xf] }
 0x847   :  { %v3274_v23 = vpop.f32.mrb[28].mxu0  ;;  %v3345_v24 = vpop.f32.mrb[16].mxu1 }
 0x848   :  { %v3350_v29 = vadd.f32 %v3274_v23, %v7973_v63  ;;  %v3276_v42 = vpop.f32.mrb[29].mxu0  ;;  %v3347_v46 = vpop.f32.mrb[17].mxu1  ;;  %v3696_v23 = vld [vmem:[#allocation12 + $0xe8] sm:$0xf] }
 0x849   :  { %v3351_v17 = vadd.f32 %v3276_v42, %v7975_v2  ;;  %v3363_v51 = vmul.f32 0.5, %v3347_v46  ;;  %v3698_v42 = vld [vmem:[#allocation12 + $0xf8] sm:$0xf]  ;;  %v8380_v46 = vld [vmem:[#allocation12 + $0xc0] sm:$0xff] }
 0x84a   :  { %v3354_v47 = vmul.f32 0.5, %v3350_v29  ;;  %v6891_v29 = vpack.c.bf16 %v3696_v23, %v8375_v18 }
 0x84b   :  { %v3358_v50 = vmul.f32 0.5, %v3351_v17  ;;  %v3695_v17 = vld [vmem:[#allocation12 + $0xe0] sm:$0xf] }
 0x84c   :  { %7455 = vtanh.f32 %v3354_v47 }
 0x84d   :  { %7457 = vtanh.f32 %v3358_v50  ;;  %v6894_v50 = vpack.c.bf16 %v3695_v17, %v8380_v46  ;;  %v640_v17 = vrot.slane %v623_v54, %v8470_v11  ;;  %v6974_v54 = vpack.c.bf16 %v4190_v49, %v8443_v36 }
 0x84e   :  { %7459 = vtanh.f32 %v3345_v24  ;;  %v8377_v24 = vld [vmem:[#allocation12 + $0xd8] sm:$0xff] }
 0x84f   :  { %7461 = vtanh.f32 %v3363_v51  ;;  %v6909_v47 = vpack.c.bf16 %v3698_v42, %v8377_v24  ;;  %v8384_v51 = vld [vmem:[#allocation12 + $0xd0] sm:$0xff] }
 0x856   :  { %v7456_v56 = vpop.eup %7455 }
 0x857   :  { %v7458_v60 = vpop.eup %7457  ;;  %v3356_v20 = vmul.f32 0.5, %v7456_v56  ;;  %v3697_v56 = vld [vmem:[#allocation12 + $0xf0] sm:$0xf] }
 0x858   :  { %v3360_v9 = vmul.f32 0.5, %v7458_v60  ;;  %v7460_v13 = vpop.eup %7459  ;;  %v6912_v60 = vpack.c.bf16 %v3697_v56, %v8384_v51 }
 0x859   :  { %v3357_v25 = vadd.f32 0.5, %v3356_v20  ;;  %v7462_v2 = vpop.eup %7461  ;;  %v6232_v20 = vld [vmem:[%s8919_s4] ss:$0 sm:$0xff] }
 0x85a   :  { %v3361_v27 = vadd.f32 0.5, %v3360_v9  ;;  %v3365_v16 = vmul.f32 0.5, %v7462_v2  ;;  %v7694_v2 = vmov 0.0|0.0  }
 0x85b   :  { %v3368_v28 = vmul.f32 %v7460_v13, %v3357_v25 }
 0x85c   :  { %v3367_v63 = vmul.f32 %v3361_v27, %v8273_v43  ;;  %v3366_v26 = vadd.f32 0.5, %v3365_v16  ;;  %v3672_v43 = vld [vmem:[#allocation12 + $0x28] sm:$0xff]  ;;  %v3881_v16 = vld [vmem:[%s8923_s8 + $0x10] sm:$0xff] }
 0x85d   :  { %v8341_v57 = vpack.c.bf16 %v3672_v43, %v3668_v41  ;;  %v8426_v33 = vpack.c.bf16 %v3882_v32, %v3881_v16  ;;  %v4003_v41 = vld [vmem:[#allocation12 + $0xe0] sm:$0xf] }
 0x85e   :  { %v3369_v30 = vadd.f32 %v3368_v28, %v3367_v63  ;;  %v3879_v28 = vld [vmem:[%s8923_s8] sm:$0xff]  ;;  %v3880_v63 = vld [vmem:[%s8923_s8 + $0x8] sm:$0xff]  ;;  %v6943_v43 = vpack.c.bf16 %v4003_v41, %v8380_v46 }
 0x85f   :  { %v4005_v41 = vld [vmem:[#allocation12 + $0xf0] sm:$0xf] }
 0x860   :  { %7463 = vtanh.f32 %v3369_v30 }
 0x86a   :  { %v7464_v39 = vpop.eup %7463 }
 0x86b   :  { %v3371_v40 = vmul.f32 %v7464_v39, %v3366_v26  ;;  %v8436_v26 = vpack.c.bf16 %v3884_v35, %v3883_v34  ;;  %v4004_v39 = vld [vmem:[#allocation12 + $0xe8] sm:$0xf] }
 0x86d   :  { %6228 = vmatmul.mubr.msk.f32.vlgmr.msra.gmra.mrb[30].mxu0 %vm426_vm6, %v3371_v40  ;;  %6231 = vmatmul.mubr.msk.f32.vlgmr.msra.gmra.mrb[32].mxu1 %vm426_vm6, %v3371_v40 }
 0x86e   :  { %6872 = vmatpush3.bf16.msra.mxu0 %v6869_v14  ;;  %6394 = vmatprep.mubr.msk.f32.mxu0 %vm426_vm6, %v3371_v40  ;;  %v3687_v14 = vld [vmem:[#allocation12 + $0xa0] sm:$0xff]  ;;  %v6925_v40 = vpack.c.bf16 %v3886_v37, %v8443_v36 }
 0x86f   :  { %6875 = vmatprep.subr.msk.bf16.mxu0 %vm7877_vm5, %v6873_v53  ;;  %6900 = vmatpush1.bf16.msra.mxu1 %v8332_v19  ;;  %v8371_v15 = vpack.c.bf16 %v3687_v14, %v3683_v12 }
 0x870   :  { %6902 = vmatprep.subr.bf16.mxu1 %v8334_v45  ;;  %3850 = vmatprep.mubr.f32.mxu1 %v7693_v1 }
 0x872   :  { %6878 = vmatpush3.bf16.msk.msra.mxu0 %vm7877_vm5, %v6873_v53  ;;  %v6940_v53 = vpack.c.bf16 %v4004_v39, %v8375_v18 }
 0x873   :  { %6880 = vmatprep.subr.bf16.mxu0 %v8341_v57  ;;  %6904 = vmatpush1.bf16.msra.mxu1 %v8344_v3 }
 0x874   :  { %6906 = vmatprep.subr.bf16.mxu1 %v8347_v38 }
 0x875   :  { %6395 = vmatmul.mubr.msk.f32.vlgmr.msra.gmra.mrb[32].mxu0 %vm426_vm6, %v3369_v30  ;;  %v8415_v30 = vpack.c.bf16 %v3880_v63, %v3879_v28 }
 0x876   :  { %6882 = vmatpush1.bf16.msra.mxu0 %v8352_v44  ;;  %3779 = vmatprep.mubr.f32.mxu0 %v7693_v1 }
 0x877   :  { %6884 = vmatprep.subr.bf16.mxu0 %v8355_v48  ;;  %6908 = vmatpush1.bf16.msra.mxu1 %v8358_v61 }
 0x878   :  { %6911 = vmatprep.subr.msk.bf16.mxu1 %vm7825_vm2, %v6909_v47 }
 0x87a   :  { %6886 = vmatpush1.bf16.msra.mxu0 %v8363_v31 }
 0x87b   :  { %6888 = vmatprep.subr.bf16.mxu0 %v8367_v4  ;;  %6914 = vmatpush1.bf16.msk.msra.mxu1 %vm7825_vm2, %v6912_v60 }
 0x87c   :  { %6915 = vmatprep.subr.bf16.mxu1 %v7694_v2 }
 0x87e   :  { %6890 = vmatpush1.bf16.msra.mxu0 %v8371_v15 }
 0x87f   :  { %6893 = vmatprep.subr.msk.bf16.mxu0 %vm7825_vm2, %v6891_v29 }
 0x882   :  { %6896 = vmatpush1.bf16.msk.msra.mxu0 %vm7825_vm2, %v6894_v50 }
 0x883   :  { %6929 = vmatprep.subr.bf16.mxu0 %v8341_v57 }
 0x948   :  { %v6396_v9 = vpop.f32.mrb[32].mxu0 }
 0x949   :  { %v8399_v25 = vadd.f32 %v6396_v9, %v6232_v20  ;;  %v3654_v13 = vpop.f32.mrb[33].mxu0 }
 0x94a   :  { %v3655_v27 = vadd.f32 %v6232_v20, %v3654_v13 }
 0x94c   :  { %6238 = vmatmul.mubr.msk.f32.vlgmr.msra.gmra.mrb[14].mxu0 %vm3699_vm7, %v3655_v27  ;;  %6241 = vmatmul.mubr.msk.f32.vlgmr.msra.gmra.mrb[18].mxu1 %vm3699_vm7, %v3655_v27 }
 0x94d   :  { %6931 = vmatpush1.bf16.msra.mxu0 %v8352_v44  ;;  %4083 = vmatprep.mubr.f32.mxu0 %v7693_v1 }
 0x94e   :  { %6933 = vmatprep.subr.bf16.mxu0 %v8355_v48  ;;  %6917 = vmatpush3.bf16.msra.mxu1 %v8415_v30 }
 0x94f   :  { %6918 = vmatprep.subr.bf16.mxu1 %v7694_v2  ;;  %6413 = vmatprep.mubr.msk.f32.mxu1 %vm7695_vm8, %v7693_v1 }
 0x951   :  { %6935 = vmatpush1.bf16.msra.mxu0 %v8363_v31 }
 0x952   :  { %6937 = vmatprep.subr.bf16.mxu0 %v8367_v4  ;;  %6920 = vmatpush3.bf16.msra.mxu1 %v8426_v33 }
 0x953   :  { %6921 = vmatprep.subr.bf16.mxu1 %v7694_v2 }
 0x955   :  { %6939 = vmatpush1.bf16.msra.mxu0 %v8371_v15 }
 0x956   :  { %6923 = vmatpush3.bf16.msra.mxu1 %v8436_v26  ;;  %6942 = vmatprep.subr.msk.bf16.mxu0 %vm7825_vm2, %v6940_v53 }
 0x957   :  { %6924 = vmatprep.subr.bf16.mxu1 %v7694_v2 }
 0x959   :  { %6945 = vmatpush1.bf16.msk.msra.mxu0 %vm7825_vm2, %v6943_v43  ;;  %v6961_v43 = vpack.c.bf16 %v4005_v41, %v8384_v51 }
 0x95a   :  { %6927 = vmatpush3.bf16.msk.msra.mxu1 %vm7825_vm2, %v6925_v40  ;;  %6964 = vmatprep.subr.bf16.mxu0 %v7694_v2 }
 0x95b   :  { %6947 = vmatprep.subr.bf16.mxu1 %v8320_v22 }
 0xa1f   :  { %v3781_v7 = vpop.f32.mrb[14].mxu0  ;;  %v3852_v6 = vpop.f32.mrb[18].mxu1 }
 0xa20   :  { %v7275_v21 = vadd.f32 %v3781_v7, %v628_v59  ;;  %v3783_v8 = vpop.f32.mrb[15].mxu0  ;;  %v3854_v12 = vpop.f32.mrb[19].mxu1  ;;  %v7277_v42 = vadd.f32 %v3852_v6, %v636_v55  ;;  %v7007_v59 = vpack.c.bf16 %v4310_v10, %v8377_v24  ;;  %v1018_v6 = vld [vmem:[#allocation10] sm:$0xf] }
 0xa21   :  { %v7276_v14 = vadd.f32 %v3783_v8, %v632_v5  ;;  %v7278_v47 = vadd.f32 %v3854_v12, %v640_v17  ;;  %v4309_v5 = vld [vmem:[#allocation12 + $0xf0] sm:$0xf]  ;;  %v1027_v55 = vrot.slane %v1018_v6, %v8463_v58  ;;  %v1023_v8 = vrot.slane %v1018_v6, %v8461_v52 }
 0xa22   :  { %v3861_v23 = vmul.f32 0.5, %v7275_v21  ;;  %v7010_v7 = vpack.c.bf16 %v4309_v5, %v8384_v51  ;;  %v8524_v21 = vld [vmem:[%s8924_s9] ss:$0 sm:$0xff] }
 0xa23   :  { %v3865_v29 = vmul.f32 0.5, %v7276_v14  ;;  %v3870_v50 = vmul.f32 0.5, %v7278_v47 }
 0xa24   :  { %7465 = vtanh.f32 %v3861_v23 }
 0xa25   :  { %7467 = vtanh.f32 %v3865_v29 }
 0xa26   :  { %7469 = vtanh.f32 %v7277_v42 }
 0xa27   :  { %7471 = vtanh.f32 %v3870_v50 }
 0xa2e   :  { %v7466_v56 = vpop.eup %7465 }
 0xa2f   :  { %v7468_v60 = vpop.eup %7467  ;;  %v3863_v20 = vmul.f32 0.5, %v7466_v56 }
 0xa30   :  { %v3867_v9 = vmul.f32 0.5, %v7468_v60  ;;  %v7470_v27 = vpop.eup %7469  ;;  %v1031_v60 = vrot.slane %v1018_v6, %v8466_v62 }
 0xa31   :  { %v3864_v13 = vadd.f32 0.5, %v3863_v20  ;;  %v7472_v34 = vpop.eup %7471  ;;  %v1035_v20 = vrot.slane %v1018_v6, %v8470_v11  ;;  %v4307_v6 = vld [vmem:[#allocation12 + $0xe0] sm:$0xf] }
 0xa32   :  { %v3868_v28 = vadd.f32 0.5, %v3867_v9  ;;  %v3872_v35 = vmul.f32 0.5, %v7472_v34 }
 0xa33   :  { %v3875_v63 = vmul.f32 %v7470_v27, %v3864_v13 }
 0xa34   :  { %v3874_v16 = vmul.f32 %v3868_v28, %v8399_v25  ;;  %v3873_v37 = vadd.f32 0.5, %v3872_v35  ;;  %v4006_v25 = vld [vmem:[#allocation12 + $0xf8] sm:$0xf] }
 0xa35   :  { %v6958_v53 = vpack.c.bf16 %v4006_v25, %v8377_v24 }
 0xa36   :  { %v8474_v32 = vadd.f32 %v3875_v63, %v3874_v16 }
 0xa38   :  { %7473 = vtanh.f32 %v8474_v32 }
 0xa42   :  { %v7474_v39 = vpop.eup %7473 }
 0xa43   :  { %v3878_v40 = vmul.f32 %v7474_v39, %v3873_v37 }
 0xa45   :  { %6414 = vmatmul.mubr.msk.f32.vlgmr.msra.gmra.mrb[34].mxu1 %vm3699_vm7, %v3878_v40  ;;  %6247 = vmatmul.mubr.msk.f32.vlgmr.msra.gmra.mrb[16].mxu0 %vm3699_vm7, %v3878_v40 }
 0xa46   :  { %6949 = vmatpush1.bf16.msra.mxu1 %v8332_v19  ;;  %4154 = vmatprep.mubr.f32.mxu1 %v7693_v1 }
 0xa47   :  { %6951 = vmatprep.subr.bf16.mxu1 %v8334_v45  ;;  %6966 = vmatpush3.bf16.msra.mxu0 %v8415_v30 }
 0xa48   :  { %6967 = vmatprep.subr.bf16.mxu0 %v7694_v2  ;;  %6432 = vmatprep.mubr.msk.f32.mxu0 %vm7695_vm8, %v7693_v1 }
 0xa4a   :  { %6953 = vmatpush1.bf16.msra.mxu1 %v8344_v3 }
 0xa4b   :  { %6955 = vmatprep.subr.bf16.mxu1 %v8347_v38  ;;  %6969 = vmatpush3.bf16.msra.mxu0 %v8426_v33 }
 0xa4c   :  { %6970 = vmatprep.subr.bf16.mxu0 %v7694_v2 }
 0xa4e   :  { %6957 = vmatpush1.bf16.msra.mxu1 %v8358_v61 }
 0xa4f   :  { %6960 = vmatprep.subr.msk.bf16.mxu1 %vm7825_vm2, %v6958_v53  ;;  %6972 = vmatpush3.bf16.msra.mxu0 %v8436_v26 }
 0xa50   :  { %6973 = vmatprep.subr.bf16.mxu0 %v7694_v2 }
 0xa52   :  { %6963 = vmatpush1.bf16.msk.msra.mxu1 %vm7825_vm2, %v6961_v43 }
 0xa53   :  { %6996 = vmatprep.subr.bf16.mxu1 %v8320_v22  ;;  %6976 = vmatpush3.bf16.msk.msra.mxu0 %vm7825_vm2, %v6974_v54 }
 0xa54   :  { %6978 = vmatprep.subr.bf16.mxu0 %v8341_v57 }
 0xa55   :  { %6250 = vmatmul.mubr.msk.f32.vlgmr.msra.gmra.mrb[20].mxu1 %vm3699_vm7, %v3878_v40 }
 0xa56   :  { %6998 = vmatpush1.bf16.msra.mxu1 %v8332_v19  ;;  %4458 = vmatprep.mubr.f32.mxu1 %v7693_v1 }
 0xa57   :  { %7000 = vmatprep.subr.bf16.mxu1 %v8334_v45 }
 0xa5a   :  { %7002 = vmatpush1.bf16.msra.mxu1 %v8344_v3 }
 0xa5b   :  { %7004 = vmatprep.subr.bf16.mxu1 %v8347_v38 }
 0xa5e   :  { %7006 = vmatpush1.bf16.msra.mxu1 %v8358_v61 }
 0xa5f   :  { %7009 = vmatprep.subr.msk.bf16.mxu1 %vm7825_vm2, %v7007_v59 }
 0xa62   :  { %7012 = vmatpush1.bf16.msk.msra.mxu1 %vm7825_vm2, %v7010_v7 }
 0xa63   :  { %7013 = vmatprep.subr.bf16.mxu1 %v7694_v2 }
 0xb18   :  { %v3966_v12 = vpop.f32.mrb[34].mxu1  ;;  %v4085_v14 = vpop.f32.mrb[16].mxu0 }
 0xb19   :  { %v3967_v23 = vadd.f32 %v8524_v21, %v3966_v12  ;;  %v6415_v29 = vpop.f32.mrb[35].mxu1  ;;  %v4087_v42 = vpop.f32.mrb[17].mxu0  ;;  %v7279_v47 = vadd.f32 %v4085_v14, %v1023_v8  ;;  %v4494_v8 = vld [vmem:[%s8923_s8 + $0x38] sm:$0xf]  ;;  %v4612_v12 = vld [vmem:[#allocation12 + $0xe8] sm:$0xf] }
 0xb1a   :  { %v7280_v17 = vadd.f32 %v4087_v42, %v1027_v55  ;;  %v6992_v55 = vpack.c.bf16 %v4307_v6, %v8380_v46  ;;  %v7023_v14 = vpack.c.bf16 %v4494_v8, %v8443_v36  ;;  %v4613_v6 = vld [vmem:[#allocation12 + $0xf0] sm:$0xf]  ;;  %v4798_v8 = vld [vmem:[%s8923_s8 + $0x38] sm:$0xf] }
 0xb1b   :  { %3970 = vst [vmem:[#allocation13] sm:$0xff] %v3967_v23  ;;  %v4165_v56 = vmul.f32 0.5, %v7279_v47 }
 0xb1c   :  { %v4169_v50 = vmul.f32 0.5, %v7280_v17 }
 0xb1e   :  { %7475 = vtanh.f32 %v4169_v50 }
 0xb1f   :  { %7477 = vtanh.f32 %v4165_v56 }
 0xb28   :  { %v4156_v9 = vpop.f32.mrb[20].mxu1  ;;  %v7476_v63 = vpop.eup %7475 }
 0xb29   :  { %v7281_v13 = vadd.f32 %v4156_v9, %v1031_v60  ;;  %v4158_v27 = vpop.f32.mrb[21].mxu1  ;;  %v7478_v16 = vpop.eup %7477  ;;  %v4171_v34 = vmul.f32 0.5, %v7476_v63 }
 0xb2a   :  { %v7282_v28 = vadd.f32 %v4158_v27, %v1035_v20  ;;  %v4167_v37 = vmul.f32 0.5, %v7478_v16 }
 0xb2b   :  { %7479 = vtanh.f32 %v7281_v13  ;;  %v4172_v39 = vadd.f32 0.5, %v4171_v34 }
 0xb2c   :  { %v4174_v35 = vmul.f32 0.5, %v7282_v28  ;;  %v4168_v40 = vadd.f32 0.5, %v4167_v37 }
 0xb2d   :  { %v4178_v53 = vmul.f32 %v4172_v39, %v8474_v32  ;;  %v4308_v32 = vld [vmem:[#allocation12 + $0xe8] sm:$0xf] }
 0xb2e   :  { %7481 = vtanh.f32 %v4174_v35  ;;  %v6989_v7 = vpack.c.bf16 %v4308_v32, %v8375_v18 }
 0xb35   :  { %v7480_v25 = vpop.eup %7479 }
 0xb36   :  { %v4179_v41 = vmul.f32 %v7480_v25, %v4168_v40 }
 0xb38   :  { %v8532_v43 = vadd.f32 %v4179_v41, %v4178_v53  ;;  %v7482_v49 = vpop.eup %7481 }
 0xb39   :  { %v4176_v10 = vmul.f32 0.5, %v7482_v49 }
 0xb3a   :  { %7483 = vtanh.f32 %v8532_v43 }
 0xb3b   :  { %v4177_v54 = vadd.f32 0.5, %v4176_v10 }
 0xb44   :  { %v7484_v59 = vpop.eup %7483 }
 0xb45   :  { %v4182_v5 = vmul.f32 %v7484_v59, %v4177_v54 }
 0xb47   :  { %6433 = vmatmul.mubr.msk.f32.vlgmr.msra.gmra.mrb[34].mxu0 %vm3699_vm7, %v4182_v5  ;;  %6259 = vmatmul.mubr.msk.f32.vlgmr.msra.gmra.mrb[22].mxu1 %vm3699_vm7, %v4182_v5 }
 0xb48   :  { %6980 = vmatpush1.bf16.msra.mxu0 %v8352_v44  ;;  %4387 = vmatprep.mubr.f32.mxu0 %v7693_v1 }
 0xb49   :  { %6982 = vmatprep.subr.bf16.mxu0 %v8355_v48  ;;  %7015 = vmatpush3.bf16.msra.mxu1 %v8415_v30 }
 0xb4a   :  { %7016 = vmatprep.subr.bf16.mxu1 %v7694_v2  ;;  %6451 = vmatprep.mubr.msk.f32.mxu1 %vm7695_vm8, %v7693_v1 }
 0xb4c   :  { %6984 = vmatpush1.bf16.msra.mxu0 %v8363_v31 }
 0xb4d   :  { %6986 = vmatprep.subr.bf16.mxu0 %v8367_v4  ;;  %7018 = vmatpush3.bf16.msra.mxu1 %v8426_v33 }
 0xb4e   :  { %7019 = vmatprep.subr.bf16.mxu1 %v7694_v2 }
 0xb50   :  { %6988 = vmatpush1.bf16.msra.mxu0 %v8371_v15 }
 0xb51   :  { %6991 = vmatprep.subr.msk.bf16.mxu0 %vm7825_vm2, %v6989_v7  ;;  %7021 = vmatpush3.bf16.msra.mxu1 %v8436_v26 }
 0xb52   :  { %7022 = vmatprep.subr.bf16.mxu1 %v7694_v2 }
 0xb54   :  { %6994 = vmatpush1.bf16.msk.msra.mxu0 %vm7825_vm2, %v6992_v55  ;;  %v7059_v55 = vpack.c.bf16 %v4613_v6, %v8384_v51  ;;  %v4895_v6 = vld [vmem:[#allocation12 + $0x40] sm:$0xff] }
 0xb55   :  { %7027 = vmatprep.subr.bf16.mxu0 %v8341_v57  ;;  %v4611_v57 = vld [vmem:[#allocation12 + $0xe0] sm:$0xf]  ;;  %7025 = vmatpush3.bf16.msk.msra.mxu1 %vm7825_vm2, %v7023_v14 }
 0xb56   :  { %v7041_v23 = vpack.c.bf16 %v4611_v57, %v8380_v46  ;;  %7045 = vmatprep.subr.bf16.mxu1 %v8320_v22  ;;  %v1413_v46 = vld [vmem:[#allocation10] sm:$0xf] }
 0xb57   :  { %6256 = vmatmul.mubr.msk.f32.vlgmr.msra.gmra.mrb[18].mxu0 %vm3699_vm7, %v4182_v5  ;;  %v1418_v29 = vrot.slane %v1413_v46, %v8461_v52  ;;  %v1422_v42 = vrot.slane %v1413_v46, %v8463_v58  ;;  %v1426_v47 = vrot.slane %v1413_v46, %v8466_v62  ;;  %v1430_v27 = vrot.slane %v1413_v46, %v8470_v11 }
 0xb58   :  { %7029 = vmatpush1.bf16.msra.mxu0 %v8352_v44  ;;  %4691 = vmatprep.mubr.f32.mxu0 %v7693_v1  ;;  %v7038_v44 = vpack.c.bf16 %v4612_v12, %v8375_v18  ;;  %v4918_v12 = vld [vmem:[#allocation12 + $0xf8] sm:$0xf] }
 0xb59   :  { %7031 = vmatprep.subr.bf16.mxu0 %v8355_v48  ;;  %v7105_v57 = vpack.c.bf16 %v4918_v12, %v8377_v24 }
 0xb5c   :  { %7033 = vmatpush1.bf16.msra.mxu0 %v8363_v31 }
 0xb5d   :  { %7035 = vmatprep.subr.bf16.mxu0 %v8367_v4 }
 0xb60   :  { %7037 = vmatpush1.bf16.msra.mxu0 %v8371_v15 }
 0xb61   :  { %7040 = vmatprep.subr.msk.bf16.mxu0 %vm7825_vm2, %v7038_v44 }
 0xb64   :  { %7043 = vmatpush1.bf16.msk.msra.mxu0 %vm7825_vm2, %v7041_v23 }
 0xb65   :  { %7062 = vmatprep.subr.bf16.mxu0 %v7694_v2 }
 0xc1a   :  { %v4270_v48 = vpop.f32.mrb[34].mxu0  ;;  %v4460_v31 = vpop.f32.mrb[22].mxu1 }
 0xc1b   :  { %v4271_v4 = vadd.f32 %v8524_v21, %v4270_v48  ;;  %v6434_v15 = vpop.f32.mrb[35].mxu0  ;;  %v4462_v18 = vpop.f32.mrb[23].mxu1  ;;  %v7285_v13 = vadd.f32 %v4460_v31, %v1426_v47 }
 0xc1c   :  { %v7286_v28 = vadd.f32 %v4462_v18, %v1430_v27 }
 0xc1d   :  { %4274 = vst [vmem:[#allocation13 + $0x8] sm:$0xff] %v4271_v4 }
 0xc1e   :  { %v4478_v63 = vmul.f32 0.5, %v7286_v28 }
 0xc2a   :  { %v4389_v17 = vpop.f32.mrb[18].mxu0 }
 0xc2b   :  { %v7283_v50 = vadd.f32 %v4389_v17, %v1418_v29  ;;  %v4391_v56 = vpop.f32.mrb[19].mxu0 }
 0xc2c   :  { %v7284_v60 = vadd.f32 %v4391_v56, %v1422_v42 }
 0xc2d   :  { %v4469_v20 = vmul.f32 0.5, %v7283_v50 }
 0xc2e   :  { %v4473_v9 = vmul.f32 0.5, %v7284_v60 }
 0xc2f   :  { %7485 = vtanh.f32 %v4469_v20 }
 0xc30   :  { %7487 = vtanh.f32 %v4473_v9 }
 0xc31   :  { %7489 = vtanh.f32 %v7285_v13 }
 0xc32   :  { %7491 = vtanh.f32 %v4478_v63 }
 0xc39   :  { %v7486_v16 = vpop.eup %7485 }
 0xc3a   :  { %v7488_v34 = vpop.eup %7487  ;;  %v4471_v35 = vmul.f32 0.5, %v7486_v16 }
 0xc3b   :  { %v4475_v37 = vmul.f32 0.5, %v7488_v34  ;;  %v7490_v40 = vpop.eup %7489 }
 0xc3c   :  { %v4472_v39 = vadd.f32 0.5, %v4471_v35  ;;  %v7492_v10 = vpop.eup %7491 }
 0xc3d   :  { %v4476_v25 = vadd.f32 0.5, %v4475_v37  ;;  %v4480_v54 = vmul.f32 0.5, %v7492_v10  ;;  %v4896_v10 = vld [vmem:[#allocation12 + $0x48] sm:$0xff] }
 0xc3e   :  { %v4483_v53 = vmul.f32 %v7490_v40, %v4472_v39 }
 0xc3f   :  { %v4482_v41 = vmul.f32 %v4476_v25, %v8532_v43  ;;  %v4481_v59 = vadd.f32 0.5, %v4480_v54  ;;  %v4614_v43 = vld [vmem:[#allocation12 + $0xf8] sm:$0xf]  ;;  %v4900_v54 = vld [vmem:[#allocation12 + $0x68] sm:$0xff] }
 0xc40   :  { %v7056_v7 = vpack.c.bf16 %v4614_v43, %v8377_v24 }
 0xc41   :  { %v8585_v49 = vadd.f32 %v4483_v53, %v4482_v41  ;;  %v4887_v53 = vld [vmem:[#allocation12] sm:$0xff] }
 0xc42   :  { %v4891_v41 = vld [vmem:[#allocation12 + $0x20] sm:$0xff] }
 0xc43   :  { %7493 = vtanh.f32 %v8585_v49 }
 0xc4d   :  { %v7494_v5 = vpop.eup %7493 }
 0xc4e   :  { %v4486_v32 = vmul.f32 %v7494_v5, %v4481_v59 }
 0xc50   :  { %6452 = vmatmul.mubr.msk.f32.vlgmr.msra.gmra.mrb[36].mxu1 %vm3699_vm7, %v4486_v32  ;;  %6265 = vmatmul.mubr.msk.f32.vlgmr.msra.gmra.mrb[20].mxu0 %vm3699_vm7, %v4486_v32 }
 0xc51   :  { %7047 = vmatpush1.bf16.msra.mxu1 %v8332_v19  ;;  %4762 = vmatprep.mubr.f32.mxu1 %v7693_v1 }
 0xc52   :  { %7049 = vmatprep.subr.bf16.mxu1 %v8334_v45  ;;  %7064 = vmatpush3.bf16.msra.mxu0 %v8415_v30 }
 0xc53   :  { %7065 = vmatprep.subr.bf16.mxu0 %v7694_v2  ;;  %6470 = vmatprep.mubr.msk.f32.mxu0 %vm7695_vm8, %v7693_v1 }
 0xc55   :  { %7051 = vmatpush1.bf16.msra.mxu1 %v8344_v3 }
 0xc56   :  { %7053 = vmatprep.subr.bf16.mxu1 %v8347_v38  ;;  %7067 = vmatpush3.bf16.msra.mxu0 %v8426_v33 }
 0xc57   :  { %7068 = vmatprep.subr.bf16.mxu0 %v7694_v2 }
 0xc59   :  { %7055 = vmatpush1.bf16.msra.mxu1 %v8358_v61 }
 0xc5a   :  { %7058 = vmatprep.subr.msk.bf16.mxu1 %vm7825_vm2, %v7056_v7  ;;  %7070 = vmatpush3.bf16.msra.mxu0 %v8436_v26  ;;  %v8645_v7 = vpack.c.bf16 %v4900_v54, %v4896_v10 }
 0xc5b   :  { %7071 = vmatprep.subr.bf16.mxu0 %v7694_v2 }
 0xc5d   :  { %7061 = vmatpush1.bf16.msk.msra.mxu1 %vm7825_vm2, %v7059_v55  ;;  %v4904_v55 = vld [vmem:[#allocation12 + $0x88] sm:$0xff] }
 0xc5e   :  { %7094 = vmatprep.subr.bf16.mxu1 %v8320_v22  ;;  %v7072_v22 = vpack.c.bf16 %v4798_v8, %v8443_v36  ;;  %v4908_v8 = vld [vmem:[#allocation12 + $0xa8] sm:$0xff] }
 0xc60   :  { %6268 = vmatmul.mubr.msk.f32.vlgmr.msra.gmra.mrb[24].mxu1 %vm3699_vm7, %v4486_v32  ;;  %7074 = vmatpush3.bf16.msk.msra.mxu0 %vm7825_vm2, %v7072_v22  ;;  %v8643_v32 = vpack.c.bf16 %v4891_v41, %v4887_v53  ;;  %v8654_v22 = vpack.c.bf16 %v4908_v8, %v4904_v55  ;;  %v5193_v8 = vld [vmem:[#allocation12 + $0x10] sm:$0xff] }
 0xc61   :  { %7096 = vmatpush1.bf16.msra.mxu1 %v8332_v19  ;;  %5066 = vmatprep.mubr.f32.mxu1 %v7693_v1  ;;  %v4917_v19 = vld [vmem:[#allocation12 + $0xf0] sm:$0xf] }
 0xc62   :  { %7098 = vmatprep.subr.bf16.mxu1 %v8334_v45  ;;  %v7108_v14 = vpack.c.bf16 %v4917_v19, %v8384_v51  ;;  %v4888_v45 = vld [vmem:[#allocation12 + $0x8] sm:$0xff]  ;;  %v4907_v19 = vld [vmem:[#allocation12 + $0xa0] sm:$0xff] }
 0xc65   :  { %7100 = vmatpush1.bf16.msra.mxu1 %v8344_v3  ;;  %v4892_v3 = vld [vmem:[#allocation12 + $0x28] sm:$0xff] }
 0xc66   :  { %7102 = vmatprep.subr.bf16.mxu1 %v8347_v38  ;;  %v8630_v38 = vpack.c.bf16 %v4892_v3, %v4888_v45  ;;  %v4916_v45 = vld [vmem:[#allocation12 + $0xe8] sm:$0xf] }
 0xc68   :  { %7076 = vmatprep.subr.bf16.mxu0 %v8630_v38 }
 0xc69   :  { %7104 = vmatpush1.bf16.msra.mxu1 %v8358_v61  ;;  %v1808_v61 = vld [vmem:[#allocation10] sm:$0xf] }
 0xc6a   :  { %7107 = vmatprep.subr.msk.bf16.mxu1 %vm7825_vm2, %v7105_v57  ;;  %v1817_v24 = vrot.slane %v1808_v61, %v8463_v58  ;;  %v1813_v51 = vrot.slane %v1808_v61, %v8461_v52  ;;  %v1821_v42 = vrot.slane %v1808_v61, %v8466_v62  ;;  %v1825_v17 = vrot.slane %v1808_v61, %v8470_v11  ;;  %v4903_v57 = vld [vmem:[#allocation12 + $0x80] sm:$0xff] }
 0xc6b   :  { %v8663_v3 = vpack.c.bf16 %v4907_v19, %v4903_v57  ;;  %v5197_v57 = vld [vmem:[#allocation12 + $0x30] sm:$0xff]  ;;  %v5202_v19 = vld [vmem:[#allocation12 + $0x58] sm:$0xff] }
 0xc6d   :  { %7110 = vmatpush1.bf16.msk.msra.mxu1 %vm7825_vm2, %v7108_v14  ;;  %v8657_v14 = vld [vmem:[#allocation12 + $0xc8] sm:$0xff] }
 0xc6e   :  { %7111 = vmatprep.subr.bf16.mxu1 %v7694_v2  ;;  %v7087_v61 = vpack.c.bf16 %v4916_v45, %v8657_v14  ;;  %v5206_v45 = vld [vmem:[#allocation12 + $0x78] sm:$0xff] }
 0xd23   :  { %v4574_v44 = vpop.f32.mrb[36].mxu1  ;;  %v4693_v23 = vpop.f32.mrb[20].mxu0 }
 0xd24   :  { %v4575_v48 = vadd.f32 %v8524_v21, %v4574_v44  ;;  %v6453_v31 = vpop.f32.mrb[37].mxu1  ;;  %v4695_v4 = vpop.f32.mrb[21].mxu0  ;;  %v7287_v18 = vadd.f32 %v4693_v23, %v1813_v51  ;;  %v4915_v51 = vld [vmem:[#allocation12 + $0xe0] sm:$0xf] }
 0xd25   :  { %v7288_v15 = vadd.f32 %v4695_v4, %v1817_v24  ;;  %v8667_v24 = vld [vmem:[#allocation12 + $0xc0] sm:$0xff]  ;;  %v5194_v4 = vld [vmem:[#allocation12 + $0x18] sm:$0xff] }
 0xd26   :  { %4578 = vst [vmem:[#allocation13 + $0x10] sm:$0xff] %v4575_v48  ;;  %v4773_v29 = vmul.f32 0.5, %v7287_v18  ;;  %v5219_v44 = vld [vmem:[#allocation12 + $0xe0] sm:$0xf] }
 0xd27   :  { %v4777_v46 = vmul.f32 0.5, %v7288_v15  ;;  %v7139_v31 = vpack.c.bf16 %v5219_v44, %v8667_v24  ;;  %v5198_v15 = vld [vmem:[#allocation12 + $0x38] sm:$0xff]  ;;  %v5201_v44 = vld [vmem:[#allocation12 + $0x50] sm:$0xff] }
 0xd28   :  { %v8693_v18 = vpack.c.bf16 %v5198_v15, %v5194_v4  ;;  %v5209_v15 = vld [vmem:[#allocation12 + $0x90] sm:$0xff] }
 0xd29   :  { %7495 = vtanh.f32 %v4777_v46 }
 0xd2a   :  { %7497 = vtanh.f32 %v4773_v29 }
 0xd33   :  { %v4764_v47 = vpop.f32.mrb[24].mxu1  ;;  %v7496_v20 = vpop.eup %7495 }
 0xd34   :  { %v7289_v50 = vadd.f32 %v4764_v47, %v1821_v42  ;;  %v4766_v56 = vpop.f32.mrb[25].mxu1  ;;  %v7498_v9 = vpop.eup %7497  ;;  %v4779_v13 = vmul.f32 0.5, %v7496_v20  ;;  %v2203_v47 = vld [vmem:[#allocation10] sm:$0xf] }
 0xd35   :  { %v7290_v60 = vadd.f32 %v4766_v56, %v1825_v17  ;;  %v4775_v28 = vmul.f32 0.5, %v7498_v9  ;;  %v2212_v56 = vrot.slane %v2203_v47, %v8463_v58  ;;  %v2216_v20 = vrot.slane %v2203_v47, %v8466_v62 }
 0xd36   :  { %7499 = vtanh.f32 %v7289_v50  ;;  %v4780_v63 = vadd.f32 0.5, %v4779_v13  ;;  %v2208_v50 = vrot.slane %v2203_v47, %v8461_v52 }
 0xd37   :  { %v4782_v27 = vmul.f32 0.5, %v7290_v60  ;;  %v4776_v16 = vadd.f32 0.5, %v4775_v28 }
 0xd38   :  { %v4786_v35 = vmul.f32 %v4780_v63, %v8585_v49  ;;  %v4899_v49 = vld [vmem:[#allocation12 + $0x60] sm:$0xff] }
 0xd39   :  { %7501 = vtanh.f32 %v4782_v27  ;;  %v8650_v12 = vpack.c.bf16 %v4899_v49, %v4895_v6 }
 0xd40   :  { %v7500_v34 = vpop.eup %7499 }
 0xd41   :  { %v4787_v37 = vmul.f32 %v7500_v34, %v4776_v16  ;;  %v2220_v34 = vrot.slane %v2203_v47, %v8470_v11  ;;  %v8734_v47 = vld [vmem:[#allocation12 + $0xd0] sm:$0xff] }
 0xd43   :  { %v8640_v39 = vadd.f32 %v4787_v37, %v4786_v35  ;;  %v7502_v40 = vpop.eup %7501 }
 0xd44   :  { %v4784_v25 = vmul.f32 0.5, %v7502_v40 }
 0xd45   :  { %7503 = vtanh.f32 %v8640_v39 }
 0xd46   :  { %v4785_v59 = vadd.f32 0.5, %v4784_v25 }
 0xd4f   :  { %v7504_v5 = vpop.eup %7503 }
 0xd50   :  { %v4790_v43 = vmul.f32 %v7504_v5, %v4785_v59 }
 0xd52   :  { %6471 = vmatmul.mubr.msk.f32.vlgmr.msra.gmra.mrb[36].mxu0 %vm3699_vm7, %v4790_v43  ;;  %6277 = vmatmul.mubr.msk.f32.vlgmr.msra.gmra.mrb[26].mxu1 %vm3699_vm7, %v4790_v43 }
 0xd53   :  { %7078 = vmatpush1.bf16.msra.mxu0 %v8643_v32  ;;  %4995 = vmatprep.mubr.f32.mxu0 %v7693_v1 }
 0xd54   :  { %7080 = vmatprep.subr.bf16.mxu0 %v8645_v7  ;;  %7113 = vmatpush3.bf16.msra.mxu1 %v8415_v30  ;;  %v7090_v30 = vpack.c.bf16 %v4915_v51, %v8667_v24 }
 0xd55   :  { %7114 = vmatprep.subr.bf16.mxu1 %v7694_v2  ;;  %6489 = vmatprep.mubr.msk.f32.mxu1 %vm7695_vm8, %v7693_v1 }
 0xd57   :  { %7082 = vmatpush1.bf16.msra.mxu0 %v8650_v12 }
 0xd58   :  { %7084 = vmatprep.subr.bf16.mxu0 %v8654_v22  ;;  %7116 = vmatpush3.bf16.msra.mxu1 %v8426_v33  ;;  %v5102_v33 = vld [vmem:[%s8923_s8 + $0x38] sm:$0xf] }
 0xd59   :  { %7117 = vmatprep.subr.bf16.mxu1 %v7694_v2  ;;  %v7121_v23 = vpack.c.bf16 %v5102_v33, %v8443_v36 }
 0xd5b   :  { %7086 = vmatpush1.bf16.msra.mxu0 %v8663_v3 }
 0xd5c   :  { %7089 = vmatprep.subr.msk.bf16.mxu0 %vm7825_vm2, %v7087_v61  ;;  %7119 = vmatpush3.bf16.msra.mxu1 %v8436_v26  ;;  %v5220_v26 = vld [vmem:[#allocation12 + $0xe8] sm:$0xf] }
 0xd5d   :  { %7120 = vmatprep.subr.bf16.mxu1 %v7694_v2  ;;  %v7136_v48 = vpack.c.bf16 %v5220_v26, %v8657_v14  ;;  %v8714_v26 = vpack.c.bf16 %v5206_v45, %v5202_v19 }
 0xd5f   :  { %7092 = vmatpush1.bf16.msk.msra.mxu0 %vm7825_vm2, %v7090_v30  ;;  %v8712_v30 = vpack.c.bf16 %v5197_v57, %v5193_v8 }
 0xd60   :  { %7125 = vmatprep.subr.bf16.mxu0 %v8630_v38  ;;  %7123 = vmatpush3.bf16.msk.msra.mxu1 %vm7825_vm2, %v7121_v23  ;;  %v5205_v23 = vld [vmem:[#allocation12 + $0x70] sm:$0xff] }
 0xd61   :  { %7143 = vmatprep.subr.bf16.mxu1 %v8693_v18 }
 0xd62   :  { %6274 = vmatmul.mubr.msk.f32.vlgmr.msra.gmra.mrb[22].mxu0 %vm3699_vm7, %v4790_v43 }
 0xd63   :  { %7127 = vmatpush1.bf16.msra.mxu0 %v8643_v32  ;;  %5299 = vmatprep.mubr.f32.mxu0 %v7693_v1 }
 0xd64   :  { %7129 = vmatprep.subr.bf16.mxu0 %v8645_v7 }
 0xd67   :  { %7131 = vmatpush1.bf16.msra.mxu0 %v8650_v12 }
 0xd68   :  { %7133 = vmatprep.subr.bf16.mxu0 %v8654_v22 }
 0xd6b   :  { %7135 = vmatpush1.bf16.msra.mxu0 %v8663_v3 }
 0xd6c   :  { %7138 = vmatprep.subr.msk.bf16.mxu0 %vm7825_vm2, %v7136_v48  ;;  %v5214_v48 = vld [vmem:[#allocation12 + $0xb8] sm:$0xff] }
 0xd6f   :  { %7141 = vmatpush1.bf16.msk.msra.mxu0 %vm7825_vm2, %v7139_v31  ;;  %v8719_v31 = vpack.c.bf16 %v5205_v23, %v5201_v44 }
 0xd70   :  { %7160 = vmatprep.subr.bf16.mxu0 %v7694_v2 }
 0xe25   :  { %v4878_v36 = vpop.f32.mrb[36].mxu0  ;;  %v5068_v46 = vpop.f32.mrb[26].mxu1 }
 0xe26   :  { %v4879_v29 = vadd.f32 %v8524_v21, %v4878_v36  ;;  %v6472_v42 = vpop.f32.mrb[37].mxu0  ;;  %v5070_v17 = vpop.f32.mrb[27].mxu1  ;;  %v7293_v16 = vadd.f32 %v5068_v46, %v2216_v20  ;;  %v5213_v36 = vld [vmem:[#allocation12 + $0xb0] sm:$0xff]  ;;  %v8727_v46 = vld [vmem:[#allocation12 + $0xd8] sm:$0xff] }
 0xe27   :  { %v7294_v35 = vadd.f32 %v5070_v17, %v2220_v34  ;;  %v8730_v42 = vpack.c.bf16 %v5213_v36, %v5209_v15  ;;  %v5400_v20 = vld [vmem:[%s8923_s8 + $0x8] sm:$0xff] }
 0xe28   :  { %4882 = vst [vmem:[#allocation13 + $0x18] sm:$0xff] %v4879_v29  ;;  %v5222_v29 = vld [vmem:[#allocation12 + $0xf8] sm:$0xf] }
 0xe29   :  { %v5086_v37 = vmul.f32 0.5, %v7294_v35  ;;  %v7154_v17 = vpack.c.bf16 %v5222_v29, %v8727_v46  ;;  %v8783_v35 = vld [vmem:[%s8923_s8 + $0x30] sm:$0xff] }
 0xe35   :  { %v4997_v60 = vpop.f32.mrb[22].mxu0 }
 0xe36   :  { %v7291_v9 = vadd.f32 %v4997_v60, %v2208_v50  ;;  %v4999_v13 = vpop.f32.mrb[23].mxu0  ;;  %v5221_v50 = vld [vmem:[#allocation12 + $0xf0] sm:$0xf] }
 0xe37   :  { %v7292_v27 = vadd.f32 %v4999_v13, %v2212_v56  ;;  %v7157_v56 = vpack.c.bf16 %v5221_v50, %v8734_v47  ;;  %v5399_v60 = vld [vmem:[%s8923_s8] sm:$0xff]  ;;  %v5401_v13 = vld [vmem:[%s8923_s8 + $0x10] sm:$0xff] }
 0xe38   :  { %v5077_v28 = vmul.f32 0.5, %v7291_v9  ;;  %v8756_v9 = vpack.c.bf16 %v5400_v20, %v5399_v60 }
 0xe39   :  { %v5081_v63 = vmul.f32 0.5, %v7292_v27  ;;  %v5402_v27 = vld [vmem:[%s8923_s8 + $0x18] sm:$0xff] }
 0xe3a   :  { %7505 = vtanh.f32 %v5077_v28  ;;  %v8766_v28 = vpack.c.bf16 %v5402_v27, %v5401_v13 }
 0xe3b   :  { %7507 = vtanh.f32 %v5081_v63  ;;  %v5403_v63 = vld [vmem:[%s8923_s8 + $0x20] sm:$0xff] }
 0xe3c   :  { %7509 = vtanh.f32 %v7293_v16  ;;  %v5404_v16 = vld [vmem:[%s8923_s8 + $0x28] sm:$0xff] }
 0xe3d   :  { %7511 = vtanh.f32 %v5086_v37  ;;  %v8776_v34 = vpack.c.bf16 %v5404_v16, %v5403_v63  ;;  %v5406_v37 = vld [vmem:[%s8923_s8 + $0x38] sm:$0xf] }
 0xe44   :  { %v7506_v40 = vpop.eup %7505 }
 0xe45   :  { %v7508_v25 = vpop.eup %7507  ;;  %v5079_v53 = vmul.f32 0.5, %v7506_v40  ;;  %v5526_v40 = vld [vmem:[#allocation12 + $0xf8] sm:$0xf] }
 0xe46   :  { %v5083_v41 = vmul.f32 0.5, %v7508_v25  ;;  %v7510_v54 = vpop.eup %7509  ;;  %v7170_v25 = vpack.c.bf16 %v5406_v37, %v8783_v35 }
 0xe47   :  { %v5080_v10 = vadd.f32 0.5, %v5079_v53  ;;  %v7512_v49 = vpop.eup %7511  ;;  %v7203_v53 = vpack.c.bf16 %v5526_v40, %v8727_v46 }
 0xe48   :  { %v5084_v59 = vadd.f32 0.5, %v5083_v41  ;;  %v5088_v55 = vmul.f32 0.5, %v7512_v49  ;;  %v5525_v41 = vld [vmem:[#allocation12 + $0xf0] sm:$0xf] }
 0xe49   :  { %v5091_v5 = vmul.f32 %v7510_v54, %v5080_v10  ;;  %v7206_v10 = vpack.c.bf16 %v5525_v41, %v8734_v47  ;;  %v2598_v54 = vld [vmem:[#allocation10] sm:$0xf] }
 0xe4a   :  { %v5090_v43 = vmul.f32 %v5084_v59, %v8640_v39  ;;  %v5089_v61 = vadd.f32 0.5, %v5088_v55  ;;  %v5210_v39 = vld [vmem:[#allocation12 + $0x98] sm:$0xff]  ;;  %v2607_v59 = vrot.slane %v2598_v54, %v8463_v58  ;;  %v2615_v44 = vrot.slane %v2598_v54, %v8470_v11 }
 0xe4b   :  { %v8723_v4 = vpack.c.bf16 %v5214_v48, %v5210_v39 }
 0xe4c   :  { %v8709_v6 = vadd.f32 %v5091_v5, %v5090_v43  ;;  %v2603_v5 = vrot.slane %v2598_v54, %v8461_v52 }
 0xe4e   :  { %7513 = vtanh.f32 %v8709_v6 }
 0xe58   :  { %v7514_v51 = vpop.eup %7513 }
 0xe59   :  { %v5094_v33 = vmul.f32 %v7514_v51, %v5089_v61 }
 0xe5b   :  { %6490 = vmatmul.mubr.msk.f32.vlgmr.msra.gmra.mrb[38].mxu1 %vm3699_vm7, %v5094_v33  ;;  %6283 = vmatmul.mubr.msk.f32.vlgmr.msra.gmra.mrb[24].mxu0 %vm3699_vm7, %v5094_v33 }
 0xe5c   :  { %7145 = vmatpush1.bf16.msra.mxu1 %v8712_v30  ;;  %5370 = vmatprep.mubr.f32.mxu1 %v7693_v1 }
 0xe5d   :  { %7147 = vmatprep.subr.bf16.mxu1 %v8714_v26  ;;  %6508 = vmatprep.mubr.msk.f32.mxu0 %vm7695_vm8, %v7693_v1 }
 0xe5e   :  { %7162 = vmatpush3.bf16.msra.mxu0 %v8756_v9 }
 0xe5f   :  { %7163 = vmatprep.subr.bf16.mxu0 %v7694_v2 }
 0xe60   :  { %7149 = vmatpush1.bf16.msra.mxu1 %v8719_v31 }
 0xe61   :  { %7151 = vmatprep.subr.bf16.mxu1 %v8723_v4 }
 0xe62   :  { %7165 = vmatpush3.bf16.msra.mxu0 %v8766_v28 }
 0xe63   :  { %7166 = vmatprep.subr.bf16.mxu0 %v7694_v2 }
 0xe64   :  { %7153 = vmatpush1.bf16.msra.mxu1 %v8730_v42 }
 0xe65   :  { %7156 = vmatprep.subr.msk.bf16.mxu1 %vm7825_vm2, %v7154_v17 }
 0xe66   :  { %7168 = vmatpush3.bf16.msra.mxu0 %v8776_v34 }
 0xe67   :  { %7169 = vmatprep.subr.bf16.mxu0 %v7694_v2 }
 0xe68   :  { %7159 = vmatpush1.bf16.msk.msra.mxu1 %vm7825_vm2, %v7157_v56 }
 0xe69   :  { %7192 = vmatprep.subr.bf16.mxu1 %v8693_v18 }
 0xe6a   :  { %7172 = vmatpush3.bf16.msk.msra.mxu0 %vm7825_vm2, %v7170_v25 }
 0xe6b   :  { %6286 = vmatmul.mubr.msk.f32.vlgmr.msra.gmra.mrb[28].mxu1 %vm3699_vm7, %v5094_v33  ;;  %7174 = vmatprep.subr.bf16.mxu0 %v8630_v38  ;;  %v2611_v33 = vrot.slane %v2598_v54, %v8466_v62 }
 0xe6c   :  { %7194 = vmatpush1.bf16.msra.mxu1 %v8712_v30  ;;  %5674 = vmatprep.mubr.f32.mxu1 %v7693_v1 }
 0xe6d   :  { %7196 = vmatprep.subr.bf16.mxu1 %v8714_v26 }
 0xe70   :  { %7198 = vmatpush1.bf16.msra.mxu1 %v8719_v31 }
 0xe71   :  { %7200 = vmatprep.subr.bf16.mxu1 %v8723_v4 }
 0xe74   :  { %7202 = vmatpush1.bf16.msra.mxu1 %v8730_v42 }
 0xe75   :  { %7205 = vmatprep.subr.msk.bf16.mxu1 %vm7825_vm2, %v7203_v53 }
 0xe78   :  { %7208 = vmatpush1.bf16.msk.msra.mxu1 %vm7825_vm2, %v7206_v10  ;;  %v5523_v10 = vld [vmem:[#allocation12 + $0xe0] sm:$0xf] }
 0xe79   :  { %7209 = vmatprep.subr.bf16.mxu1 %v7694_v2  ;;  %v7188_v54 = vpack.c.bf16 %v5523_v10, %v8667_v24 }
 0xf2e   :  { %v5182_v43 = vpop.f32.mrb[38].mxu1  ;;  %v5301_v49 = vpop.f32.mrb[24].mxu0 }
 0xf2f   :  { %v5183_v55 = vadd.f32 %v8524_v21, %v5182_v43  ;;  %v6491_v8 = vpop.f32.mrb[39].mxu1  ;;  %v5303_v57 = vpop.f32.mrb[25].mxu0  ;;  %v7295_v45 = vadd.f32 %v5301_v49, %v2603_v5  ;;  %v5828_v5 = vld [vmem:[#allocation12 + $0xe8] sm:$0xf] }
 0xf30   :  { %v7296_v19 = vadd.f32 %v5303_v57, %v2607_v59  ;;  %v5710_v59 = vld [vmem:[%s8923_s8 + $0x38] sm:$0xf] }
 0xf31   :  { %5186 = vst [vmem:[#allocation13 + $0x20] sm:$0xff] %v5183_v55  ;;  %v5381_v51 = vmul.f32 0.5, %v7295_v45  ;;  %v7219_v43 = vpack.c.bf16 %v5710_v59, %v8783_v35  ;;  %v2993_v55 = vld [vmem:[#allocation10] sm:$0xf] }
 0xf32   :  { %v5385_v61 = vmul.f32 0.5, %v7296_v19  ;;  %v2998_v8 = vrot.slane %v2993_v55, %v8461_v52  ;;  %v3002_v57 = vrot.slane %v2993_v55, %v8463_v58  ;;  %v3006_v19 = vrot.slane %v2993_v55, %v8466_v62 }
 0xf34   :  { %7515 = vtanh.f32 %v5385_v61 }
 0xf35   :  { %7517 = vtanh.f32 %v5381_v51 }
 0xf3e   :  { %v5372_v23 = vpop.f32.mrb[28].mxu1  ;;  %v7516_v36 = vpop.eup %7515 }
 0xf3f   :  { %v7297_v39 = vadd.f32 %v5372_v23, %v2611_v33  ;;  %v5374_v48 = vpop.f32.mrb[29].mxu1  ;;  %v7518_v21 = vpop.eup %7517  ;;  %v5387_v29 = vmul.f32 0.5, %v7516_v36 }
 0xf40   :  { %v7298_v15 = vadd.f32 %v5374_v48, %v2615_v44  ;;  %v5383_v50 = vmul.f32 0.5, %v7518_v21 }
 0xf41   :  { %7519 = vtanh.f32 %v7297_v39  ;;  %v5388_v56 = vadd.f32 0.5, %v5387_v29  ;;  %v3010_v39 = vrot.slane %v2993_v55, %v8470_v11 }
 0xf42   :  { %v5390_v17 = vmul.f32 0.5, %v7298_v15  ;;  %v5384_v60 = vadd.f32 0.5, %v5383_v50 }
 0xf43   :  { %v5394_v13 = vmul.f32 %v5388_v56, %v8709_v6  ;;  %v5524_v6 = vld [vmem:[#allocation12 + $0xe8] sm:$0xf] }
 0xf44   :  { %7521 = vtanh.f32 %v5390_v17  ;;  %v7185_v41 = vpack.c.bf16 %v5524_v6, %v8657_v14 }
 0xf4b   :  { %v7520_v20 = vpop.eup %7519 }
 0xf4c   :  { %v5395_v27 = vmul.f32 %v7520_v20, %v5384_v60 }
 0xf4e   :  { %v8805_v63 = vadd.f32 %v5395_v27, %v5394_v13  ;;  %v7522_v16 = vpop.eup %7521 }
 0xf4f   :  { %v5392_v37 = vmul.f32 0.5, %v7522_v16 }
 0xf50   :  { %7523 = vtanh.f32 %v8805_v63 }
 0xf51   :  { %v5393_v40 = vadd.f32 0.5, %v5392_v37 }
 0xf5a   :  { %v7524_v25 = vpop.eup %7523 }
 0xf5b   :  { %v5398_v53 = vmul.f32 %v7524_v25, %v5393_v40 }
 0xf5d   :  { %6509 = vmatmul.mubr.msk.f32.vlgmr.msra.gmra.mrb[38].mxu0 %vm3699_vm7, %v5398_v53  ;;  %6295 = vmatmul.mubr.msk.f32.vlgmr.msra.gmra.mrb[30].mxu1 %vm3699_vm7, %v5398_v53 }
 0xf5e   :  { %7176 = vmatpush1.bf16.msra.mxu0 %v8643_v32  ;;  %5603 = vmatprep.mubr.f32.mxu0 %v7693_v1 }
 0xf5f   :  { %7178 = vmatprep.subr.bf16.mxu0 %v8645_v7  ;;  %7211 = vmatpush3.bf16.msra.mxu1 %v8756_v9 }
 0xf60   :  { %7212 = vmatprep.subr.bf16.mxu1 %v7694_v2  ;;  %6527 = vmatprep.mubr.msk.f32.mxu1 %vm7695_vm8, %v7693_v1 }
 0xf62   :  { %7180 = vmatpush1.bf16.msra.mxu0 %v8650_v12 }
 0xf63   :  { %7182 = vmatprep.subr.bf16.mxu0 %v8654_v22  ;;  %7214 = vmatpush3.bf16.msra.mxu1 %v8766_v28 }
 0xf64   :  { %7215 = vmatprep.subr.bf16.mxu1 %v7694_v2 }
 0xf66   :  { %7184 = vmatpush1.bf16.msra.mxu0 %v8663_v3 }
 0xf67   :  { %7187 = vmatprep.subr.msk.bf16.mxu0 %vm7825_vm2, %v7185_v41  ;;  %7217 = vmatpush3.bf16.msra.mxu1 %v8776_v34  ;;  %v5829_v41 = vld [vmem:[#allocation12 + $0xf0] sm:$0xf] }
 0xf68   :  { %7218 = vmatprep.subr.bf16.mxu1 %v7694_v2 }
 0xf6a   :  { %7190 = vmatpush1.bf16.msk.msra.mxu0 %vm7825_vm2, %v7188_v54 }
 0xf6b   :  { %7223 = vmatprep.subr.bf16.mxu0 %v8630_v38  ;;  %v5827_v38 = vld [vmem:[#allocation12 + $0xe0] sm:$0xf]  ;;  %7221 = vmatpush3.bf16.msk.msra.mxu1 %vm7825_vm2, %v7219_v43 }
 0xf6c   :  { %v7237_v49 = vpack.c.bf16 %v5827_v38, %v8667_v24  ;;  %7241 = vmatprep.subr.bf16.mxu1 %v8693_v18 }
 0xf6d   :  { %6292 = vmatmul.mubr.msk.f32.vlgmr.msra.gmra.mrb[26].mxu0 %vm3699_vm7, %v5398_v53 }
 0xf6e   :  { %7225 = vmatpush1.bf16.msra.mxu0 %v8643_v32  ;;  %5907 = vmatprep.mubr.f32.mxu0 %v7693_v1  ;;  %v7234_v32 = vpack.c.bf16 %v5828_v5, %v8657_v14 }
 0xf6f   :  { %7227 = vmatprep.subr.bf16.mxu0 %v8645_v7  ;;  %v8855_v7 = vld [vmem:[%s8924_s9] ss:$0 sm:$0xff] }
 0xf72   :  { %7229 = vmatpush1.bf16.msra.mxu0 %v8650_v12 }
 0xf73   :  { %7231 = vmatprep.subr.bf16.mxu0 %v8654_v22 }
 0xf76   :  { %7233 = vmatpush1.bf16.msra.mxu0 %v8663_v3 }
 0xf77   :  { %7236 = vmatprep.subr.msk.bf16.mxu0 %vm7825_vm2, %v7234_v32 }
 0xf7a   :  { %7239 = vmatpush1.bf16.msk.msra.mxu0 %vm7825_vm2, %v7237_v49 }
 0xf7b   :  { %7258 = vmatprep.subr.bf16.mxu0 %v7694_v2 }
0x1030   :  { %v5486_v12 = vpop.f32.mrb[38].mxu0  ;;  %v5676_v22 = vpop.f32.mrb[30].mxu1 }
0x1031   :  { %v5487_v14 = vadd.f32 %v8855_v7, %v5486_v12  ;;  %v6510_v3 = vpop.f32.mrb[39].mxu0  ;;  %v5678_v24 = vpop.f32.mrb[31].mxu1  ;;  %v7301_v23 = vadd.f32 %v5676_v22, %v3006_v19 }
0x1032   :  { %v7302_v48 = vadd.f32 %v5678_v24, %v3010_v39 }
0x1033   :  { %5490 = vst [vmem:[#allocation13 + $0x28] sm:$0xff] %v5487_v14 }
0x1034   :  { %v5694_v15 = vmul.f32 0.5, %v7302_v48 }
0x1040   :  { %v5605_v18 = vpop.f32.mrb[26].mxu0 }
0x1041   :  { %v7299_v45 = vadd.f32 %v5605_v18, %v2998_v8  ;;  %v5607_v61 = vpop.f32.mrb[27].mxu0 }
0x1042   :  { %v7300_v51 = vadd.f32 %v5607_v61, %v3002_v57 }
0x1043   :  { %v5685_v33 = vmul.f32 0.5, %v7299_v45 }
0x1044   :  { %v5689_v44 = vmul.f32 0.5, %v7300_v51 }
0x1045   :  { %7525 = vtanh.f32 %v5685_v33 }
0x1046   :  { %7527 = vtanh.f32 %v5689_v44 }
0x1047   :  { %7529 = vtanh.f32 %v7301_v23 }
0x1048   :  { %7531 = vtanh.f32 %v5694_v15 }
0x104f   :  { %v7526_v36 = vpop.eup %7525 }
0x1050   :  { %v7528_v21 = vpop.eup %7527  ;;  %v5687_v29 = vmul.f32 0.5, %v7526_v36 }
0x1051   :  { %v5691_v17 = vmul.f32 0.5, %v7528_v21  ;;  %v7530_v56 = vpop.eup %7529 }
0x1052   :  { %v5688_v50 = vadd.f32 0.5, %v5687_v29  ;;  %v7532_v16 = vpop.eup %7531 }
0x1053   :  { %v5692_v60 = vadd.f32 0.5, %v5691_v17  ;;  %v5696_v37 = vmul.f32 0.5, %v7532_v16 }
0x1054   :  { %v5699_v20 = vmul.f32 %v7530_v56, %v5688_v50 }
0x1055   :  { %v5698_v13 = vmul.f32 %v5692_v60, %v8805_v63  ;;  %v5697_v40 = vadd.f32 0.5, %v5696_v37  ;;  %v5830_v63 = vld [vmem:[#allocation12 + $0xf8] sm:$0xf] }
0x1056   :  { %v7252_v6 = vpack.c.bf16 %v5830_v63, %v8727_v46 }
0x1057   :  { %v8863_v27 = vadd.f32 %v5699_v20, %v5698_v13 }
0x1059   :  { %7533 = vtanh.f32 %v8863_v27 }
0x1063   :  { %v7534_v25 = vpop.eup %7533 }
0x1064   :  { %v5702_v53 = vmul.f32 %v7534_v25, %v5697_v40 }
0x1066   :  { %6528 = vmatmul.mubr.msk.f32.vlgmr.msra.gmra.mrb[40].mxu1 %vm3699_vm7, %v5702_v53  ;;  %6301 = vmatmul.mubr.msk.f32.vlgmr.msra.gmra.mrb[30].mxu0 %vm3699_vm7, %v5702_v53 }
0x1067   :  { %7243 = vmatpush1.bf16.msra.mxu1 %v8712_v30  ;;  %5978 = vmatprep.mubr.f32.mxu1 %v7693_v1  ;;  %v7255_v30 = vpack.c.bf16 %v5829_v41, %v8734_v47 }
0x1068   :  { %7245 = vmatprep.subr.bf16.mxu1 %v8714_v26  ;;  %7260 = vmatpush3.bf16.msra.mxu0 %v8756_v9 }
0x1069   :  { %7261 = vmatprep.subr.bf16.mxu0 %v7694_v2  ;;  %6546 = vmatprep.mubr.msk.f32.mxu0 %vm7695_vm8, %v7693_v1  ;;  %v6014_v1 = vld [vmem:[%s8923_s8 + $0x38] sm:$0xf]  ;;  %s7696_s8 = smov [#allocation13]  }
0x106a   :  { %v7268_v26 = vpack.c.bf16 %v6014_v1, %v8783_v35  ;;  %s6104_s26 = sshll.u32 %s7696_s8, 4  ;;  %s6105_s26 = int_to_ptr.vmem [resolvable:$true] %s6104_s26 }
0x106b   :  { %7247 = vmatpush1.bf16.msra.mxu1 %v8719_v31  ;;  %v3388_v31 = vld [vmem:[#allocation10] sm:$0xf]  ;;  %s7655_s27 = scalar_lea.vmem %s6105_s26, 1024  ;;  %p7660_p13 = scmp.lt.s32.totalorder %s6105_s26, %s6105_s26 }
0x106c   :  { %7249 = vmatprep.subr.bf16.mxu1 %v8723_v4  ;;  %7263 = vmatpush3.bf16.msra.mxu0 %v8766_v28  ;;  %v3397_v4 = vrot.slane %v3388_v31, %v8463_v58  ;;  %v3393_v46 = vrot.slane %v3388_v31, %v8461_v52  ;;  %v3401_v0 = vrot.slane %v3388_v31, %v8466_v62  ;;  %p7656_p12 = scmp.ne.s32.totalorder %s6105_s26, %s7655_s27  ;;  %p7661_p0 = scmp.lt.s32.totalorder %s7655_s27, %s7655_s27 }
0x106d   :  { %7264 = vmatprep.subr.bf16.mxu0 %v7694_v2  ;;  %v3405_v35 = vrot.slane %v3388_v31, %v8470_v11 }
0x106e   :  { %p7662_p1 = por %p7661_p0, %p7660_p13 }
0x106f   :  { %7251 = vmatpush1.bf16.msra.mxu1 %v8730_v42 }
0x1070   :  { %7254 = vmatprep.subr.msk.bf16.mxu1 %vm7825_vm2, %v7252_v6  ;;  %7266 = vmatpush3.bf16.msra.mxu0 %v8776_v34  ;;  %p7663_p2 = pnand %p7662_p1, %p7656_p12 }
0x1071   :  { %7267 = vmatprep.subr.bf16.mxu0 %v7694_v2 }
0x1073   :  { %7257 = vmatpush1.bf16.msk.msra.mxu1 %vm7825_vm2, %v7255_v30 }
0x1074   :  { %7270 = vmatpush3.bf16.msk.msra.mxu0 %vm7825_vm2, %v7268_v26 }
0x1076   :  { %6304 = vmatmul.mubr.msk.f32.vlgmr.msra.gmra.mrb[32].mxu1 %vm3699_vm7, %v5702_v53 }
0x1139   :  { %v5790_v2 = vpop.f32.mrb[40].mxu1  ;;  %v5909_v42 = vpop.f32.mrb[30].mxu0 }
0x113a   :  { %v5791_v47 = vadd.f32 %v8855_v7, %v5790_v2  ;;  %v6529_v9 = vpop.f32.mrb[41].mxu1  ;;  %v5911_v28 = vpop.f32.mrb[31].mxu0  ;;  %v7303_v10 = vadd.f32 %v5909_v42, %v3393_v46 }
0x113b   :  { %v7304_v34 = vadd.f32 %v5911_v28, %v3397_v4 }
0x113c   :  { %5794 = vst [vmem:[#allocation13 + $0x30] sm:$0xff] %v5791_v47  ;;  %v5989_v59 = vmul.f32 0.5, %v7303_v10 }
0x113d   :  { %v5993_v54 = vmul.f32 0.5, %v7304_v34 }
0x113f   :  { %7535 = vtanh.f32 %v5993_v54 }
0x1140   :  { %7537 = vtanh.f32 %v5989_v59 }
0x1149   :  { %v5980_v58 = vpop.f32.mrb[32].mxu1  ;;  %v7536_v43 = vpop.eup %7535 }
0x114a   :  { %v7305_v5 = vadd.f32 %v5980_v58, %v3401_v0  ;;  %v5982_v52 = vpop.f32.mrb[33].mxu1  ;;  %v7538_v32 = vpop.eup %7537  ;;  %v5995_v49 = vmul.f32 0.5, %v7536_v43 }
0x114b   :  { %v7306_v38 = vadd.f32 %v5982_v52, %v3405_v35  ;;  %v5991_v22 = vmul.f32 0.5, %v7538_v32 }
0x114c   :  { %7539 = vtanh.f32 %v7305_v5  ;;  %v5996_v14 = vadd.f32 0.5, %v5995_v49 }
0x114d   :  { %v5998_v12 = vmul.f32 0.5, %v7306_v38  ;;  %v5992_v3 = vadd.f32 0.5, %v5991_v22 }
0x114e   :  { %v6002_v55 = vmul.f32 %v5996_v14, %v8863_v27 }
0x114f   :  { %7541 = vtanh.f32 %v5998_v12 }
0x1156   :  { %v7540_v24 = vpop.eup %7539 }
0x1157   :  { %v6003_v8 = vmul.f32 %v7540_v24, %v5992_v3 }
0x1159   :  { %v6004_v62 = vadd.f32 %v6003_v8, %v6002_v55  ;;  %v7542_v11 = vpop.eup %7541 }
0x115a   :  { %v6000_v57 = vmul.f32 0.5, %v7542_v11 }
0x115b   :  { %7543 = vtanh.f32 %v6004_v62 }
0x115c   :  { %v6001_v18 = vadd.f32 0.5, %v6000_v57 }
0x1165   :  { %v7544_v19 = vpop.eup %7543 }
0x1166   :  { %v6006_v45 = vmul.f32 %v7544_v19, %v6001_v18 }
0x1168   :  { %6547 = vmatmul.mubr.msk.f32.vlgmr.msra.gmra.mrb[40].mxu0 %vm3699_vm7, %v6006_v45 }
0x123b   :  { %v6094_v61 = vpop.f32.mrb[40].mxu0 }
0x123c   :  { %v6095_v51 = vadd.f32 %v8855_v7, %v6094_v61  ;;  %v6548_v33 = vpop.f32.mrb[41].mxu0 }
0x123e   :  { %6098 = vst [vmem:[#allocation13 + $0x38] sm:$0xff] %v6095_v51 }
0x123f   :  { %7666 = shalt.err (!%p7663_p2)
}
0x1240   :  { %s7667_s6 = scalar_lea.hbm %s8925_s10, 1024 }
0x1241   :  { %p7668_p3 = scmp.ne.s32.totalorder %s8925_s10, %s7667_s6  ;;  %p7671_p4 = scmp.lt.u32.totalorder %s7667_s6, %s8925_s10 }
0x1243   :  { %p7673_p5 = pnand %p7671_p4, %p7668_p3 }
0x1245   :  { %7676 = shalt.err (!%p7673_p5)
}
0x1246   :  { %s7697_s4 = smov 128   ;;  %s7698_s13 = smov 8  }
0x1247   :  { %6110 = dma.vmem_to_hbm [thread:$0]  %s6105_s26, 1024, %s8925_s10, [#allocation6], %s7697_s4, %s7697_s4, %s7698_s13  }
0x1248   :  { %7683 = dma.done.wait [#allocation6], 1024  }
0x1249   :  { %7684 = vsyncadd [#allocation6], 4294966272 }
0x124a   :  { %6114 = vsyncpa [#allocation5], 1 }
0x124b   :  { %6115 = vsyncpa [#allocation8], 1 }
0x124c   :  { %6116 = vsyncpa [#allocation11], 1 }
0x124d   :  { %6117 = vsyncpa [#allocation6], 1 }

</bundles_post_ra>
